<compile_context>
chip_gen: v5e
topology: v5e:2x2
jax: 0.10.0
libtpu: 0.0.40
codegen_flags: <defaults>
</compile_context>

<pallas_src>
import functools

import jax
import jax.numpy as jnp
from jax.experimental import pallas as pl
from jax.experimental.pallas import tpu as pltpu

# jnp.bfloat16 on v6e/v7x for ~2x MXU throughput + half the VMEM/HBM bytes.
MXU_DTYPE = jnp.float32
_MAX_TILE_M = 512
_VMEM_LIMIT = 48 * 1024 * 1024   # fits v7x's 64 MiB VMEM with headroom


def _round_up(x, m):
    return (x + m - 1) // m * m


def _sublane():
    return 16 if MXU_DTYPE == jnp.bfloat16 else 8


def _row_tiling(M):
    """Pick (padded_M, tile_m) so tile_m | padded_M and tile_m % sublane == 0."""
    Mp = _round_up(M, _sublane())
    tile = min(Mp, _MAX_TILE_M)
    Mp = _round_up(Mp, tile)
    return Mp, tile


def _pad_rows(a, Mp):
    M = a.shape[0]
    if Mp == M:
        return a
    return jnp.pad(a, ((0, Mp - M), (0, 0)))


def _mosaic_params():
    return pltpu.CompilerParams(
        dimension_semantics=("parallel",),
        vmem_limit_bytes=_VMEM_LIMIT,
    )


# ---------------------------------------------------------------------------
# Pallas kernels
# ---------------------------------------------------------------------------
def _mm_kernel(x_ref, w_ref, b_ref, o_ref, *, act):
    """Fused matmul + bias + activation on one M-tile (f32 accumulation)."""
    y = jnp.dot(x_ref[...], w_ref[...], preferred_element_type=jnp.float32)
    y = y + b_ref[...]
    if act == "relu":
        y = jnp.maximum(y, 0.0)
    elif act == "sigmoid":
        y = jax.nn.sigmoid(y)
    o_ref[...] = y.astype(o_ref.dtype)


def _enc_head_kernel(h_ref, w_ref, b_ref, eps_ref, z_ref, mu_ref, lv_ref, *, d):
    """Fused [mu|logvar] matmul (N=128, lane-dense) + reparameterization."""
    y = jnp.dot(h_ref[...], w_ref[...], preferred_element_type=jnp.float32)
    y = y + b_ref[...]
    mu = y[:, :d]
    lv = y[:, d:]
    mu_ref[...] = mu
    lv_ref[...] = lv
    z_ref[...] = mu + eps_ref[...] * jnp.exp(0.5 * lv)


def _dec_tail_kernel(x_ref, w6_ref, b6_ref, w7_ref, b7_ref, o_ref):
    """Fused l6 (ConvT 2x2 s2) + ReLU + l7 (ConvT 1x1) + sigmoid."""
    y = jnp.dot(x_ref[...], w6_ref[...], preferred_element_type=jnp.float32)
    y = jnp.maximum(y + b6_ref[...], 0.0)
    y = jnp.dot(y.astype(w7_ref.dtype), w7_ref[...],
                preferred_element_type=jnp.float32)
    o_ref[...] = jax.nn.sigmoid(y + b7_ref[...])


# ---------------------------------------------------------------------------
# Pallas wrappers
# ---------------------------------------------------------------------------
def matmul_bias_act(x, w, b, act="none"):
    """y = act(x @ w + b), rows tiled over a 1-D parallel grid."""
    M, K = x.shape
    N = w.shape[1]
    Mp, tile_m = _row_tiling(M)
    itm = 2 if MXU_DTYPE == jnp.bfloat16 else 4
    out = pl.pallas_call(
        functools.partial(_mm_kernel, act=act),
        out_shape=jax.ShapeDtypeStruct((Mp, N), jnp.float32),
        grid=(Mp // tile_m,),
        in_specs=[
            pl.BlockSpec((tile_m, K), lambda i: (i, 0)),
            pl.BlockSpec((K, N), lambda i: (0, 0)),
            pl.BlockSpec((1, N), lambda i: (0, 0)),
        ],
        out_specs=pl.BlockSpec((tile_m, N), lambda i: (i, 0)),
        compiler_params=_mosaic_params(),
        cost_estimate=pl.CostEstimate(
            flops=2 * M * K * N,
            transcendentals=M * N if act == "sigmoid" else 0,
            bytes_accessed=itm * (M * K + K * N) + 4 * M * N,
        ),
    )(_pad_rows(x, Mp).astype(MXU_DTYPE),
      w.astype(MXU_DTYPE),
      b.reshape(1, N).astype(jnp.float32))
    return out[:M] if Mp != M else out


def encoder_head(h, w_head, b_head, eps):
    """One kernel: [mu|logvar] = h @ w_head + b_head; z = mu + eps*exp(.5*logvar)."""
    M, K = h.shape
    N = w_head.shape[1]
    d = N // 2
    Mp, tile_m = _row_tiling(M)
    os = jax.ShapeDtypeStruct((Mp, d), jnp.float32)
    tile_out = pl.BlockSpec((tile_m, d), lambda i: (i, 0))
    z, mu, lv = pl.pallas_call(
        functools.partial(_enc_head_kernel, d=d),
        out_shape=(os, os, os),
        grid=(Mp // tile_m,),
        in_specs=[
            pl.BlockSpec((tile_m, K), lambda i: (i, 0)),
            pl.BlockSpec((K, N), lambda i: (0, 0)),
            pl.BlockSpec((1, N), lambda i: (0, 0)),
            pl.BlockSpec((tile_m, d), lambda i: (i, 0)),
        ],
        out_specs=(tile_out, tile_out, tile_out),
        compiler_params=_mosaic_params(),
        cost_estimate=pl.CostEstimate(
            flops=2 * M * K * N + 4 * M * d,
            transcendentals=M * d,
            bytes_accessed=4 * (M * K + K * N + 4 * M * d),
        ),
    )(_pad_rows(h, Mp).astype(MXU_DTYPE),
      w_head.astype(MXU_DTYPE),
      b_head.reshape(1, N).astype(jnp.float32),
      _pad_rows(eps, Mp).astype(jnp.float32))
    if Mp != M:
        z, mu, lv = z[:M], mu[:M], lv[:M]
    return z, mu, lv


def decoder_tail(x, w6, b6, w7, b7):
    """One kernel: sigmoid((relu(x @ w6 + b6)) @ w7 + b7); output (M, 4)."""
    M, K = x.shape
    N6 = w6.shape[1]
    N7 = w7.shape[1]
    Mp, tile_m = _row_tiling(M)
    out = pl.pallas_call(
        _dec_tail_kernel,
        out_shape=jax.ShapeDtypeStruct((Mp, N7), jnp.float32),
        grid=(Mp // tile_m,),
        in_specs=[
            pl.BlockSpec((tile_m, K), lambda i: (i, 0)),
            pl.BlockSpec((K, N6), lambda i: (0, 0)),
            pl.BlockSpec((1, N6), lambda i: (0, 0)),
            pl.BlockSpec((N6, N7), lambda i: (0, 0)),
            pl.BlockSpec((1, N7), lambda i: (0, 0)),
        ],
        out_specs=pl.BlockSpec((tile_m, N7), lambda i: (i, 0)),
        compiler_params=_mosaic_params(),
        cost_estimate=pl.CostEstimate(
            flops=2 * M * K * N6 + 2 * M * N6 * N7,
            transcendentals=M * N7,
            bytes_accessed=4 * (M * K + K * N6 + N6 * N7 + M * N7),
        ),
    )(_pad_rows(x, Mp).astype(MXU_DTYPE),
      w6.astype(MXU_DTYPE),
      b6.reshape(1, N6).astype(jnp.float32),
      w7.astype(MXU_DTYPE),
      b7.reshape(1, N7).astype(jnp.float32))
    return out[:M] if Mp != M else out


# ---------------------------------------------------------------------------
# NHWC glue (patch extraction / reshapes); matmuls run in Pallas
# ---------------------------------------------------------------------------
# TODO(synk): the 3x3 overlapping patch gather stays XLA glue; an in-kernel
# gather would need manual DMA / Element-indexed BlockSpecs over (Ho, Wo).
def _im2col_nhwc(x, k, stride):
    """x: (B, H, W, C) -> patches (B*Ho*Wo, k*k*C), column order (ki, kj, ci)."""
    B, H, W, C = x.shape
    Ho = (H - k) // stride + 1
    Wo = (W - k) // stride + 1
    cols = []
    for di in range(k):
        for dj in range(k):
            cols.append(x[:, di:di + stride * Ho:stride,
                          dj:dj + stride * Wo:stride, :])
    p = jnp.concatenate(cols, axis=-1)               # (B, Ho, Wo, k*k*C)
    return p.reshape(B * Ho * Wo, k * k * C), Ho, Wo


# ---------------------------------------------------------------------------
# VAEConv forward
# ---------------------------------------------------------------------------
def init_params(key):
    ks = jax.random.split(key, 16)
    n = lambda k, shape, s=0.05: (s * jax.random.normal(k, shape)).astype(jnp.float32)
    return {
        "l1_w": n(ks[0], (32, 1, 3, 3)),      "l1_b": n(ks[1], (32,), 0.01),
        "l2_w": n(ks[2], (64, 32, 3, 3)),     "l2_b": n(ks[3], (64,), 0.01),
        "lm_w": n(ks[4], (64, 6 * 6 * 64)),   "lm_b": n(ks[5], (64,), 0.01),
        "lv_w": n(ks[6], (64, 6 * 6 * 64)),   "lv_b": n(ks[7], (64,), 0.01),
        "l4_w": n(ks[8], (7 * 7 * 32, 64)),   "l4_b": n(ks[9], (7 * 7 * 32,), 0.01),
        "l5_w": n(ks[10], (32, 64, 2, 2)),    "l5_b": n(ks[11], (64,), 0.01),
        "l6_w": n(ks[12], (64, 32, 2, 2)),    "l6_b": n(ks[13], (32,), 0.01),
        "l7_w": n(ks[14], (32, 1, 1, 1)),     "l7_b": n(ks[15], (1,), 0.01),
    }


def vae_conv_forward(params, x, eps_key):
    B = x.shape[0]
    x = x.reshape(B, 28, 28, 1)                        # NCHW C==1 -> NHWC, free

    # ---- encode (NHWC) ----
    w1 = params["l1_w"].transpose(2, 3, 1, 0).reshape(9, 32)       # rows (ki,kj,ci)
    p1, Ho1, Wo1 = _im2col_nhwc(x, 3, 2)                           # (B*169, 9)
    h1 = matmul_bias_act(p1, w1, params["l1_b"], "relu").reshape(B, Ho1, Wo1, 32)

    w2 = params["l2_w"].transpose(2, 3, 1, 0).reshape(9 * 32, 64)
    p2, Ho2, Wo2 = _im2col_nhwc(h1, 3, 2)                          # (B*36, 288)
    h2 = matmul_bias_act(p2, w2, params["l2_b"], "relu").reshape(B, Ho2, Wo2, 64)

    h3 = h2.reshape(B, Ho2 * Wo2 * 64)                             # NHWC flatten (h,w,c)

    # fused mean / logvar / reparameterize (columns reordered (c,h,w)->(h,w,c))
    wm = params["lm_w"].reshape(64, 64, 6, 6).transpose(0, 2, 3, 1).reshape(64, 2304).T
    wv = params["lv_w"].reshape(64, 64, 6, 6).transpose(0, 2, 3, 1).reshape(64, 2304).T
    w_head = jnp.concatenate([wm, wv], axis=1)                     # (2304, 128)
    b_head = jnp.concatenate([params["lm_b"], params["lv_b"]])     # (128,)
    eps = jax.random.normal(eps_key, (B, 64), dtype=jnp.float32)
    z, mu, logvar = encoder_head(h3, w_head, b_head, eps)

    # ---- decode (NHWC) ----
    w4 = params["l4_w"].reshape(32, 7, 7, 64).transpose(1, 2, 0, 3).reshape(49 * 32, 64).T
    b4 = params["l4_b"].reshape(32, 7, 7).transpose(1, 2, 0).reshape(-1)
    d1 = matmul_bias_act(z, w4, b4, "relu")                        # (B, 1568), cols (h,w,c)
    d2 = d1.reshape(B * 49, 32)

    w5 = params["l5_w"].reshape(32, 64 * 4)                        # cols (co,ki,kj)
    b5 = jnp.repeat(params["l5_b"], 4)
    y5 = matmul_bias_act(d2, w5, b5, "relu")                       # (B*49, 256)
    d3 = (y5.reshape(B, 7, 7, 64, 2, 2)
             .transpose(0, 1, 4, 2, 5, 3)
             .reshape(B, 14, 14, 64))                              # NHWC (B,14,14,64)

    # fused l6 + l7 + sigmoid; l7's 1x1 conv as a block-diagonal (128,4) weight
    w6 = params["l6_w"].reshape(64, 32 * 4)                        # cols (co,ki,kj)
    b6 = jnp.repeat(params["l6_b"], 4)
    w7 = jnp.kron(params["l7_w"].reshape(32, 1), jnp.eye(4, dtype=jnp.float32))
    b7 = jnp.broadcast_to(params["l7_b"], (4,))
    y67 = decoder_tail(d3.reshape(B * 196, 64), w6, b6, w7, b7)    # (B*196, 4)

    x_hat = (y67.reshape(B, 14, 14, 2, 2)
                 .transpose(0, 1, 3, 2, 4)                         # (b,h,ki,w,kj)
                 .reshape(B, 784))
    return x_hat, mu, logvar


if __name__ == "__main__":
    key = jax.random.PRNGKey(0)
    pkey, xkey, ekey = jax.random.split(key, 3)
    params = init_params(pkey)
    # Conv arithmetic (6*6*64 flatten) requires 28x28 single-channel input.
    x = jax.random.normal(xkey, (2, 1, 28, 28), dtype=jnp.float32)

    x_hat, mu, logvar = jax.jit(vae_conv_forward)(params, x, ekey)
    jax.block_until_ready((x_hat, mu, logvar))

    assert x_hat.shape == (2, 784)
    assert mu.shape == (2, 64) and logvar.shape == (2, 64)
    assert bool(jnp.all(jnp.isfinite(x_hat)))
    print("KERNEL_OK")
</pallas_src>

<mosaic_0001>
module attributes {stable_mosaic.version = 11 : i64} {
  func.func @_mm_kernel(%arg0: i32, %arg1: memref<344x9xf32, #tpu.memory_space<vmem>>, %arg2: memref<9x32xf32, #tpu.memory_space<vmem>>, %arg3: memref<1x32xf32, #tpu.memory_space<vmem>>, %arg4: memref<344x32xf32, #tpu.memory_space<vmem>>) attributes {dimension_semantics = [#tpu.dimension_semantics<parallel>], iteration_bounds = array<i64: 1>, scalar_prefetch = 0 : i64, scratch_operands = 0 : i64, tpu.core_type = #tpu.core_type<tc>, window_params = [{transform_indices = @transform_0, window_bounds = array<i64: 344, 9>}, {pipeline_mode = #tpu.pipeline_mode<synchronous>, transform_indices = @transform_1, window_bounds = array<i64: 9, 32>}, {pipeline_mode = #tpu.pipeline_mode<synchronous>, transform_indices = @transform_2, window_bounds = array<i64: 1, 32>}, {transform_indices = @transform_3, window_bounds = array<i64: 344, 32>}]} {
    %c0 = arith.constant 0 : index
    %c0_0 = arith.constant 0 : index
    %0 = vector.load %arg1[%c0, %c0_0] : memref<344x9xf32, #tpu.memory_space<vmem>>, vector<344x9xf32>
    %c0_1 = arith.constant 0 : index
    %c0_2 = arith.constant 0 : index
    %1 = vector.load %arg2[%c0_1, %c0_2] : memref<9x32xf32, #tpu.memory_space<vmem>>, vector<9x32xf32>
    %cst = arith.constant dense<0.000000e+00> : vector<344x32xf32>
    %2 = tpu.matmul %0, %1, %cst {dimension_numbers = #tpu.dot_dimension_numbers<[1], [0], [0], [1], [0, 0, 1, 1], [], []>} : vector<344x9xf32>, vector<9x32xf32>, vector<344x32xf32> -> vector<344x32xf32>
    %c0_3 = arith.constant 0 : index
    %c0_4 = arith.constant 0 : index
    %3 = vector.load %arg3[%c0_3, %c0_4] : memref<1x32xf32, #tpu.memory_space<vmem>>, vector<1x32xf32>
    %4 = vector.broadcast %3 : vector<1x32xf32> to vector<344x32xf32>
    %5 = arith.addf %2, %4 : vector<344x32xf32>
    %cst_5 = arith.constant 0.000000e+00 : f32
    %6 = vector.broadcast %cst_5 : f32 to vector<344x32xf32>
    %7 = arith.maximumf %5, %6 : vector<344x32xf32>
    %c0_6 = arith.constant 0 : index
    %c0_7 = arith.constant 0 : index
    %8 = vector.load %arg4[%c0_6, %c0_7] : memref<344x32xf32, #tpu.memory_space<vmem>>, vector<344x32xf32>
    tpu.vector_store %arg4[%c0_6, %c0_7], %7 {strides = array<i32>} : memref<344x32xf32, #tpu.memory_space<vmem>>, vector<344x32xf32>,
    return
  }
  func.func @transform_0(%arg0: i32) -> (i32, i32) {
    %c0_i32 = arith.constant 0 : i32
    %c0_i32_0 = arith.constant 0 : i32
    return %arg0, %c0_i32 : i32, i32
  }
  func.func @transform_1(%arg0: i32) -> (i32, i32) {
    %c0_i32 = arith.constant 0 : i32
    %c0_i32_0 = arith.constant 0 : i32
    %c0_i32_1 = arith.constant 0 : i32
    return %c0_i32, %c0_i32_0 : i32, i32
  }
  func.func @transform_2(%arg0: i32) -> (i32, i32) {
    %c0_i32 = arith.constant 0 : i32
    %c0_i32_0 = arith.constant 0 : i32
    %c0_i32_1 = arith.constant 0 : i32
    return %c0_i32, %c0_i32_0 : i32, i32
  }
  func.func @transform_3(%arg0: i32) -> (i32, i32) {
    %c0_i32 = arith.constant 0 : i32
    %c0_i32_0 = arith.constant 0 : i32
    return %arg0, %c0_i32 : i32, i32
  }
}

module attributes {stable_mosaic.version = 11 : i64} {
  func.func @_mm_kernel(%arg0: i32, %arg1: memref<72x288xf32, #tpu.memory_space<vmem>>, %arg2: memref<288x64xf32, #tpu.memory_space<vmem>>, %arg3: memref<1x64xf32, #tpu.memory_space<vmem>>, %arg4: memref<72x64xf32, #tpu.memory_space<vmem>>) attributes {dimension_semantics = [#tpu.dimension_semantics<parallel>], iteration_bounds = array<i64: 1>, scalar_prefetch = 0 : i64, scratch_operands = 0 : i64, tpu.core_type = #tpu.core_type<tc>, window_params = [{transform_indices = @transform_0, window_bounds = array<i64: 72, 288>}, {pipeline_mode = #tpu.pipeline_mode<synchronous>, transform_indices = @transform_1, window_bounds = array<i64: 288, 64>}, {pipeline_mode = #tpu.pipeline_mode<synchronous>, transform_indices = @transform_2, window_bounds = array<i64: 1, 64>}, {transform_indices = @transform_3, window_bounds = array<i64: 72, 64>}]} {
    %c0 = arith.constant 0 : index
    %c0_0 = arith.constant 0 : index
    %0 = vector.load %arg1[%c0, %c0_0] : memref<72x288xf32, #tpu.memory_space<vmem>>, vector<72x288xf32>
    %c0_1 = arith.constant 0 : index
    %c0_2 = arith.constant 0 : index
    %1 = vector.load %arg2[%c0_1, %c0_2] : memref<288x64xf32, #tpu.memory_space<vmem>>, vector<288x64xf32>
    %cst = arith.constant dense<0.000000e+00> : vector<72x64xf32>
    %2 = tpu.matmul %0, %1, %cst {dimension_numbers = #tpu.dot_dimension_numbers<[1], [0], [0], [1], [0, 0, 1, 1], [], []>} : vector<72x288xf32>, vector<288x64xf32>, vector<72x64xf32> -> vector<72x64xf32>
    %c0_3 = arith.constant 0 : index
    %c0_4 = arith.constant 0 : index
    %3 = vector.load %arg3[%c0_3, %c0_4] : memref<1x64xf32, #tpu.memory_space<vmem>>, vector<1x64xf32>
    %4 = vector.broadcast %3 : vector<1x64xf32> to vector<72x64xf32>
    %5 = arith.addf %2, %4 : vector<72x64xf32>
    %cst_5 = arith.constant 0.000000e+00 : f32
    %6 = vector.broadcast %cst_5 : f32 to vector<72x64xf32>
    %7 = arith.maximumf %5, %6 : vector<72x64xf32>
    %c0_6 = arith.constant 0 : index
    %c0_7 = arith.constant 0 : index
    %8 = vector.load %arg4[%c0_6, %c0_7] : memref<72x64xf32, #tpu.memory_space<vmem>>, vector<72x64xf32>
    tpu.vector_store %arg4[%c0_6, %c0_7], %7 {strides = array<i32>} : memref<72x64xf32, #tpu.memory_space<vmem>>, vector<72x64xf32>,
    return
  }
  func.func @transform_0(%arg0: i32) -> (i32, i32) {
    %c0_i32 = arith.constant 0 : i32
    %c0_i32_0 = arith.constant 0 : i32
    return %arg0, %c0_i32 : i32, i32
  }
  func.func @transform_1(%arg0: i32) -> (i32, i32) {
    %c0_i32 = arith.constant 0 : i32
    %c0_i32_0 = arith.constant 0 : i32
    %c0_i32_1 = arith.constant 0 : i32
    return %c0_i32, %c0_i32_0 : i32, i32
  }
  func.func @transform_2(%arg0: i32) -> (i32, i32) {
    %c0_i32 = arith.constant 0 : i32
    %c0_i32_0 = arith.constant 0 : i32
    %c0_i32_1 = arith.constant 0 : i32
    return %c0_i32, %c0_i32_0 : i32, i32
  }
  func.func @transform_3(%arg0: i32) -> (i32, i32) {
    %c0_i32 = arith.constant 0 : i32
    %c0_i32_0 = arith.constant 0 : i32
    return %arg0, %c0_i32 : i32, i32
  }
}

module attributes {stable_mosaic.version = 11 : i64} {
  func.func @_enc_head_kernel(%arg0: i32, %arg1: memref<8x2304xf32, #tpu.memory_space<vmem>>, %arg2: memref<2304x128xf32, #tpu.memory_space<vmem>>, %arg3: memref<1x128xf32, #tpu.memory_space<vmem>>, %arg4: memref<8x64xf32, #tpu.memory_space<vmem>>, %arg5: memref<8x64xf32, #tpu.memory_space<vmem>>, %arg6: memref<8x64xf32, #tpu.memory_space<vmem>>, %arg7: memref<8x64xf32, #tpu.memory_space<vmem>>) attributes {dimension_semantics = [#tpu.dimension_semantics<parallel>], iteration_bounds = array<i64: 1>, scalar_prefetch = 0 : i64, scratch_operands = 0 : i64, tpu.core_type = #tpu.core_type<tc>, window_params = [{transform_indices = @transform_0, window_bounds = array<i64: 8, 2304>}, {pipeline_mode = #tpu.pipeline_mode<synchronous>, transform_indices = @transform_1, window_bounds = array<i64: 2304, 128>}, {pipeline_mode = #tpu.pipeline_mode<synchronous>, transform_indices = @transform_2, window_bounds = array<i64: 1, 128>}, {transform_indices = @transform_3, window_bounds = array<i64: 8, 64>}, {transform_indices = @transform_4, window_bounds = array<i64: 8, 64>}, {transform_indices = @transform_5, window_bounds = array<i64: 8, 64>}, {transform_indices = @transform_6, window_bounds = array<i64: 8, 64>}]} {
    %c0 = arith.constant 0 : index
    %c0_0 = arith.constant 0 : index
    %0 = vector.load %arg1[%c0, %c0_0] : memref<8x2304xf32, #tpu.memory_space<vmem>>, vector<8x2304xf32>
    %c0_1 = arith.constant 0 : index
    %c0_2 = arith.constant 0 : index
    %1 = vector.load %arg2[%c0_1, %c0_2] : memref<2304x128xf32, #tpu.memory_space<vmem>>, vector<2304x128xf32>
    %cst = arith.constant dense<0.000000e+00> : vector<8x128xf32>
    %2 = tpu.matmul %0, %1, %cst {dimension_numbers = #tpu.dot_dimension_numbers<[1], [0], [0], [1], [0, 0, 1, 1], [], []>} : vector<8x2304xf32>, vector<2304x128xf32>, vector<8x128xf32> -> vector<8x128xf32>
    %c0_3 = arith.constant 0 : index
    %c0_4 = arith.constant 0 : index
    %3 = vector.load %arg3[%c0_3, %c0_4] : memref<1x128xf32, #tpu.memory_space<vmem>>, vector<1x128xf32>
    %4 = vector.broadcast %3 : vector<1x128xf32> to vector<8x128xf32>
    %5 = arith.addf %2, %4 : vector<8x128xf32>
    %6 = vector.extract_strided_slice %5 {offsets = [0, 0], sizes = [8, 64], strides = [1, 1]} : vector<8x128xf32> to vector<8x64xf32>
    %7 = vector.extract_strided_slice %5 {offsets = [0, 64], sizes = [8, 64], strides = [1, 1]} : vector<8x128xf32> to vector<8x64xf32>
    %c0_5 = arith.constant 0 : index
    %c0_6 = arith.constant 0 : index
    %8 = vector.load %arg6[%c0_5, %c0_6] : memref<8x64xf32, #tpu.memory_space<vmem>>, vector<8x64xf32>
    tpu.vector_store %arg6[%c0_5, %c0_6], %6 {strides = array<i32>} : memref<8x64xf32, #tpu.memory_space<vmem>>, vector<8x64xf32>,
    %c0_7 = arith.constant 0 : index
    %c0_8 = arith.constant 0 : index
    %9 = vector.load %arg7[%c0_7, %c0_8] : memref<8x64xf32, #tpu.memory_space<vmem>>, vector<8x64xf32>
    tpu.vector_store %arg7[%c0_7, %c0_8], %7 {strides = array<i32>} : memref<8x64xf32, #tpu.memory_space<vmem>>, vector<8x64xf32>,
    %c0_9 = arith.constant 0 : index
    %c0_10 = arith.constant 0 : index
    %10 = vector.load %arg4[%c0_9, %c0_10] : memref<8x64xf32, #tpu.memory_space<vmem>>, vector<8x64xf32>
    %cst_11 = arith.constant 5.000000e-01 : f32
    %11 = vector.broadcast %cst_11 : f32 to vector<8x64xf32>
    %12 = arith.mulf %11, %7 : vector<8x64xf32>
    %13 = math.exp %12 : vector<8x64xf32>
    %14 = arith.mulf %10, %13 : vector<8x64xf32>
    %15 = arith.addf %6, %14 : vector<8x64xf32>
    %c0_12 = arith.constant 0 : index
    %c0_13 = arith.constant 0 : index
    %16 = vector.load %arg5[%c0_12, %c0_13] : memref<8x64xf32, #tpu.memory_space<vmem>>, vector<8x64xf32>
    tpu.vector_store %arg5[%c0_12, %c0_13], %15 {strides = array<i32>} : memref<8x64xf32, #tpu.memory_space<vmem>>, vector<8x64xf32>,
    return
  }
  func.func @transform_0(%arg0: i32) -> (i32, i32) {
    %c0_i32 = arith.constant 0 : i32
    %c0_i32_0 = arith.constant 0 : i32
    return %arg0, %c0_i32 : i32, i32
  }
  func.func @transform_1(%arg0: i32) -> (i32, i32) {
    %c0_i32 = arith.constant 0 : i32
    %c0_i32_0 = arith.constant 0 : i32
    %c0_i32_1 = arith.constant 0 : i32
    return %c0_i32, %c0_i32_0 : i32, i32
  }
  func.func @transform_2(%arg0: i32) -> (i32, i32) {
    %c0_i32 = arith.constant 0 : i32
    %c0_i32_0 = arith.constant 0 : i32
    %c0_i32_1 = arith.constant 0 : i32
    return %c0_i32, %c0_i32_0 : i32, i32
  }
  func.func @transform_3(%arg0: i32) -> (i32, i32) {
    %c0_i32 = arith.constant 0 : i32
    %c0_i32_0 = arith.constant 0 : i32
    return %arg0, %c0_i32 : i32, i32
  }
  func.func @transform_4(%arg0: i32) -> (i32, i32) {
    %c0_i32 = arith.constant 0 : i32
    %c0_i32_0 = arith.constant 0 : i32
    return %arg0, %c0_i32 : i32, i32
  }
  func.func @transform_5(%arg0: i32) -> (i32, i32) {
    %c0_i32 = arith.constant 0 : i32
    %c0_i32_0 = arith.constant 0 : i32
    return %arg0, %c0_i32 : i32, i32
  }
  func.func @transform_6(%arg0: i32) -> (i32, i32) {
    %c0_i32 = arith.constant 0 : i32
    %c0_i32_0 = arith.constant 0 : i32
    return %arg0, %c0_i32 : i32, i32
  }
}

module attributes {stable_mosaic.version = 11 : i64} {
  func.func @_mm_kernel(%arg0: i32, %arg1: memref<8x64xf32, #tpu.memory_space<vmem>>, %arg2: memref<64x1568xf32, #tpu.memory_space<vmem>>, %arg3: memref<1x1568xf32, #tpu.memory_space<vmem>>, %arg4: memref<8x1568xf32, #tpu.memory_space<vmem>>) attributes {dimension_semantics = [#tpu.dimension_semantics<parallel>], iteration_bounds = array<i64: 1>, scalar_prefetch = 0 : i64, scratch_operands = 0 : i64, tpu.core_type = #tpu.core_type<tc>, window_params = [{transform_indices = @transform_0, window_bounds = array<i64: 8, 64>}, {pipeline_mode = #tpu.pipeline_mode<synchronous>, transform_indices = @transform_1, window_bounds = array<i64: 64, 1568>}, {pipeline_mode = #tpu.pipeline_mode<synchronous>, transform_indices = @transform_2, window_bounds = array<i64: 1, 1568>}, {transform_indices = @transform_3, window_bounds = array<i64: 8, 1568>}]} {
    %c0 = arith.constant 0 : index
    %c0_0 = arith.constant 0 : index
    %0 = vector.load %arg1[%c0, %c0_0] : memref<8x64xf32, #tpu.memory_space<vmem>>, vector<8x64xf32>
    %c0_1 = arith.constant 0 : index
    %c0_2 = arith.constant 0 : index
    %1 = vector.load %arg2[%c0_1, %c0_2] : memref<64x1568xf32, #tpu.memory_space<vmem>>, vector<64x1568xf32>
    %cst = arith.constant dense<0.000000e+00> : vector<8x1568xf32>
    %2 = tpu.matmul %0, %1, %cst {dimension_numbers = #tpu.dot_dimension_numbers<[1], [0], [0], [1], [0, 0, 1, 1], [], []>} : vector<8x64xf32>, vector<64x1568xf32>, vector<8x1568xf32> -> vector<8x1568xf32>
    %c0_3 = arith.constant 0 : index
    %c0_4 = arith.constant 0 : index
    %3 = vector.load %arg3[%c0_3, %c0_4] : memref<1x1568xf32, #tpu.memory_space<vmem>>, vector<1x1568xf32>
    %4 = vector.broadcast %3 : vector<1x1568xf32> to vector<8x1568xf32>
    %5 = arith.addf %2, %4 : vector<8x1568xf32>
    %cst_5 = arith.constant 0.000000e+00 : f32
    %6 = vector.broadcast %cst_5 : f32 to vector<8x1568xf32>
    %7 = arith.maximumf %5, %6 : vector<8x1568xf32>
    %c0_6 = arith.constant 0 : index
    %c0_7 = arith.constant 0 : index
    %8 = vector.load %arg4[%c0_6, %c0_7] : memref<8x1568xf32, #tpu.memory_space<vmem>>, vector<8x1568xf32>
    tpu.vector_store %arg4[%c0_6, %c0_7], %7 {strides = array<i32>} : memref<8x1568xf32, #tpu.memory_space<vmem>>, vector<8x1568xf32>,
    return
  }
  func.func @transform_0(%arg0: i32) -> (i32, i32) {
    %c0_i32 = arith.constant 0 : i32
    %c0_i32_0 = arith.constant 0 : i32
    return %arg0, %c0_i32 : i32, i32
  }
  func.func @transform_1(%arg0: i32) -> (i32, i32) {
    %c0_i32 = arith.constant 0 : i32
    %c0_i32_0 = arith.constant 0 : i32
    %c0_i32_1 = arith.constant 0 : i32
    return %c0_i32, %c0_i32_0 : i32, i32
  }
  func.func @transform_2(%arg0: i32) -> (i32, i32) {
    %c0_i32 = arith.constant 0 : i32
    %c0_i32_0 = arith.constant 0 : i32
    %c0_i32_1 = arith.constant 0 : i32
    return %c0_i32, %c0_i32_0 : i32, i32
  }
  func.func @transform_3(%arg0: i32) -> (i32, i32) {
    %c0_i32 = arith.constant 0 : i32
    %c0_i32_0 = arith.constant 0 : i32
    return %arg0, %c0_i32 : i32, i32
  }
}

module attributes {stable_mosaic.version = 11 : i64} {
  func.func @_mm_kernel(%arg0: i32, %arg1: memref<104x32xf32, #tpu.memory_space<vmem>>, %arg2: memref<32x256xf32, #tpu.memory_space<vmem>>, %arg3: memref<1x256xf32, #tpu.memory_space<vmem>>, %arg4: memref<104x256xf32, #tpu.memory_space<vmem>>) attributes {dimension_semantics = [#tpu.dimension_semantics<parallel>], iteration_bounds = array<i64: 1>, scalar_prefetch = 0 : i64, scratch_operands = 0 : i64, tpu.core_type = #tpu.core_type<tc>, window_params = [{transform_indices = @transform_0, window_bounds = array<i64: 104, 32>}, {pipeline_mode = #tpu.pipeline_mode<synchronous>, transform_indices = @transform_1, window_bounds = array<i64: 32, 256>}, {pipeline_mode = #tpu.pipeline_mode<synchronous>, transform_indices = @transform_2, window_bounds = array<i64: 1, 256>}, {transform_indices = @transform_3, window_bounds = array<i64: 104, 256>}]} {
    %c0 = arith.constant 0 : index
    %c0_0 = arith.constant 0 : index
    %0 = vector.load %arg1[%c0, %c0_0] : memref<104x32xf32, #tpu.memory_space<vmem>>, vector<104x32xf32>
    %c0_1 = arith.constant 0 : index
    %c0_2 = arith.constant 0 : index
    %1 = vector.load %arg2[%c0_1, %c0_2] : memref<32x256xf32, #tpu.memory_space<vmem>>, vector<32x256xf32>
    %cst = arith.constant dense<0.000000e+00> : vector<104x256xf32>
    %2 = tpu.matmul %0, %1, %cst {dimension_numbers = #tpu.dot_dimension_numbers<[1], [0], [0], [1], [0, 0, 1, 1], [], []>} : vector<104x32xf32>, vector<32x256xf32>, vector<104x256xf32> -> vector<104x256xf32>
    %c0_3 = arith.constant 0 : index
    %c0_4 = arith.constant 0 : index
    %3 = vector.load %arg3[%c0_3, %c0_4] : memref<1x256xf32, #tpu.memory_space<vmem>>, vector<1x256xf32>
    %4 = vector.broadcast %3 : vector<1x256xf32> to vector<104x256xf32>
    %5 = arith.addf %2, %4 : vector<104x256xf32>
    %cst_5 = arith.constant 0.000000e+00 : f32
    %6 = vector.broadcast %cst_5 : f32 to vector<104x256xf32>
    %7 = arith.maximumf %5, %6 : vector<104x256xf32>
    %c0_6 = arith.constant 0 : index
    %c0_7 = arith.constant 0 : index
    %8 = vector.load %arg4[%c0_6, %c0_7] : memref<104x256xf32, #tpu.memory_space<vmem>>, vector<104x256xf32>
    tpu.vector_store %arg4[%c0_6, %c0_7], %7 {strides = array<i32>} : memref<104x256xf32, #tpu.memory_space<vmem>>, vector<104x256xf32>,
    return
  }
  func.func @transform_0(%arg0: i32) -> (i32, i32) {
    %c0_i32 = arith.constant 0 : i32
    %c0_i32_0 = arith.constant 0 : i32
    return %arg0, %c0_i32 : i32, i32
  }
  func.func @transform_1(%arg0: i32) -> (i32, i32) {
    %c0_i32 = arith.constant 0 : i32
    %c0_i32_0 = arith.constant 0 : i32
    %c0_i32_1 = arith.constant 0 : i32
    return %c0_i32, %c0_i32_0 : i32, i32
  }
  func.func @transform_2(%arg0: i32) -> (i32, i32) {
    %c0_i32 = arith.constant 0 : i32
    %c0_i32_0 = arith.constant 0 : i32
    %c0_i32_1 = arith.constant 0 : i32
    return %c0_i32, %c0_i32_0 : i32, i32
  }
  func.func @transform_3(%arg0: i32) -> (i32, i32) {
    %c0_i32 = arith.constant 0 : i32
    %c0_i32_0 = arith.constant 0 : i32
    return %arg0, %c0_i32 : i32, i32
  }
}

module attributes {stable_mosaic.version = 11 : i64} {
  func.func @_dec_tail_kernel(%arg0: i32, %arg1: memref<392x64xf32, #tpu.memory_space<vmem>>, %arg2: memref<64x128xf32, #tpu.memory_space<vmem>>, %arg3: memref<1x128xf32, #tpu.memory_space<vmem>>, %arg4: memref<128x4xf32, #tpu.memory_space<vmem>>, %arg5: memref<1x4xf32, #tpu.memory_space<vmem>>, %arg6: memref<392x4xf32, #tpu.memory_space<vmem>>) attributes {dimension_semantics = [#tpu.dimension_semantics<parallel>], iteration_bounds = array<i64: 1>, scalar_prefetch = 0 : i64, scratch_operands = 0 : i64, tpu.core_type = #tpu.core_type<tc>, window_params = [{transform_indices = @transform_0, window_bounds = array<i64: 392, 64>}, {pipeline_mode = #tpu.pipeline_mode<synchronous>, transform_indices = @transform_1, window_bounds = array<i64: 64, 128>}, {pipeline_mode = #tpu.pipeline_mode<synchronous>, transform_indices = @transform_2, window_bounds = array<i64: 1, 128>}, {pipeline_mode = #tpu.pipeline_mode<synchronous>, transform_indices = @transform_3, window_bounds = array<i64: 128, 4>}, {pipeline_mode = #tpu.pipeline_mode<synchronous>, transform_indices = @transform_4, window_bounds = array<i64: 1, 4>}, {transform_indices = @transform_5, window_bounds = array<i64: 392, 4>}]} {
    %c0 = arith.constant 0 : index
    %c0_0 = arith.constant 0 : index
    %0 = vector.load %arg1[%c0, %c0_0] : memref<392x64xf32, #tpu.memory_space<vmem>>, vector<392x64xf32>
    %c0_1 = arith.constant 0 : index
    %c0_2 = arith.constant 0 : index
    %1 = vector.load %arg2[%c0_1, %c0_2] : memref<64x128xf32, #tpu.memory_space<vmem>>, vector<64x128xf32>
    %cst = arith.constant dense<0.000000e+00> : vector<392x128xf32>
    %2 = tpu.matmul %0, %1, %cst {dimension_numbers = #tpu.dot_dimension_numbers<[1], [0], [0], [1], [0, 0, 1, 1], [], []>} : vector<392x64xf32>, vector<64x128xf32>, vector<392x128xf32> -> vector<392x128xf32>
    %c0_3 = arith.constant 0 : index
    %c0_4 = arith.constant 0 : index
    %3 = vector.load %arg3[%c0_3, %c0_4] : memref<1x128xf32, #tpu.memory_space<vmem>>, vector<1x128xf32>
    %4 = vector.broadcast %3 : vector<1x128xf32> to vector<392x128xf32>
    %5 = arith.addf %2, %4 : vector<392x128xf32>
    %cst_5 = arith.constant 0.000000e+00 : f32
    %6 = vector.broadcast %cst_5 : f32 to vector<392x128xf32>
    %7 = arith.maximumf %5, %6 : vector<392x128xf32>
    %c0_6 = arith.constant 0 : index
    %c0_7 = arith.constant 0 : index
    %8 = vector.load %arg4[%c0_6, %c0_7] : memref<128x4xf32, #tpu.memory_space<vmem>>, vector<128x4xf32>
    %cst_8 = arith.constant dense<0.000000e+00> : vector<392x4xf32>
    %9 = tpu.matmul %7, %8, %cst_8 {dimension_numbers = #tpu.dot_dimension_numbers<[1], [0], [0], [1], [0, 0, 1, 1], [], []>} : vector<392x128xf32>, vector<128x4xf32>, vector<392x4xf32> -> vector<392x4xf32>
    %c0_9 = arith.constant 0 : index
    %c0_10 = arith.constant 0 : index
    %10 = vector.load %arg5[%c0_9, %c0_10] : memref<1x4xf32, #tpu.memory_space<vmem>>, vector<1x4xf32>
    %11 = vector.broadcast %10 : vector<1x4xf32> to vector<392x4xf32>
    %12 = arith.addf %9, %11 : vector<392x4xf32>
    %13 = arith.negf %12 : vector<392x4xf32>
    %14 = math.exp %13 : vector<392x4xf32>
    %cst_11 = arith.constant 1.000000e+00 : f32
    %15 = vector.broadcast %cst_11 : f32 to vector<392x4xf32>
    %16 = arith.addf %15, %14 : vector<392x4xf32>
    %17 = arith.divf %15, %16 : vector<392x4xf32>
    %c0_12 = arith.constant 0 : index
    %c0_13 = arith.constant 0 : index
    %18 = vector.load %arg6[%c0_12, %c0_13] : memref<392x4xf32, #tpu.memory_space<vmem>>, vector<392x4xf32>
    tpu.vector_store %arg6[%c0_12, %c0_13], %17 {strides = array<i32>} : memref<392x4xf32, #tpu.memory_space<vmem>>, vector<392x4xf32>,
    return
  }
  func.func @transform_0(%arg0: i32) -> (i32, i32) {
    %c0_i32 = arith.constant 0 : i32
    %c0_i32_0 = arith.constant 0 : i32
    return %arg0, %c0_i32 : i32, i32
  }
  func.func @transform_1(%arg0: i32) -> (i32, i32) {
    %c0_i32 = arith.constant 0 : i32
    %c0_i32_0 = arith.constant 0 : i32
    %c0_i32_1 = arith.constant 0 : i32
    return %c0_i32, %c0_i32_0 : i32, i32
  }
  func.func @transform_2(%arg0: i32) -> (i32, i32) {
    %c0_i32 = arith.constant 0 : i32
    %c0_i32_0 = arith.constant 0 : i32
    %c0_i32_1 = arith.constant 0 : i32
    return %c0_i32, %c0_i32_0 : i32, i32
  }
  func.func @transform_3(%arg0: i32) -> (i32, i32) {
    %c0_i32 = arith.constant 0 : i32
    %c0_i32_0 = arith.constant 0 : i32
    %c0_i32_1 = arith.constant 0 : i32
    return %c0_i32, %c0_i32_0 : i32, i32
  }
  func.func @transform_4(%arg0: i32) -> (i32, i32) {
    %c0_i32 = arith.constant 0 : i32
    %c0_i32_0 = arith.constant 0 : i32
    %c0_i32_1 = arith.constant 0 : i32
    return %c0_i32, %c0_i32_0 : i32, i32
  }
  func.func @transform_5(%arg0: i32) -> (i32, i32) {
    %c0_i32 = arith.constant 0 : i32
    %c0_i32_0 = arith.constant 0 : i32
    return %arg0, %c0_i32 : i32, i32
  }
}

</mosaic_0001>

<bundles_post_ra>
// kernel: vae_conv_forward.6
= control target key start
LH: loop header
LB: loop body
LE: loop exit
PB: predicated region body
PF: predicated region fallthrough
CT: control target
= control target key end

     0   :  { %vm193_vm0 = vcmask 1040384   ;;  %vm63_vm1 = vcmask 72704   ;;  %vm386_vm2 = vcmask 261120   ;;  %s903_s1 = inlined_call_operand.vmem [shape: f32[9,32], index: 1, kind: input, shape index: {}]   ;;  %s904_s0 = inlined_call_operand.vmem [shape: f32[344,9], index: 0, kind: input, shape index: {}]   ;;  %s905_s2 = inlined_call_operand.vmem [shape: f32[1,32], index: 2, kind: input, shape index: {}]   ;;  %s906_s3 = inlined_call_operand.vmem [shape: f32[344,32], index: 3, kind: output, shape index: {}]  }
   0x1   :  { %v58_v0 = vld [vmem:[%s903_s1 + $0x8] sm:$0x1]  ;;  %v57_v1 = vld [vmem:[%s903_s1] sm:$0xff]  ;;  %v36_v2 = vld [vmem:[%s904_s0 + $0xb0] sm:$0xff] }
   0x2   :  { %479 = vmatpush.msk.msra.mxu2 %vm193_vm0, %v58_v0  ;;  %434 = vmatpush.msk.msra.mxu0 %vm193_vm0, %v58_v0  ;;  %v14_v3 = vld [vmem:[%s904_s0] sm:$0xff]  ;;  %v25_v4 = vld [vmem:[%s904_s0 + $0x58] sm:$0xff]  ;;  %v47_v5 = vld [vmem:[%s904_s0 + $0x108] sm:$0xff] }
   0x3   :  { %478 = vmatpush.msk.msra.mxu1 %vm193_vm0, %v58_v0  ;;  %480 = vmatpush.msk.msra.mxu3 %vm193_vm0, %v58_v0  ;;  %v37_v6 = vld [vmem:[%s904_s0 + $0xb8] sm:$0xff]  ;;  %v15_v7 = vld [vmem:[%s904_s0 + $0x8] sm:$0xff]  ;;  %v26_v8 = vld [vmem:[%s904_s0 + $0x60] sm:$0xff] }
   0x4   :  { %482 = vmatpush.msra.mxu2 %v57_v1  ;;  %212 = vmatpush.msra.mxu0 %v57_v1  ;;  %v48_v9 = vld [vmem:[%s904_s0 + $0x110] sm:$0xff]  ;;  %v38_v10 = vld [vmem:[%s904_s0 + $0xc0] sm:$0xff]  ;;  %v27_v12 = vld [vmem:[%s904_s0 + $0x68] sm:$0xff] }
   0x5   :  { %457 = vmatmul.msk.f32.vlgmr.msra.gmra.mxu2 %vm63_vm1, %v36_v2  ;;  %481 = vmatpush.msra.mxu1 %v57_v1  ;;  %v16_v11 = vld [vmem:[%s904_s0 + $0x10] sm:$0xff]  ;;  %v49_v13 = vld [vmem:[%s904_s0 + $0x118] sm:$0xff]  ;;  %v39_v14 = vld [vmem:[%s904_s0 + $0xc8] sm:$0xff] }
   0x6   :  { %435 = vmatmul.msk.f32.vlgmr.msra.gmra.mxu0 %vm63_vm1, %v14_v3  ;;  %446 = vmatmul.msk.f32.vlgmr.msra.gmra.mxu1 %vm63_vm1, %v25_v4  ;;  %v17_v15 = vld [vmem:[%s904_s0 + $0x18] sm:$0xff]  ;;  %v28_v16 = vld [vmem:[%s904_s0 + $0x70] sm:$0xff]  ;;  %v50_v17 = vld [vmem:[%s904_s0 + $0x120] sm:$0xff] }
   0x7   :  { %483 = vmatpush.msra.mxu3 %v57_v1  ;;  %v40_v18 = vld [vmem:[%s904_s0 + $0xd0] sm:$0xff]  ;;  %v18_v19 = vld [vmem:[%s904_s0 + $0x20] sm:$0xff]  ;;  %v29_v20 = vld [vmem:[%s904_s0 + $0x78] sm:$0xff] }
   0x8   :  { %468 = vmatmul.msk.f32.vlgmr.msra.gmra.mxu3 %vm63_vm1, %v47_v5  ;;  %v51_v21 = vld [vmem:[%s904_s0 + $0x128] sm:$0xff]  ;;  %v41_v22 = vld [vmem:[%s904_s0 + $0xd8] sm:$0xff]  ;;  %v30_v24 = vld [vmem:[%s904_s0 + $0x80] sm:$0xff] }
   0x9   :  { %v19_v23 = vld [vmem:[%s904_s0 + $0x28] sm:$0xff]  ;;  %v52_v25 = vld [vmem:[%s904_s0 + $0x130] sm:$0xff]  ;;  %v42_v26 = vld [vmem:[%s904_s0 + $0xe0] sm:$0xff] }
   0xa   :  { %v20_v27 = vld [vmem:[%s904_s0 + $0x30] sm:$0xff]  ;;  %v31_v28 = vld [vmem:[%s904_s0 + $0x88] sm:$0xff]  ;;  %v53_v29 = vld [vmem:[%s904_s0 + $0x138] sm:$0xff] }
   0xb   :  { %v43_v30 = vld [vmem:[%s904_s0 + $0xe8] sm:$0xff]  ;;  %v21_v31 = vld [vmem:[%s904_s0 + $0x38] sm:$0xff]  ;;  %v32_v32 = vld [vmem:[%s904_s0 + $0x90] sm:$0xff] }
   0xc   :  { %v54_v33 = vld [vmem:[%s904_s0 + $0x140] sm:$0xff]  ;;  %v44_v34 = vld [vmem:[%s904_s0 + $0xf0] sm:$0xff]  ;;  %v33_v36 = vld [vmem:[%s904_s0 + $0x98] sm:$0xff] }
   0xd   :  { %458 = vmatmul.msk.f32.gmra.mxu2 %vm63_vm1, %v37_v6  ;;  %v22_v35 = vld [vmem:[%s904_s0 + $0x40] sm:$0xff]  ;;  %v55_v37 = vld [vmem:[%s904_s0 + $0x148] sm:$0xff]  ;;  %v45_v38 = vld [vmem:[%s904_s0 + $0xf8] sm:$0xff] }
   0xe   :  { %436 = vmatmul.msk.f32.gmra.mxu0 %vm63_vm1, %v15_v7  ;;  %447 = vmatmul.msk.f32.gmra.mxu1 %vm63_vm1, %v26_v8  ;;  %v23_v39 = vld [vmem:[%s904_s0 + $0x48] sm:$0xff]  ;;  %v34_v40 = vld [vmem:[%s904_s0 + $0xa0] sm:$0xff]  ;;  %v56_v41 = vld [vmem:[%s904_s0 + $0x150] sm:$0xff] }
   0xf   :  { %v46_v42 = vld [vmem:[%s904_s0 + $0x100] sm:$0xff]  ;;  %v24_v43 = vld [vmem:[%s904_s0 + $0x50] sm:$0xff]  ;;  %v35_v44 = vld [vmem:[%s904_s0 + $0xa8] sm:$0xff] }
  0x10   :  { %469 = vmatmul.msk.f32.gmra.mxu3 %vm63_vm1, %v48_v9  ;;  %v686_v45 = vld [vmem:[%s905_s2] ss:$0 sm:$0xff] }
  0x15   :  { %459 = vmatmul.msk.f32.gmra.mxu2 %vm63_vm1, %v38_v10 }
  0x16   :  { %437 = vmatmul.msk.f32.gmra.mxu0 %vm63_vm1, %v16_v11  ;;  %448 = vmatmul.msk.f32.gmra.mxu1 %vm63_vm1, %v27_v12 }
  0x18   :  { %470 = vmatmul.msk.f32.gmra.mxu3 %vm63_vm1, %v49_v13 }
  0x1d   :  { %460 = vmatmul.msk.f32.gmra.mxu2 %vm63_vm1, %v39_v14 }
  0x1e   :  { %438 = vmatmul.msk.f32.gmra.mxu0 %vm63_vm1, %v17_v15  ;;  %449 = vmatmul.msk.f32.gmra.mxu1 %vm63_vm1, %v28_v16 }
  0x20   :  { %471 = vmatmul.msk.f32.gmra.mxu3 %vm63_vm1, %v50_v17 }
  0x25   :  { %461 = vmatmul.msk.f32.gmra.mxu2 %vm63_vm1, %v40_v18 }
  0x26   :  { %439 = vmatmul.msk.f32.gmra.mxu0 %vm63_vm1, %v18_v19  ;;  %450 = vmatmul.msk.f32.gmra.mxu1 %vm63_vm1, %v29_v20 }
  0x28   :  { %472 = vmatmul.msk.f32.gmra.mxu3 %vm63_vm1, %v51_v21 }
  0x2d   :  { %462 = vmatmul.msk.f32.gmra.mxu2 %vm63_vm1, %v41_v22 }
  0x2e   :  { %440 = vmatmul.msk.f32.gmra.mxu0 %vm63_vm1, %v19_v23  ;;  %451 = vmatmul.msk.f32.gmra.mxu1 %vm63_vm1, %v30_v24 }
  0x30   :  { %473 = vmatmul.msk.f32.gmra.mxu3 %vm63_vm1, %v52_v25 }
  0x35   :  { %463 = vmatmul.msk.f32.gmra.mxu2 %vm63_vm1, %v42_v26 }
  0x36   :  { %441 = vmatmul.msk.f32.gmra.mxu0 %vm63_vm1, %v20_v27  ;;  %452 = vmatmul.msk.f32.gmra.mxu1 %vm63_vm1, %v31_v28 }
  0x38   :  { %474 = vmatmul.msk.f32.gmra.mxu3 %vm63_vm1, %v53_v29 }
  0x3d   :  { %464 = vmatmul.msk.f32.gmra.mxu2 %vm63_vm1, %v43_v30 }
  0x3e   :  { %442 = vmatmul.msk.f32.gmra.mxu0 %vm63_vm1, %v21_v31  ;;  %453 = vmatmul.msk.f32.gmra.mxu1 %vm63_vm1, %v32_v32 }
  0x40   :  { %475 = vmatmul.msk.f32.gmra.mxu3 %vm63_vm1, %v54_v33 }
  0x45   :  { %465 = vmatmul.msk.f32.gmra.mxu2 %vm63_vm1, %v44_v34 }
  0x46   :  { %443 = vmatmul.msk.f32.gmra.mxu0 %vm63_vm1, %v22_v35  ;;  %454 = vmatmul.msk.f32.gmra.mxu1 %vm63_vm1, %v33_v36 }
  0x48   :  { %476 = vmatmul.msk.f32.gmra.mxu3 %vm63_vm1, %v55_v37 }
  0x4d   :  { %466 = vmatmul.msk.f32.gmra.mxu2 %vm63_vm1, %v45_v38 }
  0x4e   :  { %444 = vmatmul.msk.f32.gmra.mxu0 %vm63_vm1, %v23_v39  ;;  %455 = vmatmul.msk.f32.gmra.mxu1 %vm63_vm1, %v34_v40 }
  0x50   :  { %477 = vmatmul.msk.f32.gmra.mxu3 %vm63_vm1, %v56_v41 }
  0x55   :  { %467 = vmatmul.msk.f32.gmra.mxu2 %vm63_vm1, %v46_v42 }
  0x56   :  { %445 = vmatmul.msk.f32.gmra.mxu0 %vm63_vm1, %v24_v43  ;;  %456 = vmatmul.msk.f32.gmra.mxu1 %vm63_vm1, %v35_v44 }
  0x83   :  { %v214_v46 = vpop.f32.mrf.mxu0  ;;  %v247_v47 = vpop.f32.mrf.mxu1 }
  0x84   :  { %v215_v48 = vadd.f32 %v686_v45, %v214_v46  ;;  %v248_v49 = vadd.f32 %v686_v45, %v247_v47 }
  0x86   :  { %v343_v50 = vmax.f32 %v215_v48, 0.0  ;;  %v354_v51 = vmax.f32 %v248_v49, 0.0 }
  0x88   :  { %387 = vst.msk [vmem:[%s906_s3] sm:$0xff] %vm386_vm2, %v343_v50  ;;  %v280_v52 = vpop.f32.mrf.mxu2 }
  0x89   :  { %398 = vst.msk [vmem:[%s906_s3 + $0x58] sm:$0xff] %vm386_vm2, %v354_v51  ;;  %v281_v53 = vadd.f32 %v686_v45, %v280_v52 }
  0x8b   :  { %v365_v54 = vmax.f32 %v281_v53, 0.0  ;;  %v217_v55 = vpop.f32.mrf.mxu0  ;;  %v250_v56 = vpop.f32.mrf.mxu1 }
  0x8c   :  { %v218_v57 = vadd.f32 %v686_v45, %v217_v55  ;;  %v251_v58 = vadd.f32 %v686_v45, %v250_v56  ;;  %v313_v59 = vpop.f32.mrf.mxu3 }
  0x8d   :  { %409 = vst.msk [vmem:[%s906_s3 + $0xb0] sm:$0xff] %vm386_vm2, %v365_v54  ;;  %v314_v60 = vadd.f32 %v686_v45, %v313_v59 }
  0x8e   :  { %v344_v61 = vmax.f32 %v218_v57, 0.0  ;;  %v355_v62 = vmax.f32 %v251_v58, 0.0 }
  0x8f   :  { %v376_v63 = vmax.f32 %v314_v60, 0.0 }
  0x90   :  { %388 = vst.msk [vmem:[%s906_s3 + $0x8] sm:$0xff] %vm386_vm2, %v344_v61  ;;  %v283_v0 = vpop.f32.mrf.mxu2 }
  0x91   :  { %399 = vst.msk [vmem:[%s906_s3 + $0x60] sm:$0xff] %vm386_vm2, %v355_v62  ;;  %v284_v1 = vadd.f32 %v686_v45, %v283_v0 }
  0x92   :  { %420 = vst.msk [vmem:[%s906_s3 + $0x108] sm:$0xff] %vm386_vm2, %v376_v63 }
  0x93   :  { %v366_v2 = vmax.f32 %v284_v1, 0.0  ;;  %v220_v3 = vpop.f32.mrf.mxu0  ;;  %v253_v4 = vpop.f32.mrf.mxu1 }
  0x94   :  { %v221_v5 = vadd.f32 %v686_v45, %v220_v3  ;;  %v254_v6 = vadd.f32 %v686_v45, %v253_v4  ;;  %v316_v7 = vpop.f32.mrf.mxu3 }
  0x95   :  { %410 = vst.msk [vmem:[%s906_s3 + $0xb8] sm:$0xff] %vm386_vm2, %v366_v2  ;;  %v317_v8 = vadd.f32 %v686_v45, %v316_v7 }
  0x96   :  { %v345_v9 = vmax.f32 %v221_v5, 0.0  ;;  %v356_v10 = vmax.f32 %v254_v6, 0.0 }
  0x97   :  { %v377_v11 = vmax.f32 %v317_v8, 0.0 }
  0x98   :  { %389 = vst.msk [vmem:[%s906_s3 + $0x10] sm:$0xff] %vm386_vm2, %v345_v9  ;;  %v286_v12 = vpop.f32.mrf.mxu2 }
  0x99   :  { %400 = vst.msk [vmem:[%s906_s3 + $0x68] sm:$0xff] %vm386_vm2, %v356_v10  ;;  %v287_v13 = vadd.f32 %v686_v45, %v286_v12 }
  0x9a   :  { %421 = vst.msk [vmem:[%s906_s3 + $0x110] sm:$0xff] %vm386_vm2, %v377_v11 }
  0x9b   :  { %v367_v14 = vmax.f32 %v287_v13, 0.0  ;;  %v223_v15 = vpop.f32.mrf.mxu0  ;;  %v256_v16 = vpop.f32.mrf.mxu1 }
  0x9c   :  { %v224_v17 = vadd.f32 %v686_v45, %v223_v15  ;;  %v257_v18 = vadd.f32 %v686_v45, %v256_v16  ;;  %v319_v19 = vpop.f32.mrf.mxu3 }
  0x9d   :  { %411 = vst.msk [vmem:[%s906_s3 + $0xc0] sm:$0xff] %vm386_vm2, %v367_v14  ;;  %v320_v20 = vadd.f32 %v686_v45, %v319_v19 }
  0x9e   :  { %v346_v21 = vmax.f32 %v224_v17, 0.0  ;;  %v357_v22 = vmax.f32 %v257_v18, 0.0 }
  0x9f   :  { %v378_v23 = vmax.f32 %v320_v20, 0.0 }
  0xa0   :  { %390 = vst.msk [vmem:[%s906_s3 + $0x18] sm:$0xff] %vm386_vm2, %v346_v21  ;;  %v289_v24 = vpop.f32.mrf.mxu2 }
  0xa1   :  { %401 = vst.msk [vmem:[%s906_s3 + $0x70] sm:$0xff] %vm386_vm2, %v357_v22  ;;  %v290_v25 = vadd.f32 %v686_v45, %v289_v24 }
  0xa2   :  { %422 = vst.msk [vmem:[%s906_s3 + $0x118] sm:$0xff] %vm386_vm2, %v378_v23 }
  0xa3   :  { %v368_v26 = vmax.f32 %v290_v25, 0.0  ;;  %v226_v27 = vpop.f32.mrf.mxu0  ;;  %v259_v28 = vpop.f32.mrf.mxu1 }
  0xa4   :  { %v227_v29 = vadd.f32 %v686_v45, %v226_v27  ;;  %v260_v30 = vadd.f32 %v686_v45, %v259_v28  ;;  %v322_v31 = vpop.f32.mrf.mxu3 }
  0xa5   :  { %412 = vst.msk [vmem:[%s906_s3 + $0xc8] sm:$0xff] %vm386_vm2, %v368_v26  ;;  %v323_v32 = vadd.f32 %v686_v45, %v322_v31 }
  0xa6   :  { %v347_v33 = vmax.f32 %v227_v29, 0.0  ;;  %v358_v34 = vmax.f32 %v260_v30, 0.0 }
  0xa7   :  { %v379_v35 = vmax.f32 %v323_v32, 0.0 }
  0xa8   :  { %391 = vst.msk [vmem:[%s906_s3 + $0x20] sm:$0xff] %vm386_vm2, %v347_v33  ;;  %v292_v36 = vpop.f32.mrf.mxu2 }
  0xa9   :  { %402 = vst.msk [vmem:[%s906_s3 + $0x78] sm:$0xff] %vm386_vm2, %v358_v34  ;;  %v293_v37 = vadd.f32 %v686_v45, %v292_v36 }
  0xaa   :  { %423 = vst.msk [vmem:[%s906_s3 + $0x120] sm:$0xff] %vm386_vm2, %v379_v35 }
  0xab   :  { %v369_v38 = vmax.f32 %v293_v37, 0.0  ;;  %v229_v39 = vpop.f32.mrf.mxu0  ;;  %v262_v40 = vpop.f32.mrf.mxu1 }
  0xac   :  { %v230_v41 = vadd.f32 %v686_v45, %v229_v39  ;;  %v263_v42 = vadd.f32 %v686_v45, %v262_v40  ;;  %v325_v43 = vpop.f32.mrf.mxu3 }
  0xad   :  { %413 = vst.msk [vmem:[%s906_s3 + $0xd0] sm:$0xff] %vm386_vm2, %v369_v38  ;;  %v326_v44 = vadd.f32 %v686_v45, %v325_v43 }
  0xae   :  { %v348_v46 = vmax.f32 %v230_v41, 0.0  ;;  %v359_v47 = vmax.f32 %v263_v42, 0.0 }
  0xaf   :  { %v380_v48 = vmax.f32 %v326_v44, 0.0 }
  0xb0   :  { %392 = vst.msk [vmem:[%s906_s3 + $0x28] sm:$0xff] %vm386_vm2, %v348_v46  ;;  %v295_v49 = vpop.f32.mrf.mxu2 }
  0xb1   :  { %403 = vst.msk [vmem:[%s906_s3 + $0x80] sm:$0xff] %vm386_vm2, %v359_v47  ;;  %v296_v50 = vadd.f32 %v686_v45, %v295_v49 }
  0xb2   :  { %424 = vst.msk [vmem:[%s906_s3 + $0x128] sm:$0xff] %vm386_vm2, %v380_v48 }
  0xb3   :  { %v370_v51 = vmax.f32 %v296_v50, 0.0  ;;  %v232_v52 = vpop.f32.mrf.mxu0  ;;  %v265_v53 = vpop.f32.mrf.mxu1 }
  0xb4   :  { %v233_v54 = vadd.f32 %v686_v45, %v232_v52  ;;  %v266_v55 = vadd.f32 %v686_v45, %v265_v53  ;;  %v328_v56 = vpop.f32.mrf.mxu3 }
  0xb5   :  { %414 = vst.msk [vmem:[%s906_s3 + $0xd8] sm:$0xff] %vm386_vm2, %v370_v51  ;;  %v329_v57 = vadd.f32 %v686_v45, %v328_v56 }
  0xb6   :  { %v349_v58 = vmax.f32 %v233_v54, 0.0  ;;  %v360_v59 = vmax.f32 %v266_v55, 0.0 }
  0xb7   :  { %v381_v60 = vmax.f32 %v329_v57, 0.0 }
  0xb8   :  { %393 = vst.msk [vmem:[%s906_s3 + $0x30] sm:$0xff] %vm386_vm2, %v349_v58  ;;  %v298_v61 = vpop.f32.mrf.mxu2 }
  0xb9   :  { %404 = vst.msk [vmem:[%s906_s3 + $0x88] sm:$0xff] %vm386_vm2, %v360_v59  ;;  %v299_v62 = vadd.f32 %v686_v45, %v298_v61 }
  0xba   :  { %425 = vst.msk [vmem:[%s906_s3 + $0x130] sm:$0xff] %vm386_vm2, %v381_v60 }
  0xbb   :  { %v371_v63 = vmax.f32 %v299_v62, 0.0  ;;  %v235_v0 = vpop.f32.mrf.mxu0  ;;  %v268_v1 = vpop.f32.mrf.mxu1 }
  0xbc   :  { %v236_v2 = vadd.f32 %v686_v45, %v235_v0  ;;  %v269_v3 = vadd.f32 %v686_v45, %v268_v1  ;;  %v331_v4 = vpop.f32.mrf.mxu3 }
  0xbd   :  { %415 = vst.msk [vmem:[%s906_s3 + $0xe0] sm:$0xff] %vm386_vm2, %v371_v63  ;;  %v332_v5 = vadd.f32 %v686_v45, %v331_v4 }
  0xbe   :  { %v350_v6 = vmax.f32 %v236_v2, 0.0  ;;  %v361_v7 = vmax.f32 %v269_v3, 0.0 }
  0xbf   :  { %v382_v8 = vmax.f32 %v332_v5, 0.0 }
  0xc0   :  { %394 = vst.msk [vmem:[%s906_s3 + $0x38] sm:$0xff] %vm386_vm2, %v350_v6  ;;  %v301_v9 = vpop.f32.mrf.mxu2 }
  0xc1   :  { %405 = vst.msk [vmem:[%s906_s3 + $0x90] sm:$0xff] %vm386_vm2, %v361_v7  ;;  %v302_v10 = vadd.f32 %v686_v45, %v301_v9 }
  0xc2   :  { %426 = vst.msk [vmem:[%s906_s3 + $0x138] sm:$0xff] %vm386_vm2, %v382_v8 }
  0xc3   :  { %v372_v11 = vmax.f32 %v302_v10, 0.0  ;;  %v238_v12 = vpop.f32.mrf.mxu0  ;;  %v271_v13 = vpop.f32.mrf.mxu1 }
  0xc4   :  { %v239_v14 = vadd.f32 %v686_v45, %v238_v12  ;;  %v272_v15 = vadd.f32 %v686_v45, %v271_v13  ;;  %v334_v16 = vpop.f32.mrf.mxu3 }
  0xc5   :  { %416 = vst.msk [vmem:[%s906_s3 + $0xe8] sm:$0xff] %vm386_vm2, %v372_v11  ;;  %v335_v17 = vadd.f32 %v686_v45, %v334_v16 }
  0xc6   :  { %v351_v18 = vmax.f32 %v239_v14, 0.0  ;;  %v362_v19 = vmax.f32 %v272_v15, 0.0 }
  0xc7   :  { %v383_v20 = vmax.f32 %v335_v17, 0.0 }
  0xc8   :  { %395 = vst.msk [vmem:[%s906_s3 + $0x40] sm:$0xff] %vm386_vm2, %v351_v18  ;;  %v304_v21 = vpop.f32.mrf.mxu2 }
  0xc9   :  { %406 = vst.msk [vmem:[%s906_s3 + $0x98] sm:$0xff] %vm386_vm2, %v362_v19  ;;  %v305_v22 = vadd.f32 %v686_v45, %v304_v21 }
  0xca   :  { %427 = vst.msk [vmem:[%s906_s3 + $0x140] sm:$0xff] %vm386_vm2, %v383_v20 }
  0xcb   :  { %v373_v23 = vmax.f32 %v305_v22, 0.0  ;;  %v241_v24 = vpop.f32.mrf.mxu0  ;;  %v274_v25 = vpop.f32.mrf.mxu1 }
  0xcc   :  { %v242_v26 = vadd.f32 %v686_v45, %v241_v24  ;;  %v275_v27 = vadd.f32 %v686_v45, %v274_v25  ;;  %v337_v28 = vpop.f32.mrf.mxu3 }
  0xcd   :  { %417 = vst.msk [vmem:[%s906_s3 + $0xf0] sm:$0xff] %vm386_vm2, %v373_v23  ;;  %v338_v29 = vadd.f32 %v686_v45, %v337_v28 }
  0xce   :  { %v352_v30 = vmax.f32 %v242_v26, 0.0  ;;  %v363_v31 = vmax.f32 %v275_v27, 0.0 }
  0xcf   :  { %v384_v32 = vmax.f32 %v338_v29, 0.0 }
  0xd0   :  { %396 = vst.msk [vmem:[%s906_s3 + $0x48] sm:$0xff] %vm386_vm2, %v352_v30  ;;  %v307_v33 = vpop.f32.mrf.mxu2 }
  0xd1   :  { %407 = vst.msk [vmem:[%s906_s3 + $0xa0] sm:$0xff] %vm386_vm2, %v363_v31  ;;  %v308_v34 = vadd.f32 %v686_v45, %v307_v33 }
  0xd2   :  { %428 = vst.msk [vmem:[%s906_s3 + $0x148] sm:$0xff] %vm386_vm2, %v384_v32 }
  0xd3   :  { %v374_v35 = vmax.f32 %v308_v34, 0.0  ;;  %v244_v36 = vpop.f32.mrf.mxu0  ;;  %v277_v37 = vpop.f32.mrf.mxu1 }
  0xd4   :  { %v245_v38 = vadd.f32 %v686_v45, %v244_v36  ;;  %v278_v39 = vadd.f32 %v686_v45, %v277_v37  ;;  %v340_v40 = vpop.f32.mrf.mxu3 }
  0xd5   :  { %418 = vst.msk [vmem:[%s906_s3 + $0xf8] sm:$0xff] %vm386_vm2, %v374_v35  ;;  %v341_v41 = vadd.f32 %v686_v45, %v340_v40 }
  0xd6   :  { %v353_v42 = vmax.f32 %v245_v38, 0.0  ;;  %v364_v43 = vmax.f32 %v278_v39, 0.0 }
  0xd7   :  { %v385_v44 = vmax.f32 %v341_v41, 0.0 }
  0xd8   :  { %397 = vst.msk [vmem:[%s906_s3 + $0x50] sm:$0xff] %vm386_vm2, %v353_v42  ;;  %v310_v46 = vpop.f32.mrf.mxu2 }
  0xd9   :  { %408 = vst.msk [vmem:[%s906_s3 + $0xa8] sm:$0xff] %vm386_vm2, %v364_v43  ;;  %v311_v47 = vadd.f32 %v686_v45, %v310_v46 }
  0xda   :  { %429 = vst.msk [vmem:[%s906_s3 + $0x150] sm:$0xff] %vm386_vm2, %v385_v44 }
  0xdb   :  { %v375_v48 = vmax.f32 %v311_v47, 0.0 }
  0xdd   :  { %419 = vst.msk [vmem:[%s906_s3 + $0x100] sm:$0xff] %vm386_vm2, %v375_v48 }

// kernel: vae_conv_forward.7
= control target key start
LH: loop header
LB: loop body
LE: loop exit
PB: predicated region body
PF: predicated region fallthrough
CT: control target
= control target key end

     0   :  { %vm81_vm0 = vcmask 261120   ;;  %vm250_vm1 = vcmask 523264   ;;  %s611_s1 = inlined_call_operand.vmem [shape: f32[288,64], index: 1, kind: input, shape index: {}]   ;;  %s612_s0 = inlined_call_operand.vmem [shape: f32[72,288], index: 0, kind: input, shape index: {}]   ;;  %s613_s2 = inlined_call_operand.vmem [shape: f32[1,64], index: 2, kind: input, shape index: {}]   ;;  %s614_s3 = inlined_call_operand.vmem [shape: f32[72,64], index: 3, kind: output, shape index: {}]  }
   0x1   :  { %v56_v0 = vld [vmem:[%s611_s1 + $0x78] sm:$0xff]  ;;  %v55_v3 = vld [vmem:[%s611_s1 + $0x70] sm:$0xff]  ;;  %v54_v6 = vld [vmem:[%s611_s1 + $0x68] sm:$0xff] }
   0x2   :  { %v332_v1 = vld [vmem:[%s611_s1 + $0xf8] sm:$0xff]  ;;  %109 = vmatpush.msra.mxu0 %v56_v0  ;;  %273 = vmatpush.msra.mxu3 %v56_v0  ;;  %v343_v4 = vld [vmem:[%s611_s1 + $0xf0] sm:$0xff]  ;;  %v355_v7 = vld [vmem:[%s611_s1 + $0xe8] sm:$0xff] }
   0x3   :  { %v76_v2 = vld [vmem:[%s611_s1 + $0x118] sm:$0xff]  ;;  %v75_v5 = vld [vmem:[%s611_s1 + $0x110] sm:$0xff]  ;;  %153 = vmatpush.msra.mxu1 %v332_v1  ;;  %v74_v8 = vld [vmem:[%s611_s1 + $0x108] sm:$0xff] }
   0x4   :  { %209 = vmatpush.msra.mxu2 %v76_v2  ;;  %110 = vmatpush.msra.mxu0 %v55_v3  ;;  %v53_v9 = vld [vmem:[%s611_s1 + $0x60] sm:$0xff]  ;;  %v52_v12 = vld [vmem:[%s611_s1 + $0x58] sm:$0xff]  ;;  %v16_v14 = vld [vmem:[%s612_s0 + $0x10] sm:$0xff] }
   0x5   :  { %274 = vmatpush.msra.mxu3 %v55_v3  ;;  %154 = vmatpush.msra.mxu1 %v343_v4  ;;  %v367_v10 = vld [vmem:[%s611_s1 + $0xe0] sm:$0xff]  ;;  %v379_v13 = vld [vmem:[%s611_s1 + $0xd8] sm:$0xff]  ;;  %v51_v15 = vld [vmem:[%s611_s1 + $0x50] sm:$0xff] }
   0x6   :  { %210 = vmatpush.msra.mxu2 %v75_v5  ;;  %111 = vmatpush.msra.mxu0 %v54_v6  ;;  %v73_v11 = vld [vmem:[%s611_s1 + $0x100] sm:$0xff]  ;;  %v391_v16 = vld [vmem:[%s611_s1 + $0xd0] sm:$0xff]  ;;  %v50_v17 = vld [vmem:[%s611_s1 + $0x48] sm:$0xff] }
   0x7   :  { %275 = vmatpush.msra.mxu3 %v54_v6  ;;  %155 = vmatpush.msra.mxu1 %v355_v7  ;;  %v401_v18 = vld [vmem:[%s611_s1 + $0xc8] sm:$0xff]  ;;  %v49_v19 = vld [vmem:[%s611_s1 + $0x40] sm:$0xff]  ;;  %v48_v21 = vld [vmem:[%s611_s1 + $0x38] sm:$0xff] }
   0x8   :  { %211 = vmatpush.msra.mxu2 %v74_v8  ;;  %112 = vmatpush.msra.mxu0 %v53_v9  ;;  %v410_v20 = vld [vmem:[%s611_s1 + $0xc0] sm:$0xff]  ;;  %v419_v22 = vld [vmem:[%s611_s1 + $0xb8] sm:$0xff]  ;;  %v19_v23 = vld [vmem:[%s612_s0 + $0x28] sm:$0xff] }
   0x9   :  { %276 = vmatpush.msra.mxu3 %v53_v9  ;;  %156 = vmatpush.msra.mxu1 %v367_v10  ;;  %v47_v24 = vld [vmem:[%s611_s1 + $0x30] sm:$0xff]  ;;  %v46_v26 = vld [vmem:[%s611_s1 + $0x28] sm:$0xff]  ;;  %v45_v28 = vld [vmem:[%s611_s1 + $0x20] sm:$0xff] }
   0xa   :  { %212 = vmatpush.msra.mxu2 %v73_v11  ;;  %113 = vmatpush.msra.mxu0 %v52_v12  ;;  %v431_v25 = vld [vmem:[%s611_s1 + $0xb0] sm:$0xff]  ;;  %v441_v27 = vld [vmem:[%s611_s1 + $0xa8] sm:$0xff]  ;;  %v450_v29 = vld [vmem:[%s611_s1 + $0xa0] sm:$0xff] }
   0xb   :  { %277 = vmatpush.msra.mxu3 %v52_v12  ;;  %157 = vmatpush.msra.mxu1 %v379_v13  ;;  %v44_v30 = vld [vmem:[%s611_s1 + $0x18] sm:$0xff]  ;;  %v22_v32 = vld [vmem:[%s612_s0 + $0x40] sm:$0xff]  ;;  %v43_v33 = vld [vmem:[%s611_s1 + $0x10] sm:$0xff] }
   0xc   :  { %264 = vmatmul.msk.f32.vlgmr.msra.gmra.mxu2 %vm81_vm0, %v16_v14  ;;  %114 = vmatpush.msra.mxu0 %v51_v15  ;;  %v60_v31 = vld [vmem:[%s611_s1 + $0x98] sm:$0xff]  ;;  %v59_v34 = vld [vmem:[%s611_s1 + $0x90] sm:$0xff]  ;;  %v42_v35 = vld [vmem:[%s611_s1 + $0x8] sm:$0xff] }
   0xd   :  { %278 = vmatpush.msra.mxu3 %v51_v15  ;;  %158 = vmatpush.msra.mxu1 %v391_v16  ;;  %v58_v36 = vld [vmem:[%s611_s1 + $0x88] sm:$0xff]  ;;  %v41_v37 = vld [vmem:[%s611_s1] sm:$0xff]  ;;  %v25_v41 = vld [vmem:[%s612_s0 + $0x58] sm:$0xff] }
   0xe   :  { %115 = vmatpush.msra.mxu0 %v50_v17  ;;  %v57_v38 = vld [vmem:[%s611_s1 + $0x80] sm:$0xff]  ;;  %v15_v40 = vld [vmem:[%s612_s0 + $0x8] sm:$0xff]  ;;  %v32_v42 = vld [vmem:[%s612_s0 + $0x90] sm:$0xff] }
   0xf   :  { %279 = vmatpush.msra.mxu3 %v50_v17  ;;  %159 = vmatpush.msra.mxu1 %v401_v18  ;;  %v14_v39 = vld [vmem:[%s612_s0] sm:$0xff]  ;;  %v17_v43 = vld [vmem:[%s612_s0 + $0x18] sm:$0xff]  ;;  %v28_v45 = vld [vmem:[%s612_s0 + $0x70] sm:$0xff] }
  0x10   :  { %116 = vmatpush.msra.mxu0 %v49_v19  ;;  %v18_v44 = vld [vmem:[%s612_s0 + $0x20] sm:$0xff]  ;;  %v35_v46 = vld [vmem:[%s612_s0 + $0xa8] sm:$0xff]  ;;  %v20_v47 = vld [vmem:[%s612_s0 + $0x30] sm:$0xff] }
  0x11   :  { %280 = vmatpush.msra.mxu3 %v49_v19  ;;  %160 = vmatpush.msra.mxu1 %v410_v20  ;;  %v21_v48 = vld [vmem:[%s612_s0 + $0x38] sm:$0xff]  ;;  %v31_v49 = vld [vmem:[%s612_s0 + $0x88] sm:$0xff]  ;;  %v38_v50 = vld [vmem:[%s612_s0 + $0xc0] sm:$0xff] }
  0x12   :  { %117 = vmatpush.msra.mxu0 %v48_v21  ;;  %v23_v51 = vld [vmem:[%s612_s0 + $0x48] sm:$0xff]  ;;  %v24_v52 = vld [vmem:[%s612_s0 + $0x50] sm:$0xff]  ;;  %v34_v53 = vld [vmem:[%s612_s0 + $0xa0] sm:$0xff] }
  0x13   :  { %281 = vmatpush.msra.mxu3 %v48_v21  ;;  %161 = vmatpush.msra.mxu1 %v419_v22  ;;  %v36_v54 = vld [vmem:[%s612_s0 + $0xb0] sm:$0xff]  ;;  %v26_v55 = vld [vmem:[%s612_s0 + $0x60] sm:$0xff]  ;;  %v27_v56 = vld [vmem:[%s612_s0 + $0x68] sm:$0xff] }
  0x14   :  { %265 = vmatmul.msk.f32.gmra.mxu2 %vm81_vm0, %v19_v23  ;;  %118 = vmatpush.msra.mxu0 %v47_v24  ;;  %v37_v57 = vld [vmem:[%s612_s0 + $0xb8] sm:$0xff]  ;;  %v39_v58 = vld [vmem:[%s612_s0 + $0xc8] sm:$0xff]  ;;  %v30_v60 = vld [vmem:[%s612_s0 + $0x80] sm:$0xff] }
  0x15   :  { %282 = vmatpush.msra.mxu3 %v47_v24  ;;  %162 = vmatpush.msra.mxu1 %v431_v25  ;;  %v29_v59 = vld [vmem:[%s612_s0 + $0x78] sm:$0xff]  ;;  %v40_v61 = vld [vmem:[%s612_s0 + $0xd0] sm:$0xff] }
  0x16   :  { %119 = vmatpush.msra.mxu0 %v46_v26  ;;  %v33_v62 = vld [vmem:[%s612_s0 + $0x98] sm:$0xff] }
  0x17   :  { %283 = vmatpush.msra.mxu3 %v46_v26  ;;  %163 = vmatpush.msra.mxu1 %v441_v27 }
  0x18   :  { %120 = vmatpush.msra.mxu0 %v45_v28 }
  0x19   :  { %284 = vmatpush.msra.mxu3 %v45_v28  ;;  %164 = vmatpush.msra.mxu1 %v450_v29 }
  0x1a   :  { %121 = vmatpush.msra.mxu0 %v44_v30 }
  0x1b   :  { %285 = vmatpush.msra.mxu3 %v44_v30  ;;  %165 = vmatpush.msra.mxu1 %v60_v31 }
  0x1c   :  { %266 = vmatmul.msk.f32.gmra.mxu2 %vm81_vm0, %v22_v32  ;;  %122 = vmatpush.msra.mxu0 %v43_v33 }
  0x1d   :  { %286 = vmatpush.msra.mxu3 %v43_v33  ;;  %166 = vmatpush.msra.mxu1 %v59_v34 }
  0x1e   :  { %123 = vmatpush.msra.mxu0 %v42_v35 }
  0x1f   :  { %287 = vmatpush.msra.mxu3 %v42_v35  ;;  %167 = vmatpush.msra.mxu1 %v58_v36 }
  0x20   :  { %124 = vmatpush.msra.mxu0 %v41_v37 }
  0x21   :  { %288 = vmatpush.msra.mxu3 %v41_v37  ;;  %168 = vmatpush.msra.mxu1 %v57_v38 }
  0x22   :  { %125 = vmatmul.f32.vlgmr.msra.gmra.mxu0 %v14_v39  ;;  %169 = vmatmul.f32.vlgmr.msra.gmra.mxu1 %v15_v40 }
  0x23   :  { %289 = vmatpush.msrb.mxu3 %v332_v1  ;;  %v305_v1 = vld [vmem:[%s613_s2] ss:$0 sm:$0xff] }
  0x24   :  { %267 = vmatmul.msk.f32.gmra.mxu2 %vm81_vm0, %v25_v41  ;;  %143 = vmatmul.f32.vlgmr.msra.gmra.mxu3 %v32_v42 }
  0x25   :  { %290 = vmatpush.msrb.mxu3 %v343_v4 }
  0x27   :  { %291 = vmatpush.msrb.mxu3 %v355_v7 }
  0x29   :  { %292 = vmatpush.msrb.mxu3 %v367_v10 }
  0x2a   :  { %128 = vmatmul.f32.gmra.mxu0 %v17_v43  ;;  %172 = vmatmul.f32.gmra.mxu1 %v18_v44 }
  0x2b   :  { %293 = vmatpush.msrb.mxu3 %v379_v13 }
  0x2c   :  { %268 = vmatmul.msk.f32.gmra.mxu2 %vm81_vm0, %v28_v45  ;;  %146 = vmatmul.f32.gmra.mxu3 %v35_v46 }
  0x2d   :  { %294 = vmatpush.msrb.mxu3 %v391_v16 }
  0x2f   :  { %295 = vmatpush.msrb.mxu3 %v401_v18 }
  0x31   :  { %296 = vmatpush.msrb.mxu3 %v410_v20 }
  0x32   :  { %131 = vmatmul.f32.gmra.mxu0 %v20_v47  ;;  %175 = vmatmul.f32.gmra.mxu1 %v21_v48 }
  0x33   :  { %297 = vmatpush.msrb.mxu3 %v419_v22 }
  0x34   :  { %269 = vmatmul.msk.f32.gmra.mxu2 %vm81_vm0, %v31_v49  ;;  %149 = vmatmul.f32.gmra.mxu3 %v38_v50 }
  0x35   :  { %298 = vmatpush.msrb.mxu3 %v431_v25 }
  0x37   :  { %299 = vmatpush.msrb.mxu3 %v441_v27 }
  0x39   :  { %300 = vmatpush.msrb.mxu3 %v450_v29 }
  0x3a   :  { %134 = vmatmul.f32.gmra.mxu0 %v23_v51  ;;  %178 = vmatmul.f32.gmra.mxu1 %v24_v52 }
  0x3b   :  { %301 = vmatpush.msrb.mxu3 %v60_v31 }
  0x3c   :  { %270 = vmatmul.msk.f32.gmra.mxu2 %vm81_vm0, %v34_v53 }
  0x3d   :  { %302 = vmatpush.msrb.mxu3 %v59_v34 }
  0x3f   :  { %303 = vmatpush.msrb.mxu3 %v58_v36 }
  0x41   :  { %304 = vmatpush.msrb.mxu3 %v57_v38 }
  0x42   :  { %190 = vmatmul.f32.vlgmr.msrb.gmra.mxu3 %v36_v54  ;;  %137 = vmatmul.f32.gmra.mxu0 %v26_v55 }
  0x43   :  { %181 = vmatmul.f32.gmra.mxu1 %v27_v56 }
  0x44   :  { %271 = vmatmul.msk.f32.gmra.mxu2 %vm81_vm0, %v37_v57 }
  0x4a   :  { %193 = vmatmul.f32.gmra.mxu3 %v39_v58  ;;  %140 = vmatmul.f32.gmra.mxu0 %v29_v59 }
  0x4b   :  { %184 = vmatmul.f32.gmra.mxu1 %v30_v60 }
  0x4c   :  { %272 = vmatmul.msk.f32.gmra.mxu2 %vm81_vm0, %v40_v61 }
  0x53   :  { %187 = vmatmul.f32.gmra.mxu1 %v33_v62 }
  0x8f   :  { %v214_v63 = vpop.f32.mrf.mxu2 }
  0x97   :  { %v217_v0 = vpop.f32.mrf.mxu2 }
  0x9f   :  { %v220_v2 = vpop.f32.mrf.mxu2  ;;  %v126_v3 = vpop.f32.mrf.mxu0 }
  0xa0   :  { %v127_v4 = vadd.f32 %v305_v1, %v126_v3  ;;  %v170_v5 = vpop.f32.mrf.mxu1 }
  0xa2   :  { %v171_v6 = vadd.f32 %v170_v5, %v127_v4 }
  0xa4   :  { %v215_v7 = vadd.f32 %v214_v63, %v171_v6 }
  0xa6   :  { %v241_v8 = vmax.f32 %v215_v7, 0.0 }
  0xa7   :  { %v223_v9 = vpop.f32.mrf.mxu2  ;;  %v129_v10 = vpop.f32.mrf.mxu0 }
  0xa8   :  { %251 = vst.msk [vmem:[%s614_s3] sm:$0xff] %vm250_vm1, %v241_v8  ;;  %v130_v11 = vadd.f32 %v305_v1, %v129_v10  ;;  %v173_v12 = vpop.f32.mrf.mxu1  ;;  %v144_v13 = vpop.f32.mrf.mxu3 }
  0xa9   :  { %v145_v55 = vadd.f32 %v305_v1, %v144_v13 }
  0xaa   :  { %v174_v14 = vadd.f32 %v173_v12, %v130_v11 }
  0xac   :  { %v218_v15 = vadd.f32 %v217_v0, %v174_v14 }
  0xae   :  { %v242_v16 = vmax.f32 %v218_v15, 0.0 }
  0xaf   :  { %v226_v17 = vpop.f32.mrf.mxu2  ;;  %v132_v18 = vpop.f32.mrf.mxu0 }
  0xb0   :  { %252 = vst.msk [vmem:[%s614_s3 + $0x8] sm:$0xff] %vm250_vm1, %v242_v16  ;;  %v133_v19 = vadd.f32 %v305_v1, %v132_v18  ;;  %v176_v20 = vpop.f32.mrf.mxu1  ;;  %v147_v21 = vpop.f32.mrf.mxu3 }
  0xb1   :  { %v148_v38 = vadd.f32 %v305_v1, %v147_v21 }
  0xb2   :  { %v177_v22 = vadd.f32 %v176_v20, %v133_v19 }
  0xb4   :  { %v221_v23 = vadd.f32 %v220_v2, %v177_v22 }
  0xb6   :  { %v243_v24 = vmax.f32 %v221_v23, 0.0 }
  0xb7   :  { %v229_v25 = vpop.f32.mrf.mxu2  ;;  %v135_v26 = vpop.f32.mrf.mxu0 }
  0xb8   :  { %253 = vst.msk [vmem:[%s614_s3 + $0x10] sm:$0xff] %vm250_vm1, %v243_v24  ;;  %v136_v27 = vadd.f32 %v305_v1, %v135_v26  ;;  %v179_v28 = vpop.f32.mrf.mxu1  ;;  %v150_v30 = vpop.f32.mrf.mxu3 }
  0xb9   :  { %v151_v50 = vadd.f32 %v305_v1, %v150_v30 }
  0xba   :  { %v180_v29 = vadd.f32 %v179_v28, %v136_v27 }
  0xbc   :  { %v224_v31 = vadd.f32 %v223_v9, %v180_v29 }
  0xbe   :  { %v244_v32 = vmax.f32 %v224_v31, 0.0 }
  0xbf   :  { %v232_v33 = vpop.f32.mrf.mxu2  ;;  %v138_v34 = vpop.f32.mrf.mxu0 }
  0xc0   :  { %254 = vst.msk [vmem:[%s614_s3 + $0x18] sm:$0xff] %vm250_vm1, %v244_v32  ;;  %v139_v35 = vadd.f32 %v305_v1, %v138_v34  ;;  %v182_v36 = vpop.f32.mrf.mxu1 }
  0xc2   :  { %v183_v37 = vadd.f32 %v182_v36, %v139_v35 }
  0xc4   :  { %v227_v39 = vadd.f32 %v226_v17, %v183_v37 }
  0xc5   :  { %v191_v40 = vpop.f32.mrf.mxu3 }
  0xc6   :  { %v245_v41 = vmax.f32 %v227_v39, 0.0  ;;  %v192_v42 = vadd.f32 %v191_v40, %v148_v38 }
  0xc7   :  { %v235_v43 = vpop.f32.mrf.mxu2  ;;  %v141_v44 = vpop.f32.mrf.mxu0 }
  0xc8   :  { %255 = vst.msk [vmem:[%s614_s3 + $0x20] sm:$0xff] %vm250_vm1, %v245_v41  ;;  %v236_v45 = vadd.f32 %v235_v43, %v192_v42  ;;  %v142_v46 = vadd.f32 %v305_v1, %v141_v44  ;;  %v185_v47 = vpop.f32.mrf.mxu1 }
  0xca   :  { %v248_v48 = vmax.f32 %v236_v45, 0.0  ;;  %v186_v49 = vadd.f32 %v185_v47, %v142_v46 }
  0xcc   :  { %258 = vst.msk [vmem:[%s614_s3 + $0x38] sm:$0xff] %vm250_vm1, %v248_v48  ;;  %v230_v51 = vadd.f32 %v229_v25, %v186_v49 }
  0xcd   :  { %v194_v52 = vpop.f32.mrf.mxu3 }
  0xce   :  { %v246_v53 = vmax.f32 %v230_v51, 0.0  ;;  %v195_v54 = vadd.f32 %v194_v52, %v151_v50 }
  0xcf   :  { %v238_v56 = vpop.f32.mrf.mxu2 }
  0xd0   :  { %256 = vst.msk [vmem:[%s614_s3 + $0x28] sm:$0xff] %vm250_vm1, %v246_v53  ;;  %v239_v57 = vadd.f32 %v238_v56, %v195_v54  ;;  %v188_v58 = vpop.f32.mrf.mxu1 }
  0xd1   :  { %v189_v59 = vadd.f32 %v188_v58, %v145_v55 }
  0xd2   :  { %v249_v60 = vmax.f32 %v239_v57, 0.0 }
  0xd3   :  { %v233_v61 = vadd.f32 %v232_v33, %v189_v59 }
  0xd4   :  { %259 = vst.msk [vmem:[%s614_s3 + $0x40] sm:$0xff] %vm250_vm1, %v249_v60 }
  0xd5   :  { %v247_v62 = vmax.f32 %v233_v61, 0.0 }
  0xd7   :  { %257 = vst.msk [vmem:[%s614_s3 + $0x30] sm:$0xff] %vm250_vm1, %v247_v62 }

// kernel: vae_conv_forward.8
= control target key start
LH: loop header
LB: loop body
LE: loop exit
PB: predicated region body
PF: predicated region fallthrough
CT: control target
= control target key end

     0   :  { %vm690_vm0 = vcmask 523264   ;;  %s1696_s1 = inlined_call_operand.vmem [shape: f32[2304,128], index: 1, kind: input, shape index: {}]   ;;  %s1697_s0 = inlined_call_operand.vmem [shape: f32[8,2304], index: 0, kind: input, shape index: {}]   ;;  %s1698_s2 = inlined_call_operand.vmem [shape: f32[1,128], index: 2, kind: input, shape index: {}]   ;;  %s1699_s5 = inlined_call_operand.vmem [shape: f32[8,64], index: 5, kind: output, shape index: {1}]   ;;  %s1700_s3 = inlined_call_operand.vmem [shape: f32[8,64], index: 3, kind: input, shape index: {}]   ;;  %s1701_s4 = inlined_call_operand.vmem [shape: f32[8,64], index: 4, kind: output, shape index: {0}]   ;;  %s1702_s6 = inlined_call_operand.vmem [shape: f32[8,64], index: 6, kind: output, shape index: {2}]  }
   0x1   :  { %v53_v0 = vld [vmem:[%s1696_s1 + $0x78] sm:$0xff]  ;;  %v52_v2 = vld [vmem:[%s1696_s1 + $0x70] sm:$0xff]  ;;  %v51_v6 = vld [vmem:[%s1696_s1 + $0x68] sm:$0xff] }
   0x2   :  { %v85_v1 = vld [vmem:[%s1696_s1 + $0x178] sm:$0xff]  ;;  %330 = vmatpush.msra.mxu0 %v53_v0  ;;  %v84_v4 = vld [vmem:[%s1696_s1 + $0x170] sm:$0xff]  ;;  %v83_v8 = vld [vmem:[%s1696_s1 + $0x168] sm:$0xff] }
   0x3   :  { %370 = vmatpush.msra.mxu2 %v85_v1  ;;  %v69_v3 = vld [vmem:[%s1696_s1 + $0xf8] sm:$0xff]  ;;  %v68_v7 = vld [vmem:[%s1696_s1 + $0xf0] sm:$0xff]  ;;  %v67_v10 = vld [vmem:[%s1696_s1 + $0xe8] sm:$0xff] }
   0x4   :  { %v101_v5 = vld [vmem:[%s1696_s1 + $0x1f8] sm:$0xff]  ;;  %350 = vmatpush.msra.mxu1 %v69_v3  ;;  %331 = vmatpush.msra.mxu0 %v52_v2  ;;  %v100_v9 = vld [vmem:[%s1696_s1 + $0x1f0] sm:$0xff]  ;;  %v50_v11 = vld [vmem:[%s1696_s1 + $0x60] sm:$0xff] }
   0x5   :  { %390 = vmatpush.msra.mxu3 %v101_v5  ;;  %371 = vmatpush.msra.mxu2 %v84_v4  ;;  %v82_v12 = vld [vmem:[%s1696_s1 + $0x160] sm:$0xff]  ;;  %v99_v13 = vld [vmem:[%s1696_s1 + $0x1e8] sm:$0xff]  ;;  %v49_v16 = vld [vmem:[%s1696_s1 + $0x58] sm:$0xff] }
   0x6   :  { %351 = vmatpush.msra.mxu1 %v68_v7  ;;  %332 = vmatpush.msra.mxu0 %v51_v6  ;;  %v66_v14 = vld [vmem:[%s1696_s1 + $0xe0] sm:$0xff]  ;;  %v81_v17 = vld [vmem:[%s1696_s1 + $0x158] sm:$0xff]  ;;  %v48_v20 = vld [vmem:[%s1696_s1 + $0x50] sm:$0xff] }
   0x7   :  { %391 = vmatpush.msra.mxu3 %v100_v9  ;;  %372 = vmatpush.msra.mxu2 %v83_v8  ;;  %v98_v15 = vld [vmem:[%s1696_s1 + $0x1e0] sm:$0xff]  ;;  %v65_v18 = vld [vmem:[%s1696_s1 + $0xd8] sm:$0xff]  ;;  %v80_v21 = vld [vmem:[%s1696_s1 + $0x150] sm:$0xff] }
   0x8   :  { %352 = vmatpush.msra.mxu1 %v67_v10  ;;  %333 = vmatpush.msra.mxu0 %v50_v11  ;;  %v97_v19 = vld [vmem:[%s1696_s1 + $0x1d8] sm:$0xff]  ;;  %v64_v22 = vld [vmem:[%s1696_s1 + $0xd0] sm:$0xff]  ;;  %v47_v24 = vld [vmem:[%s1696_s1 + $0x48] sm:$0xff] }
   0x9   :  { %392 = vmatpush.msra.mxu3 %v99_v13  ;;  %373 = vmatpush.msra.mxu2 %v82_v12  ;;  %v96_v23 = vld [vmem:[%s1696_s1 + $0x1d0] sm:$0xff]  ;;  %v79_v25 = vld [vmem:[%s1696_s1 + $0x148] sm:$0xff]  ;;  %v46_v28 = vld [vmem:[%s1696_s1 + $0x40] sm:$0xff] }
   0xa   :  { %353 = vmatpush.msra.mxu1 %v66_v14  ;;  %334 = vmatpush.msra.mxu0 %v49_v16  ;;  %v63_v26 = vld [vmem:[%s1696_s1 + $0xc8] sm:$0xff]  ;;  %v78_v29 = vld [vmem:[%s1696_s1 + $0x140] sm:$0xff]  ;;  %v45_v32 = vld [vmem:[%s1696_s1 + $0x38] sm:$0xff] }
   0xb   :  { %393 = vmatpush.msra.mxu3 %v98_v15  ;;  %374 = vmatpush.msra.mxu2 %v81_v17  ;;  %v95_v27 = vld [vmem:[%s1696_s1 + $0x1c8] sm:$0xff]  ;;  %v62_v30 = vld [vmem:[%s1696_s1 + $0xc0] sm:$0xff]  ;;  %v77_v33 = vld [vmem:[%s1696_s1 + $0x138] sm:$0xff] }
   0xc   :  { %354 = vmatpush.msra.mxu1 %v65_v18  ;;  %335 = vmatpush.msra.mxu0 %v48_v20  ;;  %v94_v31 = vld [vmem:[%s1696_s1 + $0x1c0] sm:$0xff]  ;;  %v61_v34 = vld [vmem:[%s1696_s1 + $0xb8] sm:$0xff]  ;;  %v44_v36 = vld [vmem:[%s1696_s1 + $0x30] sm:$0xff] }
   0xd   :  { %394 = vmatpush.msra.mxu3 %v97_v19  ;;  %375 = vmatpush.msra.mxu2 %v80_v21  ;;  %v93_v35 = vld [vmem:[%s1696_s1 + $0x1b8] sm:$0xff]  ;;  %v76_v37 = vld [vmem:[%s1696_s1 + $0x130] sm:$0xff]  ;;  %v43_v40 = vld [vmem:[%s1696_s1 + $0x28] sm:$0xff] }
   0xe   :  { %355 = vmatpush.msra.mxu1 %v64_v22  ;;  %336 = vmatpush.msra.mxu0 %v47_v24  ;;  %v60_v38 = vld [vmem:[%s1696_s1 + $0xb0] sm:$0xff]  ;;  %v75_v41 = vld [vmem:[%s1696_s1 + $0x128] sm:$0xff]  ;;  %v42_v44 = vld [vmem:[%s1696_s1 + $0x20] sm:$0xff] }
   0xf   :  { %395 = vmatpush.msra.mxu3 %v96_v23  ;;  %376 = vmatpush.msra.mxu2 %v79_v25  ;;  %v92_v39 = vld [vmem:[%s1696_s1 + $0x1b0] sm:$0xff]  ;;  %v59_v42 = vld [vmem:[%s1696_s1 + $0xa8] sm:$0xff]  ;;  %v74_v45 = vld [vmem:[%s1696_s1 + $0x120] sm:$0xff] }
  0x10   :  { %356 = vmatpush.msra.mxu1 %v63_v26  ;;  %337 = vmatpush.msra.mxu0 %v46_v28  ;;  %v91_v43 = vld [vmem:[%s1696_s1 + $0x1a8] sm:$0xff]  ;;  %v58_v46 = vld [vmem:[%s1696_s1 + $0xa0] sm:$0xff]  ;;  %v41_v48 = vld [vmem:[%s1696_s1 + $0x18] sm:$0xff] }
  0x11   :  { %396 = vmatpush.msra.mxu3 %v95_v27  ;;  %377 = vmatpush.msra.mxu2 %v78_v29  ;;  %v90_v47 = vld [vmem:[%s1696_s1 + $0x1a0] sm:$0xff]  ;;  %v73_v49 = vld [vmem:[%s1696_s1 + $0x118] sm:$0xff]  ;;  %v40_v52 = vld [vmem:[%s1696_s1 + $0x10] sm:$0xff] }
  0x12   :  { %357 = vmatpush.msra.mxu1 %v62_v30  ;;  %338 = vmatpush.msra.mxu0 %v45_v32  ;;  %v57_v50 = vld [vmem:[%s1696_s1 + $0x98] sm:$0xff]  ;;  %v72_v53 = vld [vmem:[%s1696_s1 + $0x110] sm:$0xff]  ;;  %v39_v56 = vld [vmem:[%s1696_s1 + $0x8] sm:$0xff] }
  0x13   :  { %397 = vmatpush.msra.mxu3 %v94_v31  ;;  %378 = vmatpush.msra.mxu2 %v77_v33  ;;  %v89_v51 = vld [vmem:[%s1696_s1 + $0x198] sm:$0xff]  ;;  %v56_v54 = vld [vmem:[%s1696_s1 + $0x90] sm:$0xff]  ;;  %v71_v57 = vld [vmem:[%s1696_s1 + $0x108] sm:$0xff] }
  0x14   :  { %358 = vmatpush.msra.mxu1 %v61_v34  ;;  %339 = vmatpush.msra.mxu0 %v44_v36  ;;  %v88_v55 = vld [vmem:[%s1696_s1 + $0x190] sm:$0xff]  ;;  %v55_v58 = vld [vmem:[%s1696_s1 + $0x88] sm:$0xff]  ;;  %v38_v60 = vld [vmem:[%s1696_s1] sm:$0xff] }
  0x15   :  { %398 = vmatpush.msra.mxu3 %v93_v35  ;;  %379 = vmatpush.msra.mxu2 %v76_v37  ;;  %v87_v59 = vld [vmem:[%s1696_s1 + $0x188] sm:$0xff]  ;;  %v70_v61 = vld [vmem:[%s1696_s1 + $0x100] sm:$0xff]  ;;  %v117_v62 = vld [vmem:[%s1696_s1 + $0x278] sm:$0xff] }
  0x16   :  { %359 = vmatpush.msra.mxu1 %v60_v38  ;;  %340 = vmatpush.msra.mxu0 %v43_v40  ;;  %v149_v63 = vld [vmem:[%s1696_s1 + $0x378] sm:$0xff]  ;;  %v54_v0 = vld [vmem:[%s1696_s1 + $0x80] sm:$0xff]  ;;  %v116_v2 = vld [vmem:[%s1696_s1 + $0x270] sm:$0xff] }
  0x17   :  { %399 = vmatpush.msra.mxu3 %v92_v39  ;;  %380 = vmatpush.msra.mxu2 %v75_v41  ;;  %v86_v1 = vld [vmem:[%s1696_s1 + $0x180] sm:$0xff]  ;;  %v133_v3 = vld [vmem:[%s1696_s1 + $0x2f8] sm:$0xff]  ;;  %v148_v4 = vld [vmem:[%s1696_s1 + $0x370] sm:$0xff] }
  0x18   :  { %360 = vmatpush.msra.mxu1 %v59_v42  ;;  %341 = vmatpush.msra.mxu0 %v42_v44  ;;  %v165_v5 = vld [vmem:[%s1696_s1 + $0x3f8] sm:$0xff]  ;;  %v115_v6 = vld [vmem:[%s1696_s1 + $0x268] sm:$0xff]  ;;  %v132_v7 = vld [vmem:[%s1696_s1 + $0x2f0] sm:$0xff] }
  0x19   :  { %400 = vmatpush.msra.mxu3 %v91_v43  ;;  %381 = vmatpush.msra.mxu2 %v74_v45  ;;  %v147_v8 = vld [vmem:[%s1696_s1 + $0x368] sm:$0xff]  ;;  %v164_v9 = vld [vmem:[%s1696_s1 + $0x3f0] sm:$0xff]  ;;  %v114_v10 = vld [vmem:[%s1696_s1 + $0x260] sm:$0xff] }
  0x1a   :  { %361 = vmatpush.msra.mxu1 %v58_v46  ;;  %342 = vmatpush.msra.mxu0 %v41_v48  ;;  %v131_v11 = vld [vmem:[%s1696_s1 + $0x2e8] sm:$0xff]  ;;  %v146_v12 = vld [vmem:[%s1696_s1 + $0x360] sm:$0xff]  ;;  %v113_v14 = vld [vmem:[%s1696_s1 + $0x258] sm:$0xff] }
  0x1b   :  { %401 = vmatpush.msra.mxu3 %v90_v47  ;;  %382 = vmatpush.msra.mxu2 %v73_v49  ;;  %v163_v13 = vld [vmem:[%s1696_s1 + $0x3e8] sm:$0xff]  ;;  %v130_v15 = vld [vmem:[%s1696_s1 + $0x2e0] sm:$0xff]  ;;  %v145_v16 = vld [vmem:[%s1696_s1 + $0x358] sm:$0xff] }
  0x1c   :  { %362 = vmatpush.msra.mxu1 %v57_v50  ;;  %343 = vmatpush.msra.mxu0 %v40_v52  ;;  %v162_v17 = vld [vmem:[%s1696_s1 + $0x3e0] sm:$0xff]  ;;  %v112_v18 = vld [vmem:[%s1696_s1 + $0x250] sm:$0xff]  ;;  %v129_v19 = vld [vmem:[%s1696_s1 + $0x2d8] sm:$0xff] }
  0x1d   :  { %402 = vmatpush.msra.mxu3 %v89_v51  ;;  %383 = vmatpush.msra.mxu2 %v72_v53  ;;  %v144_v20 = vld [vmem:[%s1696_s1 + $0x350] sm:$0xff]  ;;  %v161_v21 = vld [vmem:[%s1696_s1 + $0x3d8] sm:$0xff]  ;;  %v111_v22 = vld [vmem:[%s1696_s1 + $0x248] sm:$0xff] }
  0x1e   :  { %363 = vmatpush.msra.mxu1 %v56_v54  ;;  %344 = vmatpush.msra.mxu0 %v39_v56  ;;  %v128_v23 = vld [vmem:[%s1696_s1 + $0x2d0] sm:$0xff]  ;;  %v143_v24 = vld [vmem:[%s1696_s1 + $0x348] sm:$0xff]  ;;  %v110_v26 = vld [vmem:[%s1696_s1 + $0x240] sm:$0xff] }
  0x1f   :  { %403 = vmatpush.msra.mxu3 %v88_v55  ;;  %384 = vmatpush.msra.mxu2 %v71_v57  ;;  %v160_v25 = vld [vmem:[%s1696_s1 + $0x3d0] sm:$0xff]  ;;  %v127_v27 = vld [vmem:[%s1696_s1 + $0x2c8] sm:$0xff]  ;;  %v142_v28 = vld [vmem:[%s1696_s1 + $0x340] sm:$0xff] }
  0x20   :  { %364 = vmatpush.msra.mxu1 %v55_v58  ;;  %345 = vmatpush.msra.mxu0 %v38_v60  ;;  %v159_v29 = vld [vmem:[%s1696_s1 + $0x3c8] sm:$0xff]  ;;  %v109_v30 = vld [vmem:[%s1696_s1 + $0x238] sm:$0xff]  ;;  %v126_v31 = vld [vmem:[%s1696_s1 + $0x2c0] sm:$0xff] }
  0x21   :  { %404 = vmatpush.msra.mxu3 %v87_v59  ;;  %385 = vmatpush.msra.mxu2 %v70_v61  ;;  %v141_v32 = vld [vmem:[%s1696_s1 + $0x338] sm:$0xff]  ;;  %v158_v33 = vld [vmem:[%s1696_s1 + $0x3c0] sm:$0xff]  ;;  %v108_v34 = vld [vmem:[%s1696_s1 + $0x230] sm:$0xff] }
  0x22   :  { %410 = vmatpush.msrb.mxu0 %v117_v62  ;;  %365 = vmatpush.msra.mxu1 %v54_v0  ;;  %v125_v35 = vld [vmem:[%s1696_s1 + $0x2b8] sm:$0xff]  ;;  %v140_v36 = vld [vmem:[%s1696_s1 + $0x330] sm:$0xff]  ;;  %v107_v38 = vld [vmem:[%s1696_s1 + $0x228] sm:$0xff] }
  0x23   :  { %450 = vmatpush.msrb.mxu2 %v149_v63  ;;  %405 = vmatpush.msra.mxu3 %v86_v1  ;;  %v157_v37 = vld [vmem:[%s1696_s1 + $0x3b8] sm:$0xff]  ;;  %v124_v39 = vld [vmem:[%s1696_s1 + $0x2b0] sm:$0xff]  ;;  %v139_v40 = vld [vmem:[%s1696_s1 + $0x328] sm:$0xff] }
  0x24   :  { %411 = vmatpush.msrb.mxu0 %v116_v2  ;;  %430 = vmatpush.msrb.mxu1 %v133_v3  ;;  %v156_v41 = vld [vmem:[%s1696_s1 + $0x3b0] sm:$0xff]  ;;  %v106_v42 = vld [vmem:[%s1696_s1 + $0x220] sm:$0xff]  ;;  %v123_v43 = vld [vmem:[%s1696_s1 + $0x2a8] sm:$0xff] }
  0x25   :  { %451 = vmatpush.msrb.mxu2 %v148_v4  ;;  %470 = vmatpush.msrb.mxu3 %v165_v5  ;;  %v138_v44 = vld [vmem:[%s1696_s1 + $0x320] sm:$0xff]  ;;  %v155_v45 = vld [vmem:[%s1696_s1 + $0x3a8] sm:$0xff]  ;;  %v105_v46 = vld [vmem:[%s1696_s1 + $0x218] sm:$0xff] }
  0x26   :  { %412 = vmatpush.msrb.mxu0 %v115_v6  ;;  %431 = vmatpush.msrb.mxu1 %v132_v7  ;;  %v122_v47 = vld [vmem:[%s1696_s1 + $0x2a0] sm:$0xff]  ;;  %v137_v48 = vld [vmem:[%s1696_s1 + $0x318] sm:$0xff]  ;;  %v104_v50 = vld [vmem:[%s1696_s1 + $0x210] sm:$0xff] }
  0x27   :  { %452 = vmatpush.msrb.mxu2 %v147_v8  ;;  %471 = vmatpush.msrb.mxu3 %v164_v9  ;;  %v154_v49 = vld [vmem:[%s1696_s1 + $0x3a0] sm:$0xff]  ;;  %v121_v51 = vld [vmem:[%s1696_s1 + $0x298] sm:$0xff]  ;;  %v136_v52 = vld [vmem:[%s1696_s1 + $0x310] sm:$0xff] }
  0x28   :  { %413 = vmatpush.msrb.mxu0 %v114_v10  ;;  %432 = vmatpush.msrb.mxu1 %v131_v11  ;;  %v153_v53 = vld [vmem:[%s1696_s1 + $0x398] sm:$0xff]  ;;  %v103_v54 = vld [vmem:[%s1696_s1 + $0x208] sm:$0xff]  ;;  %v120_v55 = vld [vmem:[%s1696_s1 + $0x290] sm:$0xff] }
  0x29   :  { %453 = vmatpush.msrb.mxu2 %v146_v12  ;;  %472 = vmatpush.msrb.mxu3 %v163_v13  ;;  %v135_v56 = vld [vmem:[%s1696_s1 + $0x308] sm:$0xff]  ;;  %v152_v57 = vld [vmem:[%s1696_s1 + $0x390] sm:$0xff]  ;;  %v102_v59 = vld [vmem:[%s1696_s1 + $0x200] sm:$0xff] }
  0x2a   :  { %414 = vmatpush.msrb.mxu0 %v113_v14  ;;  %433 = vmatpush.msrb.mxu1 %v130_v15  ;;  %v22_v58 = vld [vmem:[%s1697_s0 + $0x10] sm:$0xff]  ;;  %v119_v60 = vld [vmem:[%s1696_s1 + $0x288] sm:$0xff]  ;;  %v134_v61 = vld [vmem:[%s1696_s1 + $0x300] sm:$0xff] }
  0x2b   :  { %454 = vmatpush.msrb.mxu2 %v145_v16  ;;  %473 = vmatpush.msrb.mxu3 %v162_v17  ;;  %v151_v62 = vld [vmem:[%s1696_s1 + $0x388] sm:$0xff]  ;;  %v20_v63 = vld [vmem:[%s1697_s0] sm:$0xff]  ;;  %v23_v0 = vld [vmem:[%s1697_s0 + $0x18] sm:$0xff] }
  0x2c   :  { %415 = vmatpush.msrb.mxu0 %v112_v18  ;;  %434 = vmatpush.msrb.mxu1 %v129_v19  ;;  %v181_v1 = vld [vmem:[%s1696_s1 + $0x478] sm:$0xff]  ;;  %v118_v3 = vld [vmem:[%s1696_s1 + $0x280] sm:$0xff]  ;;  %v21_v5 = vld [vmem:[%s1697_s0 + $0x8] sm:$0xff] }
  0x2d   :  { %455 = vmatpush.msrb.mxu2 %v144_v20  ;;  %474 = vmatpush.msrb.mxu3 %v161_v21  ;;  %v213_v2 = vld [vmem:[%s1696_s1 + $0x578] sm:$0xff]  ;;  %v150_v4 = vld [vmem:[%s1696_s1 + $0x380] sm:$0xff]  ;;  %v180_v6 = vld [vmem:[%s1696_s1 + $0x470] sm:$0xff] }
  0x2e   :  { %416 = vmatpush.msrb.mxu0 %v111_v22  ;;  %435 = vmatpush.msrb.mxu1 %v128_v23  ;;  %v197_v7 = vld [vmem:[%s1696_s1 + $0x4f8] sm:$0xff]  ;;  %v212_v8 = vld [vmem:[%s1696_s1 + $0x570] sm:$0xff]  ;;  %v179_v10 = vld [vmem:[%s1696_s1 + $0x468] sm:$0xff] }
  0x2f   :  { %456 = vmatpush.msrb.mxu2 %v143_v24  ;;  %475 = vmatpush.msrb.mxu3 %v160_v25  ;;  %v229_v9 = vld [vmem:[%s1696_s1 + $0x5f8] sm:$0xff]  ;;  %v196_v11 = vld [vmem:[%s1696_s1 + $0x4f0] sm:$0xff]  ;;  %v211_v12 = vld [vmem:[%s1696_s1 + $0x568] sm:$0xff] }
  0x30   :  { %417 = vmatpush.msrb.mxu0 %v110_v26  ;;  %436 = vmatpush.msrb.mxu1 %v127_v27  ;;  %v228_v13 = vld [vmem:[%s1696_s1 + $0x5f0] sm:$0xff]  ;;  %v178_v15 = vld [vmem:[%s1696_s1 + $0x460] sm:$0xff]  ;;  %v195_v16 = vld [vmem:[%s1696_s1 + $0x4e8] sm:$0xff] }
  0x31   :  { %457 = vmatpush.msrb.mxu2 %v142_v28  ;;  %476 = vmatpush.msrb.mxu3 %v159_v29  ;;  %v26_v14 = vld [vmem:[%s1697_s0 + $0x30] sm:$0xff]  ;;  %v210_v17 = vld [vmem:[%s1696_s1 + $0x560] sm:$0xff]  ;;  %v227_v18 = vld [vmem:[%s1696_s1 + $0x5e8] sm:$0xff] }
  0x32   :  { %418 = vmatpush.msrb.mxu0 %v109_v30  ;;  %437 = vmatpush.msrb.mxu1 %v126_v31  ;;  %v24_v19 = vld [vmem:[%s1697_s0 + $0x20] sm:$0xff]  ;;  %v27_v20 = vld [vmem:[%s1697_s0 + $0x38] sm:$0xff]  ;;  %v25_v25 = vld [vmem:[%s1697_s0 + $0x28] sm:$0xff] }
  0x33   :  { %458 = vmatpush.msrb.mxu2 %v141_v32  ;;  %477 = vmatpush.msrb.mxu3 %v158_v33  ;;  %v177_v21 = vld [vmem:[%s1696_s1 + $0x458] sm:$0xff]  ;;  %v194_v22 = vld [vmem:[%s1696_s1 + $0x4e0] sm:$0xff]  ;;  %v176_v26 = vld [vmem:[%s1696_s1 + $0x450] sm:$0xff] }
  0x34   :  { %419 = vmatpush.msrb.mxu0 %v108_v34  ;;  %438 = vmatpush.msrb.mxu1 %v125_v35  ;;  %v209_v23 = vld [vmem:[%s1696_s1 + $0x558] sm:$0xff]  ;;  %v226_v24 = vld [vmem:[%s1696_s1 + $0x5e0] sm:$0xff]  ;;  %v208_v28 = vld [vmem:[%s1696_s1 + $0x550] sm:$0xff] }
  0x35   :  { %459 = vmatpush.msrb.mxu2 %v140_v36  ;;  %478 = vmatpush.msrb.mxu3 %v157_v37  ;;  %v193_v27 = vld [vmem:[%s1696_s1 + $0x4d8] sm:$0xff]  ;;  %v175_v30 = vld [vmem:[%s1696_s1 + $0x448] sm:$0xff]  ;;  %v192_v31 = vld [vmem:[%s1696_s1 + $0x4d0] sm:$0xff] }
  0x36   :  { %420 = vmatpush.msrb.mxu0 %v107_v38  ;;  %439 = vmatpush.msrb.mxu1 %v124_v39  ;;  %v225_v29 = vld [vmem:[%s1696_s1 + $0x5d8] sm:$0xff]  ;;  %v207_v32 = vld [vmem:[%s1696_s1 + $0x548] sm:$0xff]  ;;  %v224_v33 = vld [vmem:[%s1696_s1 + $0x5d0] sm:$0xff] }
  0x37   :  { %460 = vmatpush.msrb.mxu2 %v139_v40  ;;  %479 = vmatpush.msrb.mxu3 %v156_v41  ;;  %v174_v34 = vld [vmem:[%s1696_s1 + $0x440] sm:$0xff]  ;;  %v191_v35 = vld [vmem:[%s1696_s1 + $0x4c8] sm:$0xff]  ;;  %v173_v38 = vld [vmem:[%s1696_s1 + $0x438] sm:$0xff] }
  0x38   :  { %421 = vmatpush.msrb.mxu0 %v106_v42  ;;  %440 = vmatpush.msrb.mxu1 %v123_v43  ;;  %v206_v36 = vld [vmem:[%s1696_s1 + $0x540] sm:$0xff]  ;;  %v223_v37 = vld [vmem:[%s1696_s1 + $0x5c8] sm:$0xff]  ;;  %v205_v40 = vld [vmem:[%s1696_s1 + $0x538] sm:$0xff] }
  0x39   :  { %461 = vmatpush.msrb.mxu2 %v138_v44  ;;  %480 = vmatpush.msrb.mxu3 %v155_v45  ;;  %v190_v39 = vld [vmem:[%s1696_s1 + $0x4c0] sm:$0xff]  ;;  %v172_v42 = vld [vmem:[%s1696_s1 + $0x430] sm:$0xff]  ;;  %v189_v43 = vld [vmem:[%s1696_s1 + $0x4b8] sm:$0xff] }
  0x3a   :  { %422 = vmatpush.msrb.mxu0 %v105_v46  ;;  %441 = vmatpush.msrb.mxu1 %v122_v47  ;;  %v222_v41 = vld [vmem:[%s1696_s1 + $0x5c0] sm:$0xff]  ;;  %v204_v44 = vld [vmem:[%s1696_s1 + $0x530] sm:$0xff]  ;;  %v221_v45 = vld [vmem:[%s1696_s1 + $0x5b8] sm:$0xff] }
  0x3b   :  { %462 = vmatpush.msrb.mxu2 %v137_v48  ;;  %481 = vmatpush.msrb.mxu3 %v154_v49  ;;  %v171_v46 = vld [vmem:[%s1696_s1 + $0x428] sm:$0xff]  ;;  %v188_v47 = vld [vmem:[%s1696_s1 + $0x4b0] sm:$0xff] }
  0x3c   :  { %423 = vmatpush.msrb.mxu0 %v104_v50  ;;  %442 = vmatpush.msrb.mxu1 %v121_v51  ;;  %v203_v48 = vld [vmem:[%s1696_s1 + $0x528] sm:$0xff]  ;;  %v220_v49 = vld [vmem:[%s1696_s1 + $0x5b0] sm:$0xff]  ;;  %v170_v50 = vld [vmem:[%s1696_s1 + $0x420] sm:$0xff] }
  0x3d   :  { %463 = vmatpush.msrb.mxu2 %v136_v52  ;;  %482 = vmatpush.msrb.mxu3 %v153_v53  ;;  %v187_v51 = vld [vmem:[%s1696_s1 + $0x4a8] sm:$0xff]  ;;  %v202_v52 = vld [vmem:[%s1696_s1 + $0x520] sm:$0xff] }
  0x3e   :  { %424 = vmatpush.msrb.mxu0 %v103_v54  ;;  %443 = vmatpush.msrb.mxu1 %v120_v55  ;;  %v219_v53 = vld [vmem:[%s1696_s1 + $0x5a8] sm:$0xff]  ;;  %v169_v54 = vld [vmem:[%s1696_s1 + $0x418] sm:$0xff]  ;;  %v186_v55 = vld [vmem:[%s1696_s1 + $0x4a0] sm:$0xff] }
  0x3f   :  { %464 = vmatpush.msrb.mxu2 %v135_v56  ;;  %483 = vmatpush.msrb.mxu3 %v152_v57  ;;  %v201_v56 = vld [vmem:[%s1696_s1 + $0x518] sm:$0xff]  ;;  %v218_v57 = vld [vmem:[%s1696_s1 + $0x5a0] sm:$0xff] }
  0x40   :  { %386 = vmatmul.f32.vlgmr.msra.gmra.mxu2 %v22_v58  ;;  %425 = vmatpush.msrb.mxu0 %v102_v59  ;;  %v168_v58 = vld [vmem:[%s1696_s1 + $0x410] sm:$0xff]  ;;  %v185_v59 = vld [vmem:[%s1696_s1 + $0x498] sm:$0xff] }
  0x41   :  { %444 = vmatpush.msrb.mxu1 %v119_v60  ;;  %465 = vmatpush.msrb.mxu2 %v134_v61  ;;  %v200_v60 = vld [vmem:[%s1696_s1 + $0x510] sm:$0xff]  ;;  %v217_v61 = vld [vmem:[%s1696_s1 + $0x598] sm:$0xff] }
  0x42   :  { %484 = vmatpush.msrb.mxu3 %v151_v62  ;;  %346 = vmatmul.f32.vlgmr.msra.gmra.mxu0 %v20_v63  ;;  %v167_v62 = vld [vmem:[%s1696_s1 + $0x408] sm:$0xff]  ;;  %v184_v63 = vld [vmem:[%s1696_s1 + $0x490] sm:$0xff] }
  0x43   :  { %406 = vmatmul.f32.vlgmr.msra.gmra.mxu3 %v23_v0  ;;  %490 = vmatpush.msra.mxu0 %v181_v1  ;;  %v199_v0 = vld [vmem:[%s1696_s1 + $0x508] sm:$0xff]  ;;  %v216_v1 = vld [vmem:[%s1696_s1 + $0x590] sm:$0xff] }
  0x44   :  { %530 = vmatpush.msra.mxu2 %v213_v2  ;;  %445 = vmatpush.msrb.mxu1 %v118_v3  ;;  %v166_v2 = vld [vmem:[%s1696_s1 + $0x400] sm:$0xff]  ;;  %v183_v3 = vld [vmem:[%s1696_s1 + $0x488] sm:$0xff] }
  0x45   :  { %485 = vmatpush.msrb.mxu3 %v150_v4  ;;  %366 = vmatmul.f32.vlgmr.msra.gmra.mxu1 %v21_v5  ;;  %v198_v4 = vld [vmem:[%s1696_s1 + $0x500] sm:$0xff]  ;;  %v215_v5 = vld [vmem:[%s1696_s1 + $0x588] sm:$0xff] }
  0x46   :  { %491 = vmatpush.msra.mxu0 %v180_v6  ;;  %510 = vmatpush.msra.mxu1 %v197_v7  ;;  %v28_v6 = vld [vmem:[%s1697_s0 + $0x40] sm:$0xff]  ;;  %v30_v7 = vld [vmem:[%s1697_s0 + $0x50] sm:$0xff] }
  0x47   :  { %531 = vmatpush.msra.mxu2 %v212_v8  ;;  %550 = vmatpush.msra.mxu3 %v229_v9  ;;  %v245_v8 = vld [vmem:[%s1696_s1 + $0x678] sm:$0xff] }
  0x48   :  { %492 = vmatpush.msra.mxu0 %v179_v10  ;;  %511 = vmatpush.msra.mxu1 %v196_v11  ;;  %v277_v9 = vld [vmem:[%s1696_s1 + $0x778] sm:$0xff]  ;;  %v182_v10 = vld [vmem:[%s1696_s1 + $0x480] sm:$0xff] }
  0x49   :  { %532 = vmatpush.msra.mxu2 %v211_v12  ;;  %551 = vmatpush.msra.mxu3 %v228_v13  ;;  %v214_v11 = vld [vmem:[%s1696_s1 + $0x580] sm:$0xff]  ;;  %v29_v12 = vld [vmem:[%s1697_s0 + $0x48] sm:$0xff]  ;;  %v31_v13 = vld [vmem:[%s1697_s0 + $0x58] sm:$0xff] }
  0x4a   :  { %466 = vmatmul.f32.vlgmr.msrb.gmra.mxu2 %v26_v14  ;;  %493 = vmatpush.msra.mxu0 %v178_v15  ;;  %v244_v14 = vld [vmem:[%s1696_s1 + $0x670] sm:$0xff]  ;;  %v261_v15 = vld [vmem:[%s1696_s1 + $0x6f8] sm:$0xff] }
  0x4b   :  { %512 = vmatpush.msra.mxu1 %v195_v16  ;;  %533 = vmatpush.msra.mxu2 %v210_v17  ;;  %v276_v16 = vld [vmem:[%s1696_s1 + $0x770] sm:$0xff]  ;;  %v293_v17 = vld [vmem:[%s1696_s1 + $0x7f8] sm:$0xff] }
  0x4c   :  { %552 = vmatpush.msra.mxu3 %v227_v18  ;;  %426 = vmatmul.f32.vlgmr.msrb.gmra.mxu0 %v24_v19  ;;  %v243_v18 = vld [vmem:[%s1696_s1 + $0x668] sm:$0xff]  ;;  %v260_v19 = vld [vmem:[%s1696_s1 + $0x6f0] sm:$0xff] }
  0x4d   :  { %486 = vmatmul.f32.vlgmr.msrb.gmra.mxu3 %v27_v20  ;;  %494 = vmatpush.msra.mxu0 %v177_v21  ;;  %v275_v20 = vld [vmem:[%s1696_s1 + $0x768] sm:$0xff]  ;;  %v292_v21 = vld [vmem:[%s1696_s1 + $0x7f0] sm:$0xff] }
  0x4e   :  { %513 = vmatpush.msra.mxu1 %v194_v22  ;;  %534 = vmatpush.msra.mxu2 %v209_v23  ;;  %v242_v22 = vld [vmem:[%s1696_s1 + $0x660] sm:$0xff]  ;;  %v259_v23 = vld [vmem:[%s1696_s1 + $0x6e8] sm:$0xff] }
  0x4f   :  { %553 = vmatpush.msra.mxu3 %v226_v24  ;;  %446 = vmatmul.f32.vlgmr.msrb.gmra.mxu1 %v25_v25  ;;  %v274_v24 = vld [vmem:[%s1696_s1 + $0x760] sm:$0xff]  ;;  %v291_v25 = vld [vmem:[%s1696_s1 + $0x7e8] sm:$0xff] }
  0x50   :  { %495 = vmatpush.msra.mxu0 %v176_v26  ;;  %514 = vmatpush.msra.mxu1 %v193_v27  ;;  %v241_v26 = vld [vmem:[%s1696_s1 + $0x658] sm:$0xff]  ;;  %v258_v27 = vld [vmem:[%s1696_s1 + $0x6e0] sm:$0xff] }
  0x51   :  { %535 = vmatpush.msra.mxu2 %v208_v28  ;;  %554 = vmatpush.msra.mxu3 %v225_v29  ;;  %v273_v28 = vld [vmem:[%s1696_s1 + $0x758] sm:$0xff]  ;;  %v290_v29 = vld [vmem:[%s1696_s1 + $0x7e0] sm:$0xff] }
  0x52   :  { %496 = vmatpush.msra.mxu0 %v175_v30  ;;  %515 = vmatpush.msra.mxu1 %v192_v31  ;;  %v240_v30 = vld [vmem:[%s1696_s1 + $0x650] sm:$0xff]  ;;  %v257_v31 = vld [vmem:[%s1696_s1 + $0x6d8] sm:$0xff] }
  0x53   :  { %536 = vmatpush.msra.mxu2 %v207_v32  ;;  %555 = vmatpush.msra.mxu3 %v224_v33  ;;  %v272_v32 = vld [vmem:[%s1696_s1 + $0x750] sm:$0xff]  ;;  %v289_v33 = vld [vmem:[%s1696_s1 + $0x7d8] sm:$0xff] }
  0x54   :  { %497 = vmatpush.msra.mxu0 %v174_v34  ;;  %516 = vmatpush.msra.mxu1 %v191_v35  ;;  %v239_v34 = vld [vmem:[%s1696_s1 + $0x648] sm:$0xff]  ;;  %v256_v35 = vld [vmem:[%s1696_s1 + $0x6d0] sm:$0xff] }
  0x55   :  { %537 = vmatpush.msra.mxu2 %v206_v36  ;;  %556 = vmatpush.msra.mxu3 %v223_v37  ;;  %v271_v36 = vld [vmem:[%s1696_s1 + $0x748] sm:$0xff]  ;;  %v288_v37 = vld [vmem:[%s1696_s1 + $0x7d0] sm:$0xff] }
  0x56   :  { %498 = vmatpush.msra.mxu0 %v173_v38  ;;  %517 = vmatpush.msra.mxu1 %v190_v39  ;;  %v238_v38 = vld [vmem:[%s1696_s1 + $0x640] sm:$0xff]  ;;  %v255_v39 = vld [vmem:[%s1696_s1 + $0x6c8] sm:$0xff] }
  0x57   :  { %538 = vmatpush.msra.mxu2 %v205_v40  ;;  %557 = vmatpush.msra.mxu3 %v222_v41  ;;  %v270_v40 = vld [vmem:[%s1696_s1 + $0x740] sm:$0xff]  ;;  %v287_v41 = vld [vmem:[%s1696_s1 + $0x7c8] sm:$0xff] }
  0x58   :  { %499 = vmatpush.msra.mxu0 %v172_v42  ;;  %518 = vmatpush.msra.mxu1 %v189_v43  ;;  %v237_v42 = vld [vmem:[%s1696_s1 + $0x638] sm:$0xff]  ;;  %v254_v43 = vld [vmem:[%s1696_s1 + $0x6c0] sm:$0xff] }
  0x59   :  { %539 = vmatpush.msra.mxu2 %v204_v44  ;;  %558 = vmatpush.msra.mxu3 %v221_v45  ;;  %v269_v44 = vld [vmem:[%s1696_s1 + $0x738] sm:$0xff]  ;;  %v286_v45 = vld [vmem:[%s1696_s1 + $0x7c0] sm:$0xff] }
  0x5a   :  { %500 = vmatpush.msra.mxu0 %v171_v46  ;;  %519 = vmatpush.msra.mxu1 %v188_v47  ;;  %v236_v46 = vld [vmem:[%s1696_s1 + $0x630] sm:$0xff]  ;;  %v253_v47 = vld [vmem:[%s1696_s1 + $0x6b8] sm:$0xff] }
  0x5b   :  { %540 = vmatpush.msra.mxu2 %v203_v48  ;;  %559 = vmatpush.msra.mxu3 %v220_v49  ;;  %v268_v48 = vld [vmem:[%s1696_s1 + $0x730] sm:$0xff]  ;;  %v285_v49 = vld [vmem:[%s1696_s1 + $0x7b8] sm:$0xff] }
  0x5c   :  { %501 = vmatpush.msra.mxu0 %v170_v50  ;;  %520 = vmatpush.msra.mxu1 %v187_v51  ;;  %v235_v50 = vld [vmem:[%s1696_s1 + $0x628] sm:$0xff]  ;;  %v252_v51 = vld [vmem:[%s1696_s1 + $0x6b0] sm:$0xff] }
  0x5d   :  { %541 = vmatpush.msra.mxu2 %v202_v52  ;;  %560 = vmatpush.msra.mxu3 %v219_v53  ;;  %v267_v52 = vld [vmem:[%s1696_s1 + $0x728] sm:$0xff]  ;;  %v284_v53 = vld [vmem:[%s1696_s1 + $0x7b0] sm:$0xff] }
  0x5e   :  { %502 = vmatpush.msra.mxu0 %v169_v54  ;;  %521 = vmatpush.msra.mxu1 %v186_v55  ;;  %v234_v54 = vld [vmem:[%s1696_s1 + $0x620] sm:$0xff]  ;;  %v251_v55 = vld [vmem:[%s1696_s1 + $0x6a8] sm:$0xff] }
  0x5f   :  { %542 = vmatpush.msra.mxu2 %v201_v56  ;;  %561 = vmatpush.msra.mxu3 %v218_v57  ;;  %v266_v56 = vld [vmem:[%s1696_s1 + $0x720] sm:$0xff]  ;;  %v283_v57 = vld [vmem:[%s1696_s1 + $0x7a8] sm:$0xff] }
  0x60   :  { %503 = vmatpush.msra.mxu0 %v168_v58  ;;  %522 = vmatpush.msra.mxu1 %v185_v59  ;;  %v233_v58 = vld [vmem:[%s1696_s1 + $0x618] sm:$0xff]  ;;  %v250_v59 = vld [vmem:[%s1696_s1 + $0x6a0] sm:$0xff] }
  0x61   :  { %543 = vmatpush.msra.mxu2 %v200_v60  ;;  %562 = vmatpush.msra.mxu3 %v217_v61  ;;  %v265_v60 = vld [vmem:[%s1696_s1 + $0x718] sm:$0xff]  ;;  %v282_v61 = vld [vmem:[%s1696_s1 + $0x7a0] sm:$0xff] }
  0x62   :  { %504 = vmatpush.msra.mxu0 %v167_v62  ;;  %523 = vmatpush.msra.mxu1 %v184_v63  ;;  %v232_v62 = vld [vmem:[%s1696_s1 + $0x610] sm:$0xff]  ;;  %v249_v63 = vld [vmem:[%s1696_s1 + $0x698] sm:$0xff] }
  0x63   :  { %544 = vmatpush.msra.mxu2 %v199_v0  ;;  %563 = vmatpush.msra.mxu3 %v216_v1  ;;  %v264_v0 = vld [vmem:[%s1696_s1 + $0x710] sm:$0xff]  ;;  %v281_v1 = vld [vmem:[%s1696_s1 + $0x798] sm:$0xff] }
  0x64   :  { %505 = vmatpush.msra.mxu0 %v166_v2  ;;  %524 = vmatpush.msra.mxu1 %v183_v3  ;;  %v231_v2 = vld [vmem:[%s1696_s1 + $0x608] sm:$0xff]  ;;  %v248_v3 = vld [vmem:[%s1696_s1 + $0x690] sm:$0xff] }
  0x65   :  { %545 = vmatpush.msra.mxu2 %v198_v4  ;;  %564 = vmatpush.msra.mxu3 %v215_v5  ;;  %v263_v4 = vld [vmem:[%s1696_s1 + $0x708] sm:$0xff]  ;;  %v280_v5 = vld [vmem:[%s1696_s1 + $0x790] sm:$0xff] }
  0x66   :  { %506 = vmatmul.f32.vlgmr.msra.gmra.mxu0 %v28_v6  ;;  %546 = vmatmul.f32.vlgmr.msra.gmra.mxu2 %v30_v7  ;;  %v230_v6 = vld [vmem:[%s1696_s1 + $0x600] sm:$0xff]  ;;  %v247_v7 = vld [vmem:[%s1696_s1 + $0x688] sm:$0xff] }
  0x67   :  { %570 = vmatpush.msrb.mxu0 %v245_v8  ;;  %610 = vmatpush.msrb.mxu2 %v277_v9  ;;  %v262_v8 = vld [vmem:[%s1696_s1 + $0x700] sm:$0xff]  ;;  %v279_v9 = vld [vmem:[%s1696_s1 + $0x788] sm:$0xff] }
  0x68   :  { %525 = vmatpush.msra.mxu1 %v182_v10  ;;  %565 = vmatpush.msra.mxu3 %v214_v11  ;;  %v32_v10 = vld [vmem:[%s1697_s0 + $0x60] sm:$0xff]  ;;  %v34_v11 = vld [vmem:[%s1697_s0 + $0x70] sm:$0xff] }
  0x69   :  { %526 = vmatmul.f32.vlgmr.msra.gmra.mxu1 %v29_v12  ;;  %566 = vmatmul.f32.vlgmr.msra.gmra.mxu3 %v31_v13  ;;  %v309_v12 = vld [vmem:[%s1696_s1 + $0x878] sm:$0xff]  ;;  %v246_v13 = vld [vmem:[%s1696_s1 + $0x680] sm:$0xff] }
  0x6a   :  { %571 = vmatpush.msrb.mxu0 %v244_v14  ;;  %590 = vmatpush.msrb.mxu1 %v261_v15  ;;  %v278_v14 = vld [vmem:[%s1696_s1 + $0x780] sm:$0xff]  ;;  %v33_v15 = vld [vmem:[%s1697_s0 + $0x68] sm:$0xff] }
  0x6b   :  { %611 = vmatpush.msrb.mxu2 %v276_v16  ;;  %630 = vmatpush.msrb.mxu3 %v293_v17  ;;  %v35_v16 = vld [vmem:[%s1697_s0 + $0x78] sm:$0xff]  ;;  %v308_v17 = vld [vmem:[%s1696_s1 + $0x870] sm:$0xff] }
  0x6c   :  { %572 = vmatpush.msrb.mxu0 %v243_v18  ;;  %591 = vmatpush.msrb.mxu1 %v260_v19  ;;  %v325_v18 = vld [vmem:[%s1696_s1 + $0x8f8] sm:$0xff]  ;;  %v307_v19 = vld [vmem:[%s1696_s1 + $0x868] sm:$0xff] }
  0x6d   :  { %612 = vmatpush.msrb.mxu2 %v275_v20  ;;  %631 = vmatpush.msrb.mxu3 %v292_v21  ;;  %v324_v20 = vld [vmem:[%s1696_s1 + $0x8f0] sm:$0xff]  ;;  %v306_v21 = vld [vmem:[%s1696_s1 + $0x860] sm:$0xff] }
  0x6e   :  { %573 = vmatpush.msrb.mxu0 %v242_v22  ;;  %592 = vmatpush.msrb.mxu1 %v259_v23  ;;  %v323_v22 = vld [vmem:[%s1696_s1 + $0x8e8] sm:$0xff]  ;;  %v305_v23 = vld [vmem:[%s1696_s1 + $0x858] sm:$0xff] }
  0x6f   :  { %613 = vmatpush.msrb.mxu2 %v274_v24  ;;  %632 = vmatpush.msrb.mxu3 %v291_v25  ;;  %v322_v24 = vld [vmem:[%s1696_s1 + $0x8e0] sm:$0xff]  ;;  %v304_v25 = vld [vmem:[%s1696_s1 + $0x850] sm:$0xff] }
  0x70   :  { %574 = vmatpush.msrb.mxu0 %v241_v26  ;;  %593 = vmatpush.msrb.mxu1 %v258_v27  ;;  %v321_v26 = vld [vmem:[%s1696_s1 + $0x8d8] sm:$0xff]  ;;  %v303_v27 = vld [vmem:[%s1696_s1 + $0x848] sm:$0xff] }
  0x71   :  { %614 = vmatpush.msrb.mxu2 %v273_v28  ;;  %633 = vmatpush.msrb.mxu3 %v290_v29  ;;  %v320_v28 = vld [vmem:[%s1696_s1 + $0x8d0] sm:$0xff]  ;;  %v302_v29 = vld [vmem:[%s1696_s1 + $0x840] sm:$0xff] }
  0x72   :  { %575 = vmatpush.msrb.mxu0 %v240_v30  ;;  %594 = vmatpush.msrb.mxu1 %v257_v31  ;;  %v319_v30 = vld [vmem:[%s1696_s1 + $0x8c8] sm:$0xff]  ;;  %v301_v31 = vld [vmem:[%s1696_s1 + $0x838] sm:$0xff] }
  0x73   :  { %615 = vmatpush.msrb.mxu2 %v272_v32  ;;  %634 = vmatpush.msrb.mxu3 %v289_v33  ;;  %v318_v32 = vld [vmem:[%s1696_s1 + $0x8c0] sm:$0xff]  ;;  %v300_v33 = vld [vmem:[%s1696_s1 + $0x830] sm:$0xff] }
  0x74   :  { %576 = vmatpush.msrb.mxu0 %v239_v34  ;;  %595 = vmatpush.msrb.mxu1 %v256_v35  ;;  %v317_v34 = vld [vmem:[%s1696_s1 + $0x8b8] sm:$0xff]  ;;  %v299_v35 = vld [vmem:[%s1696_s1 + $0x828] sm:$0xff] }
  0x75   :  { %616 = vmatpush.msrb.mxu2 %v271_v36  ;;  %635 = vmatpush.msrb.mxu3 %v288_v37  ;;  %v316_v36 = vld [vmem:[%s1696_s1 + $0x8b0] sm:$0xff]  ;;  %v298_v37 = vld [vmem:[%s1696_s1 + $0x820] sm:$0xff] }
  0x76   :  { %577 = vmatpush.msrb.mxu0 %v238_v38  ;;  %596 = vmatpush.msrb.mxu1 %v255_v39  ;;  %v315_v38 = vld [vmem:[%s1696_s1 + $0x8a8] sm:$0xff]  ;;  %v297_v39 = vld [vmem:[%s1696_s1 + $0x818] sm:$0xff] }
  0x77   :  { %617 = vmatpush.msrb.mxu2 %v270_v40  ;;  %636 = vmatpush.msrb.mxu3 %v287_v41  ;;  %v314_v40 = vld [vmem:[%s1696_s1 + $0x8a0] sm:$0xff]  ;;  %v296_v41 = vld [vmem:[%s1696_s1 + $0x810] sm:$0xff] }
  0x78   :  { %578 = vmatpush.msrb.mxu0 %v237_v42  ;;  %597 = vmatpush.msrb.mxu1 %v254_v43  ;;  %v313_v42 = vld [vmem:[%s1696_s1 + $0x898] sm:$0xff]  ;;  %v295_v43 = vld [vmem:[%s1696_s1 + $0x808] sm:$0xff] }
  0x79   :  { %618 = vmatpush.msrb.mxu2 %v269_v44  ;;  %637 = vmatpush.msrb.mxu3 %v286_v45  ;;  %v312_v44 = vld [vmem:[%s1696_s1 + $0x890] sm:$0xff]  ;;  %v294_v45 = vld [vmem:[%s1696_s1 + $0x800] sm:$0xff] }
  0x7a   :  { %579 = vmatpush.msrb.mxu0 %v236_v46  ;;  %598 = vmatpush.msrb.mxu1 %v253_v47  ;;  %v311_v46 = vld [vmem:[%s1696_s1 + $0x888] sm:$0xff]  ;;  %v36_v47 = vld [vmem:[%s1697_s0 + $0x80] sm:$0xff] }
  0x7b   :  { %619 = vmatpush.msrb.mxu2 %v268_v48  ;;  %638 = vmatpush.msrb.mxu3 %v285_v49  ;;  %v310_v48 = vld [vmem:[%s1696_s1 + $0x880] sm:$0xff]  ;;  %v37_v49 = vld [vmem:[%s1697_s0 + $0x88] sm:$0xff] }
  0x7c   :  { %580 = vmatpush.msrb.mxu0 %v235_v50  ;;  %599 = vmatpush.msrb.mxu1 %v252_v51  ;;  %v721_v50 = vld [vmem:[%s1698_s2] ss:$0 sm:$0xff]  ;;  %s724_s2 = smov 64  }
  0x7d   :  { %620 = vmatpush.msrb.mxu2 %v267_v52  ;;  %639 = vmatpush.msrb.mxu3 %v284_v53 }
  0x7e   :  { %581 = vmatpush.msrb.mxu0 %v234_v54  ;;  %600 = vmatpush.msrb.mxu1 %v251_v55 }
  0x7f   :  { %621 = vmatpush.msrb.mxu2 %v266_v56  ;;  %640 = vmatpush.msrb.mxu3 %v283_v57 }
  0x80   :  { %582 = vmatpush.msrb.mxu0 %v233_v58  ;;  %601 = vmatpush.msrb.mxu1 %v250_v59 }
  0x81   :  { %622 = vmatpush.msrb.mxu2 %v265_v60  ;;  %641 = vmatpush.msrb.mxu3 %v282_v61 }
  0x82   :  { %583 = vmatpush.msrb.mxu0 %v232_v62  ;;  %602 = vmatpush.msrb.mxu1 %v249_v63 }
  0x83   :  { %623 = vmatpush.msrb.mxu2 %v264_v0  ;;  %642 = vmatpush.msrb.mxu3 %v281_v1 }
  0x84   :  { %584 = vmatpush.msrb.mxu0 %v231_v2  ;;  %603 = vmatpush.msrb.mxu1 %v248_v3 }
  0x85   :  { %624 = vmatpush.msrb.mxu2 %v263_v4  ;;  %643 = vmatpush.msrb.mxu3 %v280_v5 }
  0x86   :  { %585 = vmatpush.msrb.mxu0 %v230_v6  ;;  %604 = vmatpush.msrb.mxu1 %v247_v7 }
  0x87   :  { %625 = vmatpush.msrb.mxu2 %v262_v8  ;;  %644 = vmatpush.msrb.mxu3 %v279_v9 }
  0x88   :  { %586 = vmatmul.f32.vlgmr.msrb.gmra.mxu0 %v32_v10  ;;  %626 = vmatmul.f32.vlgmr.msrb.gmra.mxu2 %v34_v11 }
  0x89   :  { %650 = vmatpush.msra.mxu0 %v309_v12  ;;  %605 = vmatpush.msrb.mxu1 %v246_v13 }
  0x8a   :  { %645 = vmatpush.msrb.mxu3 %v278_v14  ;;  %606 = vmatmul.f32.vlgmr.msrb.gmra.mxu1 %v33_v15 }
  0x8b   :  { %646 = vmatmul.f32.vlgmr.msrb.gmra.mxu3 %v35_v16  ;;  %651 = vmatpush.msra.mxu0 %v308_v17 }
  0x8c   :  { %670 = vmatpush.msra.mxu1 %v325_v18 }
  0x8d   :  { %652 = vmatpush.msra.mxu0 %v307_v19 }
  0x8e   :  { %671 = vmatpush.msra.mxu1 %v324_v20 }
  0x8f   :  { %653 = vmatpush.msra.mxu0 %v306_v21 }
  0x90   :  { %672 = vmatpush.msra.mxu1 %v323_v22 }
  0x91   :  { %654 = vmatpush.msra.mxu0 %v305_v23 }
  0x92   :  { %673 = vmatpush.msra.mxu1 %v322_v24 }
  0x93   :  { %655 = vmatpush.msra.mxu0 %v304_v25 }
  0x94   :  { %674 = vmatpush.msra.mxu1 %v321_v26  ;;  %v697_v26 = vld [vmem:[%s1700_s3] sm:$0xff] }
  0x95   :  { %656 = vmatpush.msra.mxu0 %v303_v27 }
  0x96   :  { %675 = vmatpush.msra.mxu1 %v320_v28 }
  0x97   :  { %657 = vmatpush.msra.mxu0 %v302_v29 }
  0x98   :  { %676 = vmatpush.msra.mxu1 %v319_v30 }
  0x99   :  { %658 = vmatpush.msra.mxu0 %v301_v31 }
  0x9a   :  { %677 = vmatpush.msra.mxu1 %v318_v32 }
  0x9b   :  { %659 = vmatpush.msra.mxu0 %v300_v33 }
  0x9c   :  { %678 = vmatpush.msra.mxu1 %v317_v34 }
  0x9d   :  { %660 = vmatpush.msra.mxu0 %v299_v35 }
  0x9e   :  { %679 = vmatpush.msra.mxu1 %v316_v36 }
  0x9f   :  { %661 = vmatpush.msra.mxu0 %v298_v37 }
  0xa0   :  { %680 = vmatpush.msra.mxu1 %v315_v38 }
  0xa1   :  { %662 = vmatpush.msra.mxu0 %v297_v39 }
  0xa2   :  { %681 = vmatpush.msra.mxu1 %v314_v40 }
  0xa3   :  { %663 = vmatpush.msra.mxu0 %v296_v41 }
  0xa4   :  { %682 = vmatpush.msra.mxu1 %v313_v42 }
  0xa5   :  { %664 = vmatpush.msra.mxu0 %v295_v43 }
  0xa6   :  { %683 = vmatpush.msra.mxu1 %v312_v44 }
  0xa7   :  { %665 = vmatpush.msra.mxu0 %v294_v45 }
  0xa8   :  { %684 = vmatpush.msra.mxu1 %v311_v46  ;;  %666 = vmatmul.f32.vlgmr.msra.gmra.mxu0 %v36_v47 }
  0xaa   :  { %685 = vmatpush.msra.mxu1 %v310_v48 }
  0xab   :  { %686 = vmatmul.f32.vlgmr.msra.gmra.mxu1 %v37_v49 }
  0xbf   :  { %v347_v51 = vpop.f32.mrf.mxu0 }
  0xc0   :  { %v348_v52 = vadd.f32 %v721_v50, %v347_v51 }
  0xc2   :  { %v367_v53 = vpop.f32.mrf.mxu1 }
  0xc3   :  { %v368_v54 = vadd.f32 %v367_v53, %v348_v52  ;;  %v387_v55 = vpop.f32.mrf.mxu2 }
  0xc5   :  { %v388_v56 = vadd.f32 %v387_v55, %v368_v54 }
  0xc6   :  { %v407_v57 = vpop.f32.mrf.mxu3 }
  0xc7   :  { %v408_v58 = vadd.f32 %v407_v57, %v388_v56 }
  0xc9   :  { %v427_v59 = vpop.f32.mrf.mxu0 }
  0xca   :  { %v428_v60 = vadd.f32 %v427_v59, %v408_v58 }
  0xcc   :  { %v447_v61 = vpop.f32.mrf.mxu1 }
  0xcd   :  { %v448_v62 = vadd.f32 %v447_v61, %v428_v60  ;;  %v467_v63 = vpop.f32.mrf.mxu2 }
  0xcf   :  { %v468_v0 = vadd.f32 %v467_v63, %v448_v62 }
  0xd0   :  { %v487_v1 = vpop.f32.mrf.mxu3 }
  0xd1   :  { %v488_v3 = vadd.f32 %v487_v1, %v468_v0 }
  0xe3   :  { %v507_v2 = vpop.f32.mrf.mxu0 }
  0xe4   :  { %v508_v4 = vadd.f32 %v507_v2, %v488_v3 }
  0xe6   :  { %v527_v5 = vpop.f32.mrf.mxu1 }
  0xe7   :  { %v528_v7 = vadd.f32 %v527_v5, %v508_v4 }
  0xe9   :  { %v547_v6 = vpop.f32.mrf.mxu2 }
  0xea   :  { %v548_v8 = vadd.f32 %v547_v6, %v528_v7 }
  0xec   :  { %v567_v9 = vpop.f32.mrf.mxu3 }
  0xed   :  { %v568_v11 = vadd.f32 %v567_v9, %v548_v8 }
 0x105   :  { %v587_v10 = vpop.f32.mrf.mxu0 }
 0x106   :  { %v588_v12 = vadd.f32 %v587_v10, %v568_v11 }
 0x107   :  { %v607_v13 = vpop.f32.mrf.mxu1 }
 0x108   :  { %v608_v15 = vadd.f32 %v607_v13, %v588_v12 }
 0x10b   :  { %v627_v14 = vpop.f32.mrf.mxu2 }
 0x10c   :  { %v628_v16 = vadd.f32 %v627_v14, %v608_v15 }
 0x10e   :  { %v647_v17 = vpop.f32.mrf.mxu3 }
 0x10f   :  { %v648_v18 = vadd.f32 %v647_v17, %v628_v16 }
 0x125   :  { %v667_v19 = vpop.f32.mrf.mxu0 }
 0x126   :  { %v668_v20 = vadd.f32 %v667_v19, %v648_v18 }
 0x128   :  { %v687_v21 = vpop.f32.mrf.mxu1 }
 0x129   :  { %v688_v22 = vadd.f32 %v687_v21, %v668_v20 }
 0x12b   :  { %v698_v23 = vmul.f32 0.5, %v688_v22  ;;  %691 = vst.msk [vmem:[%s1699_s5] sm:$0xff] %vm690_vm0, %v688_v22 }
 0x12d   :  { %v699_v24 = vmul.f32 1.442695, %v698_v23 }
 0x12f   :  { %722 = vpow2.f32 %v699_v24 }
 0x135   :  { %v723_v25 = vpop.eup %722 }
 0x136   :  { %702 = vrot.lane.b32.xlu0 %v723_v25, %s724_s2 }
 0x13e   :  { %693 = vrot.lane.b32.xlu0 %v688_v22, %s724_s2 }
 0x1a8   :  { %v703_v27 = vpop.permute.xlu0 %702 }
 0x1a9   :  { %v705_v28 = vmul.f32 %v703_v27, %v697_v26 }
 0x1ab   :  { %v706_v29 = vadd.f32 %v705_v28, %v688_v22 }
 0x1ad   :  { %707 = vst.msk [vmem:[%s1701_s4] sm:$0xff] %vm690_vm0, %v706_v29 }
 0x1b0   :  { %v694_v30 = vpop.permute.xlu0 %693 }
 0x1b1   :  { %696 = vst.msk [vmem:[%s1702_s6] sm:$0xff] %vm690_vm0, %v694_v30 }

// kernel: vae_conv_forward.10
= control target key start
LH: loop header
LB: loop body
LE: loop exit
PB: predicated region body
PF: predicated region fallthrough
CT: control target
= control target key end

     0   :  { %vm41_vm0 = vcmask 261120   ;;  %s503_s1 = inlined_call_operand.vmem [shape: f32[32,256], index: 1, kind: input, shape index: {}]   ;;  %s504_s0 = inlined_call_operand.vmem [shape: f32[104,32], index: 0, kind: input, shape index: {}]   ;;  %s505_s2 = inlined_call_operand.vmem [shape: f32[1,256], index: 2, kind: input, shape index: {}]   ;;  %s506_s3 = inlined_call_operand.vmem [shape: f32[104,256], index: 3, kind: output, shape index: {}]  }
   0x1   :  { %v33_v0 = vld [vmem:[%s503_s1 + $0x30] sm:$0xff]  ;;  %v34_v1 = vld [vmem:[%s503_s1 + $0x38] sm:$0xff]  ;;  %v31_v2 = vld [vmem:[%s503_s1 + $0x20] sm:$0xff] }
   0x2   :  { %93 = vmatpush.msra.mxu0 %v33_v0  ;;  %149 = vmatpush.msra.mxu1 %v34_v1  ;;  %v32_v3 = vld [vmem:[%s503_s1 + $0x28] sm:$0xff]  ;;  %v29_v4 = vld [vmem:[%s503_s1 + $0x10] sm:$0xff]  ;;  %v30_v5 = vld [vmem:[%s503_s1 + $0x18] sm:$0xff] }
   0x3   :  { %275 = vmatpush.msra.mxu2 %v33_v0  ;;  %279 = vmatpush.msra.mxu3 %v34_v1  ;;  %v27_v6 = vld [vmem:[%s503_s1] sm:$0xff]  ;;  %v28_v7 = vld [vmem:[%s503_s1 + $0x8] sm:$0xff]  ;;  %v21_v9 = vld [vmem:[%s504_s0 + $0x38] sm:$0xff] }
   0x4   :  { %94 = vmatpush.msra.mxu0 %v31_v2  ;;  %150 = vmatpush.msra.mxu1 %v32_v3  ;;  %v14_v8 = vld [vmem:[%s504_s0] sm:$0xff]  ;;  %v15_v10 = vld [vmem:[%s504_s0 + $0x8] sm:$0xff]  ;;  %v16_v12 = vld [vmem:[%s504_s0 + $0x10] sm:$0xff] }
   0x5   :  { %276 = vmatpush.msra.mxu2 %v31_v2  ;;  %280 = vmatpush.msra.mxu3 %v32_v3  ;;  %v22_v11 = vld [vmem:[%s504_s0 + $0x40] sm:$0xff]  ;;  %v23_v13 = vld [vmem:[%s504_s0 + $0x48] sm:$0xff]  ;;  %v17_v14 = vld [vmem:[%s504_s0 + $0x18] sm:$0xff] }
   0x6   :  { %95 = vmatpush.msra.mxu0 %v29_v4  ;;  %151 = vmatpush.msra.mxu1 %v30_v5  ;;  %v24_v15 = vld [vmem:[%s504_s0 + $0x50] sm:$0xff]  ;;  %v18_v16 = vld [vmem:[%s504_s0 + $0x20] sm:$0xff]  ;;  %v25_v17 = vld [vmem:[%s504_s0 + $0x58] sm:$0xff] }
   0x7   :  { %277 = vmatpush.msra.mxu2 %v29_v4  ;;  %281 = vmatpush.msra.mxu3 %v30_v5  ;;  %v19_v18 = vld [vmem:[%s504_s0 + $0x28] sm:$0xff]  ;;  %v26_v19 = vld [vmem:[%s504_s0 + $0x60] sm:$0xff]  ;;  %v20_v20 = vld [vmem:[%s504_s0 + $0x30] sm:$0xff] }
   0x8   :  { %96 = vmatpush.msra.mxu0 %v27_v6  ;;  %152 = vmatpush.msra.mxu1 %v28_v7  ;;  %v35_v21 = vld [vmem:[%s505_s2] sm:$0x3] }
   0x9   :  { %249 = vmatmul.msk.f32.vlgmr.msra.gmra.mxu0 %vm41_vm0, %v14_v8  ;;  %262 = vmatmul.msk.f32.vlgmr.msra.gmra.mxu1 %vm41_vm0, %v14_v8  ;;  %v395_v22 = vperm.slane %v35_v21, 0  ;;  %v397_v23 = vperm.slane %v35_v21, 1 }
   0xa   :  { %278 = vmatpush.msra.mxu2 %v27_v6  ;;  %282 = vmatpush.msra.mxu3 %v28_v7 }
   0xb   :  { %256 = vmatmul.msk.f32.vlgmr.msra.gmra.mxu2 %vm41_vm0, %v21_v9  ;;  %269 = vmatmul.msk.f32.vlgmr.msra.gmra.mxu3 %vm41_vm0, %v21_v9 }
  0x11   :  { %250 = vmatmul.msk.f32.gmra.mxu0 %vm41_vm0, %v15_v10  ;;  %263 = vmatmul.msk.f32.gmra.mxu1 %vm41_vm0, %v15_v10 }
  0x13   :  { %257 = vmatmul.msk.f32.gmra.mxu2 %vm41_vm0, %v22_v11  ;;  %270 = vmatmul.msk.f32.gmra.mxu3 %vm41_vm0, %v22_v11 }
  0x19   :  { %251 = vmatmul.msk.f32.gmra.mxu0 %vm41_vm0, %v16_v12  ;;  %264 = vmatmul.msk.f32.gmra.mxu1 %vm41_vm0, %v16_v12 }
  0x1b   :  { %258 = vmatmul.msk.f32.gmra.mxu2 %vm41_vm0, %v23_v13  ;;  %271 = vmatmul.msk.f32.gmra.mxu3 %vm41_vm0, %v23_v13 }
  0x21   :  { %252 = vmatmul.msk.f32.gmra.mxu0 %vm41_vm0, %v17_v14  ;;  %265 = vmatmul.msk.f32.gmra.mxu1 %vm41_vm0, %v17_v14 }
  0x23   :  { %259 = vmatmul.msk.f32.gmra.mxu2 %vm41_vm0, %v24_v15  ;;  %272 = vmatmul.msk.f32.gmra.mxu3 %vm41_vm0, %v24_v15 }
  0x29   :  { %253 = vmatmul.msk.f32.gmra.mxu0 %vm41_vm0, %v18_v16  ;;  %266 = vmatmul.msk.f32.gmra.mxu1 %vm41_vm0, %v18_v16 }
  0x2b   :  { %260 = vmatmul.msk.f32.gmra.mxu2 %vm41_vm0, %v25_v17  ;;  %273 = vmatmul.msk.f32.gmra.mxu3 %vm41_vm0, %v25_v17 }
  0x31   :  { %254 = vmatmul.msk.f32.gmra.mxu0 %vm41_vm0, %v19_v18  ;;  %267 = vmatmul.msk.f32.gmra.mxu1 %vm41_vm0, %v19_v18 }
  0x33   :  { %261 = vmatmul.msk.f32.gmra.mxu2 %vm41_vm0, %v26_v19  ;;  %274 = vmatmul.msk.f32.gmra.mxu3 %vm41_vm0, %v26_v19 }
  0x39   :  { %255 = vmatmul.msk.f32.gmra.mxu0 %vm41_vm0, %v20_v20  ;;  %268 = vmatmul.msk.f32.gmra.mxu1 %vm41_vm0, %v20_v20 }
  0x86   :  { %v98_v24 = vpop.f32.mrf.mxu0  ;;  %v154_v25 = vpop.f32.mrf.mxu1 }
  0x87   :  { %v99_v26 = vadd.f32 %v98_v24, %v395_v22  ;;  %v155_v27 = vadd.f32 %v154_v25, %v397_v23 }
  0x89   :  { %v193_v28 = vmax.f32 %v99_v26, 0.0  ;;  %v194_v29 = vmax.f32 %v155_v27, 0.0 }
  0x8b   :  { %219 = vst [vmem:[%s506_s3] sm:$0xff] %v193_v28 }
  0x8c   :  { %220 = vst [vmem:[%s506_s3 + $0x8] sm:$0xff] %v194_v29 }
  0x8e   :  { %v101_v30 = vpop.f32.mrf.mxu0  ;;  %v119_v31 = vpop.f32.mrf.mxu2 }
  0x8f   :  { %v102_v32 = vadd.f32 %v101_v30, %v395_v22  ;;  %v120_v33 = vadd.f32 %v119_v31, %v395_v22  ;;  %v157_v34 = vpop.f32.mrf.mxu1  ;;  %v175_v35 = vpop.f32.mrf.mxu3 }
  0x90   :  { %v158_v36 = vadd.f32 %v157_v34, %v397_v23  ;;  %v176_v37 = vadd.f32 %v175_v35, %v397_v23 }
  0x91   :  { %v195_v38 = vmax.f32 %v102_v32, 0.0  ;;  %v207_v39 = vmax.f32 %v120_v33, 0.0 }
  0x92   :  { %v196_v40 = vmax.f32 %v158_v36, 0.0  ;;  %v208_v41 = vmax.f32 %v176_v37, 0.0 }
  0x93   :  { %221 = vst [vmem:[%s506_s3 + $0x10] sm:$0xff] %v195_v38 }
  0x94   :  { %233 = vst [vmem:[%s506_s3 + $0x70] sm:$0xff] %v207_v39 }
  0x95   :  { %222 = vst [vmem:[%s506_s3 + $0x18] sm:$0xff] %v196_v40 }
  0x96   :  { %234 = vst [vmem:[%s506_s3 + $0x78] sm:$0xff] %v208_v41  ;;  %v104_v42 = vpop.f32.mrf.mxu0  ;;  %v122_v43 = vpop.f32.mrf.mxu2 }
  0x97   :  { %v105_v44 = vadd.f32 %v104_v42, %v395_v22  ;;  %v123_v45 = vadd.f32 %v122_v43, %v395_v22  ;;  %v160_v46 = vpop.f32.mrf.mxu1  ;;  %v178_v47 = vpop.f32.mrf.mxu3 }
  0x98   :  { %v161_v48 = vadd.f32 %v160_v46, %v397_v23  ;;  %v179_v49 = vadd.f32 %v178_v47, %v397_v23 }
  0x99   :  { %v197_v50 = vmax.f32 %v105_v44, 0.0  ;;  %v209_v51 = vmax.f32 %v123_v45, 0.0 }
  0x9a   :  { %v198_v52 = vmax.f32 %v161_v48, 0.0  ;;  %v210_v53 = vmax.f32 %v179_v49, 0.0 }
  0x9b   :  { %223 = vst [vmem:[%s506_s3 + $0x20] sm:$0xff] %v197_v50 }
  0x9c   :  { %235 = vst [vmem:[%s506_s3 + $0x80] sm:$0xff] %v209_v51 }
  0x9d   :  { %224 = vst [vmem:[%s506_s3 + $0x28] sm:$0xff] %v198_v52 }
  0x9e   :  { %236 = vst [vmem:[%s506_s3 + $0x88] sm:$0xff] %v210_v53  ;;  %v107_v54 = vpop.f32.mrf.mxu0  ;;  %v125_v55 = vpop.f32.mrf.mxu2 }
  0x9f   :  { %v108_v56 = vadd.f32 %v107_v54, %v395_v22  ;;  %v126_v57 = vadd.f32 %v125_v55, %v395_v22  ;;  %v163_v58 = vpop.f32.mrf.mxu1  ;;  %v181_v59 = vpop.f32.mrf.mxu3 }
  0xa0   :  { %v164_v60 = vadd.f32 %v163_v58, %v397_v23  ;;  %v182_v61 = vadd.f32 %v181_v59, %v397_v23 }
  0xa1   :  { %v199_v62 = vmax.f32 %v108_v56, 0.0  ;;  %v211_v63 = vmax.f32 %v126_v57, 0.0 }
  0xa2   :  { %v200_v0 = vmax.f32 %v164_v60, 0.0  ;;  %v212_v1 = vmax.f32 %v182_v61, 0.0 }
  0xa3   :  { %225 = vst [vmem:[%s506_s3 + $0x30] sm:$0xff] %v199_v62 }
  0xa4   :  { %237 = vst [vmem:[%s506_s3 + $0x90] sm:$0xff] %v211_v63 }
  0xa5   :  { %226 = vst [vmem:[%s506_s3 + $0x38] sm:$0xff] %v200_v0 }
  0xa6   :  { %238 = vst [vmem:[%s506_s3 + $0x98] sm:$0xff] %v212_v1  ;;  %v110_v2 = vpop.f32.mrf.mxu0  ;;  %v128_v3 = vpop.f32.mrf.mxu2 }
  0xa7   :  { %v111_v4 = vadd.f32 %v110_v2, %v395_v22  ;;  %v129_v5 = vadd.f32 %v128_v3, %v395_v22  ;;  %v166_v6 = vpop.f32.mrf.mxu1  ;;  %v184_v7 = vpop.f32.mrf.mxu3 }
  0xa8   :  { %v167_v8 = vadd.f32 %v166_v6, %v397_v23  ;;  %v185_v9 = vadd.f32 %v184_v7, %v397_v23 }
  0xa9   :  { %v201_v10 = vmax.f32 %v111_v4, 0.0  ;;  %v213_v11 = vmax.f32 %v129_v5, 0.0 }
  0xaa   :  { %v202_v12 = vmax.f32 %v167_v8, 0.0  ;;  %v214_v13 = vmax.f32 %v185_v9, 0.0 }
  0xab   :  { %227 = vst [vmem:[%s506_s3 + $0x40] sm:$0xff] %v201_v10 }
  0xac   :  { %239 = vst [vmem:[%s506_s3 + $0xa0] sm:$0xff] %v213_v11 }
  0xad   :  { %228 = vst [vmem:[%s506_s3 + $0x48] sm:$0xff] %v202_v12 }
  0xae   :  { %240 = vst [vmem:[%s506_s3 + $0xa8] sm:$0xff] %v214_v13  ;;  %v113_v14 = vpop.f32.mrf.mxu0  ;;  %v131_v15 = vpop.f32.mrf.mxu2 }
  0xaf   :  { %v114_v16 = vadd.f32 %v113_v14, %v395_v22  ;;  %v132_v17 = vadd.f32 %v131_v15, %v395_v22  ;;  %v169_v18 = vpop.f32.mrf.mxu1  ;;  %v187_v19 = vpop.f32.mrf.mxu3 }
  0xb0   :  { %v170_v20 = vadd.f32 %v169_v18, %v397_v23  ;;  %v188_v21 = vadd.f32 %v187_v19, %v397_v23 }
  0xb1   :  { %v203_v24 = vmax.f32 %v114_v16, 0.0  ;;  %v215_v25 = vmax.f32 %v132_v17, 0.0 }
  0xb2   :  { %v204_v26 = vmax.f32 %v170_v20, 0.0  ;;  %v216_v27 = vmax.f32 %v188_v21, 0.0 }
  0xb3   :  { %229 = vst [vmem:[%s506_s3 + $0x50] sm:$0xff] %v203_v24 }
  0xb4   :  { %241 = vst [vmem:[%s506_s3 + $0xb0] sm:$0xff] %v215_v25 }
  0xb5   :  { %230 = vst [vmem:[%s506_s3 + $0x58] sm:$0xff] %v204_v26 }
  0xb6   :  { %242 = vst [vmem:[%s506_s3 + $0xb8] sm:$0xff] %v216_v27  ;;  %v116_v28 = vpop.f32.mrf.mxu0  ;;  %v134_v29 = vpop.f32.mrf.mxu2 }
  0xb7   :  { %v117_v30 = vadd.f32 %v116_v28, %v395_v22  ;;  %v135_v31 = vadd.f32 %v134_v29, %v395_v22  ;;  %v172_v32 = vpop.f32.mrf.mxu1  ;;  %v190_v33 = vpop.f32.mrf.mxu3 }
  0xb8   :  { %v173_v34 = vadd.f32 %v172_v32, %v397_v23  ;;  %v191_v35 = vadd.f32 %v190_v33, %v397_v23 }
  0xb9   :  { %v205_v36 = vmax.f32 %v117_v30, 0.0  ;;  %v217_v37 = vmax.f32 %v135_v31, 0.0 }
  0xba   :  { %v206_v38 = vmax.f32 %v173_v34, 0.0  ;;  %v218_v39 = vmax.f32 %v191_v35, 0.0 }
  0xbb   :  { %231 = vst [vmem:[%s506_s3 + $0x60] sm:$0xff] %v205_v36 }
  0xbc   :  { %243 = vst [vmem:[%s506_s3 + $0xc0] sm:$0xff] %v217_v37 }
  0xbd   :  { %232 = vst [vmem:[%s506_s3 + $0x68] sm:$0xff] %v206_v38 }
  0xbe   :  { %244 = vst [vmem:[%s506_s3 + $0xc8] sm:$0xff] %v218_v39 }

// kernel: vae_conv_forward.9
= control target key start
LH: loop header
LB: loop body
LE: loop exit
PB: predicated region body
PF: predicated region fallthrough
CT: control target
= control target key end

     0   :  { %vm149_vm0 = vcmask 523264   ;;  %vm438_vm1 = vcmask 261120   ;;  %s865_s1 = inlined_call_operand.vmem [shape: f32[64,1568], index: 1, kind: input, shape index: {}]   ;;  %s866_s0 = inlined_call_operand.vmem [shape: f32[8,64], index: 0, kind: input, shape index: {}]   ;;  %s867_s2 = inlined_call_operand.vmem [shape: f32[1,1568], index: 2, kind: input, shape index: {}]   ;;  %s868_s3 = inlined_call_operand.vmem [shape: f32[8,1568], index: 3, kind: output, shape index: {}]  }
   0x1   :  { %v106_v0 = vld [vmem:[%s865_s1 + $0x2d8] sm:$0xff]  ;;  %v93_v1 = vld [vmem:[%s865_s1 + $0x270] sm:$0xff]  ;;  %v108_v2 = vld [vmem:[%s865_s1 + $0x2e8] sm:$0xff] }
   0x2   :  { %161 = vmatpush.msra.mxu0 %v106_v0  ;;  %v80_v3 = vld [vmem:[%s865_s1 + $0x208] sm:$0xff]  ;;  %201 = vmatpush.msra.mxu2 %v108_v2  ;;  %v109_v4 = vld [vmem:[%s865_s1 + $0x2f0] sm:$0xff]  ;;  %v95_v5 = vld [vmem:[%s865_s1 + $0x280] sm:$0xff] }
   0x3   :  { %221 = vmatpush.msra.mxu3 %v109_v4  ;;  %v96_v6 = vld [vmem:[%s865_s1 + $0x288] sm:$0xff]  ;;  %v82_v7 = vld [vmem:[%s865_s1 + $0x218] sm:$0xff]  ;;  %v67_v8 = vld [vmem:[%s865_s1 + $0x1a0] sm:$0xff] }
   0x4   :  { %162 = vmatpush.msra.mxu0 %v93_v1  ;;  %202 = vmatpush.msra.mxu2 %v95_v5  ;;  %v83_v9 = vld [vmem:[%s865_s1 + $0x220] sm:$0xff]  ;;  %v69_v11 = vld [vmem:[%s865_s1 + $0x1b0] sm:$0xff]  ;;  %v54_v12 = vld [vmem:[%s865_s1 + $0x138] sm:$0xff] }
   0x5   :  { %v107_v10 = vld [vmem:[%s865_s1 + $0x2e0] sm:$0xff]  ;;  %222 = vmatpush.msra.mxu3 %v96_v6  ;;  %v70_v13 = vld [vmem:[%s865_s1 + $0x1b8] sm:$0xff]  ;;  %v56_v15 = vld [vmem:[%s865_s1 + $0x148] sm:$0xff] }
   0x6   :  { %163 = vmatpush.msra.mxu0 %v80_v3  ;;  %203 = vmatpush.msra.mxu2 %v82_v7  ;;  %v94_v14 = vld [vmem:[%s865_s1 + $0x278] sm:$0xff]  ;;  %v81_v16 = vld [vmem:[%s865_s1 + $0x210] sm:$0xff]  ;;  %v43_v19 = vld [vmem:[%s865_s1 + $0xe0] sm:$0xff] }
   0x7   :  { %181 = vmatpush.msra.mxu1 %v107_v10  ;;  %223 = vmatpush.msra.mxu3 %v83_v9  ;;  %v41_v17 = vld [vmem:[%s865_s1 + $0xd0] sm:$0xff]  ;;  %v68_v20 = vld [vmem:[%s865_s1 + $0x1a8] sm:$0xff]  ;;  %v30_v23 = vld [vmem:[%s865_s1 + $0x78] sm:$0xff] }
   0x8   :  { %164 = vmatpush.msra.mxu0 %v67_v8  ;;  %204 = vmatpush.msra.mxu2 %v69_v11  ;;  %v57_v18 = vld [vmem:[%s865_s1 + $0x150] sm:$0xff]  ;;  %v28_v21 = vld [vmem:[%s865_s1 + $0x68] sm:$0xff]  ;;  %v55_v24 = vld [vmem:[%s865_s1 + $0x140] sm:$0xff] }
   0x9   :  { %182 = vmatpush.msra.mxu1 %v94_v14  ;;  %224 = vmatpush.msra.mxu3 %v70_v13  ;;  %v44_v22 = vld [vmem:[%s865_s1 + $0xe8] sm:$0xff]  ;;  %v15_v25 = vld [vmem:[%s865_s1] sm:$0xff]  ;;  %v110_v27 = vld [vmem:[%s865_s1 + $0x2f8] sm:$0xff] }
   0xa   :  { %165 = vmatpush.msra.mxu0 %v54_v12  ;;  %205 = vmatpush.msra.mxu2 %v56_v15  ;;  %v31_v26 = vld [vmem:[%s865_s1 + $0x80] sm:$0xff]  ;;  %v17_v28 = vld [vmem:[%s865_s1 + $0x10] sm:$0xff]  ;;  %v18_v29 = vld [vmem:[%s865_s1 + $0x18] sm:$0xff] }
   0xb   :  { %183 = vmatpush.msra.mxu1 %v81_v16  ;;  %225 = vmatpush.msra.mxu3 %v57_v18  ;;  %v112_v30 = vld [vmem:[%s865_s1 + $0x308] sm:$0xff]  ;;  %v97_v31 = vld [vmem:[%s865_s1 + $0x290] sm:$0xff]  ;;  %v42_v33 = vld [vmem:[%s865_s1 + $0xd8] sm:$0xff] }
   0xc   :  { %166 = vmatpush.msra.mxu0 %v41_v17  ;;  %206 = vmatpush.msra.mxu2 %v43_v19  ;;  %v113_v32 = vld [vmem:[%s865_s1 + $0x310] sm:$0xff]  ;;  %v99_v34 = vld [vmem:[%s865_s1 + $0x2a0] sm:$0xff]  ;;  %v84_v35 = vld [vmem:[%s865_s1 + $0x228] sm:$0xff] }
   0xd   :  { %184 = vmatpush.msra.mxu1 %v68_v20  ;;  %226 = vmatpush.msra.mxu3 %v44_v22  ;;  %v100_v36 = vld [vmem:[%s865_s1 + $0x2a8] sm:$0xff]  ;;  %v29_v37 = vld [vmem:[%s865_s1 + $0x70] sm:$0xff]  ;;  %v86_v38 = vld [vmem:[%s865_s1 + $0x238] sm:$0xff] }
   0xe   :  { %167 = vmatpush.msra.mxu0 %v28_v21  ;;  %207 = vmatpush.msra.mxu2 %v30_v23  ;;  %v71_v39 = vld [vmem:[%s865_s1 + $0x1c0] sm:$0xff]  ;;  %v16_v41 = vld [vmem:[%s865_s1 + $0x8] sm:$0xff]  ;;  %v58_v43 = vld [vmem:[%s865_s1 + $0x158] sm:$0xff] }
   0xf   :  { %185 = vmatpush.msra.mxu1 %v55_v24  ;;  %227 = vmatpush.msra.mxu3 %v31_v26  ;;  %v87_v40 = vld [vmem:[%s865_s1 + $0x240] sm:$0xff]  ;;  %v73_v45 = vld [vmem:[%s865_s1 + $0x1d0] sm:$0xff]  ;;  %v74_v46 = vld [vmem:[%s865_s1 + $0x1d8] sm:$0xff] }
  0x10   :  { %168 = vmatpush.msra.mxu0 %v15_v25  ;;  %208 = vmatpush.msra.mxu2 %v17_v28  ;;  %v606_v42 = vld [vmem:[%s866_s0] sm:$0xff]  ;;  %v45_v47 = vld [vmem:[%s865_s1 + $0xf0] sm:$0xff]  ;;  %v98_v48 = vld [vmem:[%s865_s1 + $0x298] sm:$0xff] }
  0x11   :  { %228 = vmatpush.msra.mxu3 %v18_v29  ;;  %186 = vmatpush.msra.mxu1 %v42_v33  ;;  %v111_v44 = vld [vmem:[%s865_s1 + $0x300] sm:$0xff]  ;;  %v60_v49 = vld [vmem:[%s865_s1 + $0x168] sm:$0xff]  ;;  %v61_v50 = vld [vmem:[%s865_s1 + $0x170] sm:$0xff] }
  0x12   :  { %241 = vmatpush.msrb.mxu0 %v110_v27  ;;  %281 = vmatpush.msrb.mxu2 %v112_v30  ;;  %v32_v51 = vld [vmem:[%s865_s1 + $0x88] sm:$0xff]  ;;  %v85_v52 = vld [vmem:[%s865_s1 + $0x230] sm:$0xff]  ;;  %v47_v53 = vld [vmem:[%s865_s1 + $0x100] sm:$0xff] }
  0x13   :  { %301 = vmatpush.msrb.mxu3 %v113_v32  ;;  %187 = vmatpush.msra.mxu1 %v29_v37  ;;  %v48_v54 = vld [vmem:[%s865_s1 + $0x108] sm:$0xff]  ;;  %v19_v55 = vld [vmem:[%s865_s1 + $0x20] sm:$0xff]  ;;  %v114_v57 = vld [vmem:[%s865_s1 + $0x318] sm:$0xff] }
  0x14   :  { %242 = vmatpush.msrb.mxu0 %v97_v31  ;;  %282 = vmatpush.msrb.mxu2 %v99_v34  ;;  %v72_v56 = vld [vmem:[%s865_s1 + $0x1c8] sm:$0xff]  ;;  %v34_v58 = vld [vmem:[%s865_s1 + $0x98] sm:$0xff]  ;;  %v35_v59 = vld [vmem:[%s865_s1 + $0xa0] sm:$0xff] }
  0x15   :  { %302 = vmatpush.msrb.mxu3 %v100_v36  ;;  %188 = vmatpush.msra.mxu1 %v16_v41  ;;  %v101_v60 = vld [vmem:[%s865_s1 + $0x2b0] sm:$0xff]  ;;  %v59_v61 = vld [vmem:[%s865_s1 + $0x160] sm:$0xff]  ;;  %v88_v63 = vld [vmem:[%s865_s1 + $0x248] sm:$0xff] }
  0x16   :  { %243 = vmatpush.msrb.mxu0 %v84_v35  ;;  %283 = vmatpush.msrb.mxu2 %v86_v38  ;;  %v21_v62 = vld [vmem:[%s865_s1 + $0x30] sm:$0xff]  ;;  %v22_v0 = vld [vmem:[%s865_s1 + $0x38] sm:$0xff]  ;;  %v116_v1 = vld [vmem:[%s865_s1 + $0x328] sm:$0xff] }
  0x17   :  { %303 = vmatpush.msrb.mxu3 %v87_v40  ;;  %444 = vmatmul.msk.f32.vlgmr.msra.gmra.mxu0 %vm149_vm0, %v606_v42  ;;  %v117_v2 = vld [vmem:[%s865_s1 + $0x330] sm:$0xff]  ;;  %v75_v3 = vld [vmem:[%s865_s1 + $0x1e0] sm:$0xff]  ;;  %v46_v4 = vld [vmem:[%s865_s1 + $0xf8] sm:$0xff] }
  0x18   :  { %244 = vmatpush.msrb.mxu0 %v71_v39  ;;  %261 = vmatpush.msrb.mxu1 %v111_v44  ;;  %v103_v5 = vld [vmem:[%s865_s1 + $0x2c0] sm:$0xff]  ;;  %v104_v6 = vld [vmem:[%s865_s1 + $0x2c8] sm:$0xff]  ;;  %v62_v7 = vld [vmem:[%s865_s1 + $0x178] sm:$0xff] }
  0x19   :  { %284 = vmatpush.msrb.mxu2 %v73_v45  ;;  %304 = vmatpush.msrb.mxu3 %v74_v46  ;;  %v33_v8 = vld [vmem:[%s865_s1 + $0x90] sm:$0xff]  ;;  %v90_v9 = vld [vmem:[%s865_s1 + $0x258] sm:$0xff]  ;;  %v91_v10 = vld [vmem:[%s865_s1 + $0x260] sm:$0xff] }
  0x1a   :  { %245 = vmatpush.msrb.mxu0 %v58_v43  ;;  %262 = vmatpush.msrb.mxu1 %v98_v48  ;;  %v49_v11 = vld [vmem:[%s865_s1 + $0x110] sm:$0xff]  ;;  %v20_v12 = vld [vmem:[%s865_s1 + $0x28] sm:$0xff]  ;;  %v115_v14 = vld [vmem:[%s865_s1 + $0x320] sm:$0xff] }
  0x1b   :  { %285 = vmatpush.msrb.mxu2 %v60_v49  ;;  %305 = vmatpush.msrb.mxu3 %v61_v50  ;;  %v36_v13 = vld [vmem:[%s865_s1 + $0xa8] sm:$0xff]  ;;  %v77_v15 = vld [vmem:[%s865_s1 + $0x1f0] sm:$0xff]  ;;  %v78_v16 = vld [vmem:[%s865_s1 + $0x1f8] sm:$0xff] }
  0x1c   :  { %246 = vmatpush.msrb.mxu0 %v45_v47  ;;  %263 = vmatpush.msrb.mxu1 %v85_v52  ;;  %v23_v17 = vld [vmem:[%s865_s1 + $0x40] sm:$0xff]  ;;  %v118_v18 = vld [vmem:[%s865_s1 + $0x338] sm:$0xff]  ;;  %v64_v20 = vld [vmem:[%s865_s1 + $0x188] sm:$0xff] }
  0x1d   :  { %286 = vmatpush.msrb.mxu2 %v47_v53  ;;  %306 = vmatpush.msrb.mxu3 %v48_v54  ;;  %v102_v19 = vld [vmem:[%s865_s1 + $0x2b8] sm:$0xff]  ;;  %v65_v21 = vld [vmem:[%s865_s1 + $0x190] sm:$0xff]  ;;  %v51_v24 = vld [vmem:[%s865_s1 + $0x120] sm:$0xff] }
  0x1e   :  { %247 = vmatpush.msrb.mxu0 %v32_v51  ;;  %264 = vmatpush.msrb.mxu1 %v72_v56  ;;  %v105_v22 = vld [vmem:[%s865_s1 + $0x2d0] sm:$0xff]  ;;  %v52_v25 = vld [vmem:[%s865_s1 + $0x128] sm:$0xff]  ;;  %v38_v28 = vld [vmem:[%s865_s1 + $0xb8] sm:$0xff] }
  0x1f   :  { %287 = vmatpush.msrb.mxu2 %v34_v58  ;;  %307 = vmatpush.msrb.mxu3 %v35_v59  ;;  %v89_v23 = vld [vmem:[%s865_s1 + $0x250] sm:$0xff]  ;;  %v92_v26 = vld [vmem:[%s865_s1 + $0x268] sm:$0xff]  ;;  %v39_v29 = vld [vmem:[%s865_s1 + $0xc0] sm:$0xff] }
  0x20   :  { %248 = vmatpush.msrb.mxu0 %v19_v55  ;;  %446 = vmatmul.msk.f32.vlgmr.msra.gmra.mxu2 %vm149_vm0, %v606_v42  ;;  %v76_v27 = vld [vmem:[%s865_s1 + $0x1e8] sm:$0xff]  ;;  %v79_v30 = vld [vmem:[%s865_s1 + $0x200] sm:$0xff]  ;;  %v25_v32 = vld [vmem:[%s865_s1 + $0x50] sm:$0xff] }
  0x21   :  { %447 = vmatmul.msk.f32.vlgmr.msra.gmra.mxu3 %vm149_vm0, %v606_v42  ;;  %265 = vmatpush.msrb.mxu1 %v59_v61  ;;  %v63_v31 = vld [vmem:[%s865_s1 + $0x180] sm:$0xff]  ;;  %v26_v33 = vld [vmem:[%s865_s1 + $0x58] sm:$0xff]  ;;  %v53_v36 = vld [vmem:[%s865_s1 + $0x130] sm:$0xff] }
  0x22   :  { %321 = vmatpush.msra.mxu0 %v114_v57  ;;  %288 = vmatpush.msrb.mxu2 %v21_v62  ;;  %v66_v34 = vld [vmem:[%s865_s1 + $0x198] sm:$0xff]  ;;  %v37_v37 = vld [vmem:[%s865_s1 + $0xb0] sm:$0xff]  ;;  %v40_v38 = vld [vmem:[%s865_s1 + $0xc8] sm:$0xff] }
  0x23   :  { %308 = vmatpush.msrb.mxu3 %v22_v0  ;;  %266 = vmatpush.msrb.mxu1 %v46_v4  ;;  %v50_v35 = vld [vmem:[%s865_s1 + $0x118] sm:$0xff]  ;;  %v24_v39 = vld [vmem:[%s865_s1 + $0x48] sm:$0xff]  ;;  %v27_v40 = vld [vmem:[%s865_s1 + $0x60] sm:$0xff] }
  0x24   :  { %322 = vmatpush.msra.mxu0 %v101_v60  ;;  %361 = vmatpush.msra.mxu2 %v116_v1  ;;  %v119_v41 = vld [vmem:[%s867_s2] sm:$0xff]  ;;  %v120_v62 = vld [vmem:[%s867_s2 + $0x8] sm:$0x1f] }
  0x25   :  { %381 = vmatpush.msra.mxu3 %v117_v2  ;;  %267 = vmatpush.msrb.mxu1 %v33_v8  ;;  %v123_v43 = vperm.slane %v119_v41, 0  ;;  %v125_v47 = vperm.slane %v119_v41, 2  ;;  %v126_v48 = vperm.slane %v119_v41, 3  ;;  %v124_v49 = vperm.slane %v119_v41, 1 }
  0x26   :  { %323 = vmatpush.msra.mxu0 %v88_v63  ;;  %362 = vmatpush.msra.mxu2 %v103_v5  ;;  %v127_v53 = vperm.slane %v119_v41, 4  ;;  %v129_v63 = vperm.slane %v119_v41, 6  ;;  %v130_v0 = vperm.slane %v119_v41, 7  ;;  %v128_v1 = vperm.slane %v119_v41, 5 }
  0x27   :  { %382 = vmatpush.msra.mxu3 %v104_v6  ;;  %445 = vmatmul.msk.f32.vlgmr.msra.gmra.mxu1 %vm149_vm0, %v606_v42  ;;  %v131_v2 = vperm.slane %v120_v62, 0 }
  0x28   :  { %324 = vmatpush.msra.mxu0 %v75_v3  ;;  %363 = vmatpush.msra.mxu2 %v90_v9 }
  0x29   :  { %383 = vmatpush.msra.mxu3 %v91_v10  ;;  %448 = vmatmul.msk.f32.vlgmr.msrb.gmra.mxu0 %vm149_vm0, %v606_v42 }
  0x2a   :  { %325 = vmatpush.msra.mxu0 %v62_v7  ;;  %268 = vmatpush.msrb.mxu1 %v20_v12 }
  0x2b   :  { %364 = vmatpush.msra.mxu2 %v77_v15  ;;  %384 = vmatpush.msra.mxu3 %v78_v16  ;;  %v132_v15 = vperm.slane %v120_v62, 1  ;;  %v133_v16 = vperm.slane %v120_v62, 2 }
  0x2c   :  { %326 = vmatpush.msra.mxu0 %v49_v11  ;;  %341 = vmatpush.msra.mxu1 %v115_v14 }
  0x2d   :  { %450 = vmatmul.msk.f32.vlgmr.msrb.gmra.mxu2 %vm149_vm0, %v606_v42  ;;  %451 = vmatmul.msk.f32.vlgmr.msrb.gmra.mxu3 %vm149_vm0, %v606_v42 }
  0x2e   :  { %327 = vmatpush.msra.mxu0 %v36_v13  ;;  %342 = vmatpush.msra.mxu1 %v102_v19 }
  0x2f   :  { %365 = vmatpush.msra.mxu2 %v64_v20  ;;  %385 = vmatpush.msra.mxu3 %v65_v21 }
  0x30   :  { %328 = vmatpush.msra.mxu0 %v23_v17  ;;  %343 = vmatpush.msra.mxu1 %v89_v23  ;;  %v134_v17 = vperm.slane %v120_v62, 3 }
  0x31   :  { %366 = vmatpush.msra.mxu2 %v51_v24  ;;  %386 = vmatpush.msra.mxu3 %v52_v25 }
  0x32   :  { %401 = vmatpush.msrb.mxu0 %v118_v18  ;;  %344 = vmatpush.msra.mxu1 %v76_v27  ;;  %v135_v18 = vperm.slane %v120_v62, 4 }
  0x33   :  { %367 = vmatpush.msra.mxu2 %v38_v28  ;;  %387 = vmatpush.msra.mxu3 %v39_v29 }
  0x34   :  { %402 = vmatpush.msrb.mxu0 %v105_v22  ;;  %449 = vmatmul.msk.f32.vlgmr.msrb.gmra.mxu1 %vm149_vm0, %v606_v42 }
  0x35   :  { %452 = vmatmul.msk.f32.vlgmr.msra.gmra.mxu0 %vm149_vm0, %v606_v42  ;;  %345 = vmatpush.msra.mxu1 %v63_v31 }
  0x36   :  { %403 = vmatpush.msrb.mxu0 %v92_v26  ;;  %368 = vmatpush.msra.mxu2 %v25_v32 }
  0x37   :  { %388 = vmatpush.msra.mxu3 %v26_v33  ;;  %454 = vmatmul.msk.f32.vlgmr.msra.gmra.mxu2 %vm149_vm0, %v606_v42 }
  0x38   :  { %404 = vmatpush.msrb.mxu0 %v79_v30  ;;  %455 = vmatmul.msk.f32.vlgmr.msra.gmra.mxu3 %vm149_vm0, %v606_v42 }
  0x39   :  { %346 = vmatpush.msra.mxu1 %v50_v35 }
  0x3a   :  { %405 = vmatpush.msrb.mxu0 %v66_v34 }
  0x3b   :  { %347 = vmatpush.msra.mxu1 %v37_v37 }
  0x3c   :  { %406 = vmatpush.msrb.mxu0 %v53_v36 }
  0x3d   :  { %348 = vmatpush.msra.mxu1 %v24_v39 }
  0x3e   :  { %407 = vmatpush.msrb.mxu0 %v40_v38  ;;  %453 = vmatmul.msk.f32.vlgmr.msra.gmra.mxu1 %vm149_vm0, %v606_v42 }
  0x40   :  { %408 = vmatpush.msrb.mxu0 %v27_v40 }
  0x41   :  { %456 = vmatmul.msk.f32.vlgmr.msrb.gmra.mxu0 %vm149_vm0, %v606_v42 }
  0x94   :  { %v170_v44 = vpop.f32.mrf.mxu0 }
  0x95   :  { %v171_v45 = vadd.f32 %v170_v44, %v123_v43 }
  0x97   :  { %v413_v46 = vmax.f32 %v171_v45, 0.0 }
  0x99   :  { %426 = vst [vmem:[%s868_s3] sm:$0xff] %v413_v46 }
  0xa3   :  { %v210_v50 = vpop.f32.mrf.mxu2 }
  0xa4   :  { %v211_v51 = vadd.f32 %v210_v50, %v125_v47  ;;  %v230_v52 = vpop.f32.mrf.mxu3  ;;  %v190_v54 = vpop.f32.mrf.mxu1 }
  0xa5   :  { %v231_v42 = vadd.f32 %v230_v52, %v126_v48  ;;  %v191_v56 = vadd.f32 %v190_v54, %v124_v49 }
  0xa6   :  { %v415_v55 = vmax.f32 %v211_v51, 0.0  ;;  %v250_v58 = vpop.f32.mrf.mxu0 }
  0xa7   :  { %v416_v57 = vmax.f32 %v231_v42, 0.0  ;;  %v251_v59 = vadd.f32 %v250_v58, %v127_v53  ;;  %v414_v60 = vmax.f32 %v191_v56, 0.0 }
  0xa8   :  { %428 = vst [vmem:[%s868_s3 + $0x10] sm:$0xff] %v415_v55 }
  0xa9   :  { %429 = vst [vmem:[%s868_s3 + $0x18] sm:$0xff] %v416_v57  ;;  %v417_v61 = vmax.f32 %v251_v59, 0.0 }
  0xaa   :  { %427 = vst [vmem:[%s868_s3 + $0x8] sm:$0xff] %v414_v60 }
  0xab   :  { %430 = vst [vmem:[%s868_s3 + $0x20] sm:$0xff] %v417_v61 }
  0xb0   :  { %v290_v3 = vpop.f32.mrf.mxu2  ;;  %v310_v5 = vpop.f32.mrf.mxu3 }
  0xb1   :  { %v291_v4 = vadd.f32 %v290_v3, %v129_v63  ;;  %v270_v6 = vpop.f32.mrf.mxu1  ;;  %v311_v7 = vadd.f32 %v310_v5, %v130_v0 }
  0xb2   :  { %v330_v8 = vpop.f32.mrf.mxu0  ;;  %v271_v9 = vadd.f32 %v270_v6, %v128_v1 }
  0xb3   :  { %v419_v10 = vmax.f32 %v291_v4, 0.0  ;;  %v331_v11 = vadd.f32 %v330_v8, %v131_v2  ;;  %v420_v12 = vmax.f32 %v311_v7, 0.0 }
  0xb4   :  { %v418_v13 = vmax.f32 %v271_v9, 0.0 }
  0xb5   :  { %432 = vst [vmem:[%s868_s3 + $0x30] sm:$0xff] %v419_v10  ;;  %v421_v14 = vmax.f32 %v331_v11, 0.0 }
  0xb6   :  { %433 = vst [vmem:[%s868_s3 + $0x38] sm:$0xff] %v420_v12 }
  0xb7   :  { %431 = vst [vmem:[%s868_s3 + $0x28] sm:$0xff] %v418_v13 }
  0xb8   :  { %434 = vst [vmem:[%s868_s3 + $0x40] sm:$0xff] %v421_v14 }
  0xba   :  { %v370_v20 = vpop.f32.mrf.mxu2 }
  0xbb   :  { %v350_v19 = vpop.f32.mrf.mxu1  ;;  %v371_v22 = vadd.f32 %v370_v20, %v133_v16  ;;  %v390_v23 = vpop.f32.mrf.mxu3 }
  0xbc   :  { %v351_v21 = vadd.f32 %v350_v19, %v132_v15  ;;  %v391_v25 = vadd.f32 %v390_v23, %v134_v17 }
  0xbd   :  { %v423_v28 = vmax.f32 %v371_v22, 0.0 }
  0xbe   :  { %v410_v24 = vpop.f32.mrf.mxu0  ;;  %v422_v27 = vmax.f32 %v351_v21, 0.0  ;;  %v424_v29 = vmax.f32 %v391_v25, 0.0 }
  0xbf   :  { %v411_v26 = vadd.f32 %v410_v24, %v135_v18  ;;  %436 = vst [vmem:[%s868_s3 + $0x50] sm:$0xff] %v423_v28 }
  0xc0   :  { %435 = vst [vmem:[%s868_s3 + $0x48] sm:$0xff] %v422_v27 }
  0xc1   :  { %v425_v30 = vmax.f32 %v411_v26, 0.0  ;;  %437 = vst [vmem:[%s868_s3 + $0x58] sm:$0xff] %v424_v29 }
  0xc3   :  { %439 = vst.msk [vmem:[%s868_s3 + $0x60] sm:$0xff] %vm438_vm1, %v425_v30 }

// kernel: vae_conv_forward.11
= control target key start
LH: loop header
LB: loop body
LE: loop exit
PB: predicated region body
PF: predicated region fallthrough
CT: control target
= control target key end

     0   :  { %vm81_vm0 = vcmask 523264   ;;  %vm1557_vm4 = vcmask 31744   ;;  %s2670_s1 = inlined_call_operand.vmem [shape: f32[64,128], index: 1, kind: input, shape index: {}]   ;;  %s2671_s2 = inlined_call_operand.vmem [shape: f32[1,128], index: 2, kind: input, shape index: {}]   ;;  %s2672_s0 = inlined_call_operand.vmem [shape: f32[392,64], index: 0, kind: input, shape index: {}]   ;;  %s2673_s3 = inlined_call_operand.vmem [shape: f32[128,4], index: 3, kind: input, shape index: {}]   ;;  %s2674_s4 = inlined_call_operand.vmem [shape: f32[1,4], index: 4, kind: input, shape index: {}]   ;;  %s2675_s5 = inlined_call_operand.vmem [shape: f32[392,4], index: 5, kind: output, shape index: {}]  }
   0x1   :  { %v76_v0 = vld [vmem:[%s2670_s1 + $0x38] sm:$0xff]  ;;  %v75_v1 = vld [vmem:[%s2670_s1 + $0x30] sm:$0xff]  ;;  %v74_v2 = vld [vmem:[%s2670_s1 + $0x28] sm:$0xff] }
   0x2   :  { %237 = vmatpush.msra.mxu0 %v76_v0  ;;  %1709 = vmatpush.msra.mxu3 %v76_v0  ;;  %v73_v3 = vld [vmem:[%s2670_s1 + $0x20] sm:$0xff]  ;;  %v72_v4 = vld [vmem:[%s2670_s1 + $0x18] sm:$0xff]  ;;  %v71_v5 = vld [vmem:[%s2670_s1 + $0x10] sm:$0xff] }
   0x3   :  { %v70_v6 = vld [vmem:[%s2670_s1 + $0x8] sm:$0xff]  ;;  %v69_v7 = vld [vmem:[%s2670_s1] sm:$0xff]  ;;  %v22_v10 = vld [vmem:[%s2672_s0 + $0x10] sm:$0xff] }
   0x4   :  { %238 = vmatpush.msra.mxu0 %v75_v1  ;;  %1710 = vmatpush.msra.mxu3 %v75_v1  ;;  %v20_v8 = vld [vmem:[%s2672_s0] sm:$0xff]  ;;  %v21_v9 = vld [vmem:[%s2672_s0 + $0x8] sm:$0xff]  ;;  %v23_v11 = vld [vmem:[%s2672_s0 + $0x18] sm:$0xff] }
   0x5   :  { %v24_v12 = vld [vmem:[%s2672_s0 + $0x20] sm:$0xff]  ;;  %v25_v13 = vld [vmem:[%s2672_s0 + $0x28] sm:$0xff]  ;;  %v26_v14 = vld [vmem:[%s2672_s0 + $0x30] sm:$0xff] }
   0x6   :  { %239 = vmatpush.msra.mxu0 %v74_v2  ;;  %1711 = vmatpush.msra.mxu3 %v74_v2  ;;  %v27_v15 = vld [vmem:[%s2672_s0 + $0x38] sm:$0xff]  ;;  %v28_v16 = vld [vmem:[%s2672_s0 + $0x40] sm:$0xff]  ;;  %v456_v18 = vld [vmem:[%s2673_s3 + $0x70] sm:$0xff] }
   0x7   :  { %v457_v17 = vld [vmem:[%s2673_s3 + $0x78] sm:$0xff]  ;;  %v455_v19 = vld [vmem:[%s2673_s3 + $0x68] sm:$0xff]  ;;  %v454_v21 = vld [vmem:[%s2673_s3 + $0x60] sm:$0xff] }
   0x8   :  { %240 = vmatpush.msra.mxu0 %v73_v3  ;;  %1712 = vmatpush.msra.mxu3 %v73_v3  ;;  %v29_v20 = vld [vmem:[%s2672_s0 + $0x48] sm:$0xff]  ;;  %v453_v22 = vld [vmem:[%s2673_s3 + $0x58] sm:$0xff]  ;;  %v452_v23 = vld [vmem:[%s2673_s3 + $0x50] sm:$0xff] }
   0x9   :  { %462 = vmatpush.msra.mxu1 %v457_v17  ;;  %1717 = vmatpush.msra.mxu2 %v457_v17  ;;  %v451_v24 = vld [vmem:[%s2673_s3 + $0x48] sm:$0xff]  ;;  %v30_v25 = vld [vmem:[%s2672_s0 + $0x50] sm:$0xff]  ;;  %v450_v26 = vld [vmem:[%s2673_s3 + $0x40] sm:$0xff] }
   0xa   :  { %241 = vmatpush.msra.mxu0 %v72_v4  ;;  %1713 = vmatpush.msra.mxu3 %v72_v4  ;;  %v449_v27 = vld [vmem:[%s2673_s3 + $0x38] sm:$0xff]  ;;  %v448_v28 = vld [vmem:[%s2673_s3 + $0x30] sm:$0xff]  ;;  %v447_v29 = vld [vmem:[%s2673_s3 + $0x28] sm:$0xff] }
   0xb   :  { %463 = vmatpush.msra.mxu1 %v456_v18  ;;  %1719 = vmatpush.msra.mxu2 %v456_v18  ;;  %v31_v30 = vld [vmem:[%s2672_s0 + $0x58] sm:$0xff]  ;;  %v446_v31 = vld [vmem:[%s2673_s3 + $0x20] sm:$0xff]  ;;  %v444_v33 = vld [vmem:[%s2673_s3 + $0x10] sm:$0xff] }
   0xc   :  { %242 = vmatpush.msra.mxu0 %v71_v5  ;;  %1714 = vmatpush.msra.mxu3 %v71_v5  ;;  %v445_v32 = vld [vmem:[%s2673_s3 + $0x18] sm:$0xff]  ;;  %v32_v34 = vld [vmem:[%s2672_s0 + $0x60] sm:$0xff]  ;;  %v443_v35 = vld [vmem:[%s2673_s3 + $0x8] sm:$0xff] }
   0xd   :  { %464 = vmatpush.msra.mxu1 %v455_v19  ;;  %1721 = vmatpush.msra.mxu2 %v455_v19  ;;  %v442_v36 = vld [vmem:[%s2673_s3] sm:$0xff]  ;;  %v33_v37 = vld [vmem:[%s2672_s0 + $0x68] sm:$0xff]  ;;  %v34_v38 = vld [vmem:[%s2672_s0 + $0x70] sm:$0xff] }
   0xe   :  { %243 = vmatpush.msra.mxu0 %v70_v6  ;;  %1715 = vmatpush.msra.mxu3 %v70_v6  ;;  %v35_v39 = vld [vmem:[%s2672_s0 + $0x78] sm:$0xff]  ;;  %v2119_v40 = vld [vmem:[%s2671_s2] ss:$0 sm:$0xff]  ;;  %v37_v46 = vld [vmem:[%s2672_s0 + $0x88] sm:$0xff] }
   0xf   :  { %465 = vmatpush.msra.mxu1 %v454_v21  ;;  %1723 = vmatpush.msra.mxu2 %v454_v21  ;;  %v36_v42 = vld [vmem:[%s2672_s0 + $0x80] sm:$0xff]  ;;  %v46_v49 = vld [vmem:[%s2672_s0 + $0xd0] sm:$0xff]  ;;  %v47_v54 = vld [vmem:[%s2672_s0 + $0xd8] sm:$0xff] }
  0x10   :  { %244 = vmatpush.msra.mxu0 %v69_v7  ;;  %1716 = vmatpush.msra.mxu3 %v69_v7  ;;  %v38_v51 = vld [vmem:[%s2672_s0 + $0x90] sm:$0xff]  ;;  %v39_v56 = vld [vmem:[%s2672_s0 + $0x98] sm:$0xff]  ;;  %v48_v59 = vld [vmem:[%s2672_s0 + $0xe0] sm:$0xff] }
  0x11   :  { %1611 = vmatmul.msk.f32.vlgmr.msra.gmra.mxu0 %vm81_vm0, %v20_v8  ;;  %466 = vmatpush.msra.mxu1 %v453_v22  ;;  %v40_v61 = vld [vmem:[%s2672_s0 + $0xa0] sm:$0xff]  ;;  %v49_v0 = vld [vmem:[%s2672_s0 + $0xe8] sm:$0xff]  ;;  %v50_v5 = vld [vmem:[%s2672_s0 + $0xf0] sm:$0xff] }
  0x12   :  { %1718 = vmatpush.msrb.mxu3 %v457_v17  ;;  %1725 = vmatpush.msra.mxu2 %v453_v22  ;;  %v41_v2 = vld [vmem:[%s2672_s0 + $0xa8] sm:$0xff]  ;;  %v42_v7 = vld [vmem:[%s2672_s0 + $0xb0] sm:$0xff]  ;;  %v44_v17 = vld [vmem:[%s2672_s0 + $0xc0] sm:$0xff] }
  0x13   :  { %467 = vmatpush.msra.mxu1 %v452_v23  ;;  %1637 = vmatmul.msk.f32.vlgmr.msra.gmra.mxu3 %vm81_vm0, %v46_v49 }
  0x14   :  { %1720 = vmatpush.msrb.mxu3 %v456_v18  ;;  %1727 = vmatpush.msra.mxu2 %v452_v23 }
  0x15   :  { %468 = vmatpush.msra.mxu1 %v451_v24 }
  0x16   :  { %1722 = vmatpush.msrb.mxu3 %v455_v19  ;;  %1729 = vmatpush.msra.mxu2 %v451_v24 }
  0x17   :  { %469 = vmatpush.msra.mxu1 %v450_v26 }
  0x18   :  { %1724 = vmatpush.msrb.mxu3 %v454_v21  ;;  %1731 = vmatpush.msra.mxu2 %v450_v26 }
  0x19   :  { %1612 = vmatmul.msk.f32.gmra.mxu0 %vm81_vm0, %v21_v9  ;;  %470 = vmatpush.msra.mxu1 %v449_v27 }
  0x1a   :  { %1726 = vmatpush.msrb.mxu3 %v453_v22  ;;  %1733 = vmatpush.msra.mxu2 %v449_v27  ;;  %v45_v22 = vld [vmem:[%s2672_s0 + $0xc8] sm:$0xff] }
  0x1b   :  { %471 = vmatpush.msra.mxu1 %v448_v28  ;;  %1638 = vmatmul.msk.f32.gmra.mxu3 %vm81_vm0, %v47_v54 }
  0x1c   :  { %1728 = vmatpush.msrb.mxu3 %v452_v23  ;;  %1735 = vmatpush.msra.mxu2 %v448_v28 }
  0x1d   :  { %472 = vmatpush.msra.mxu1 %v447_v29 }
  0x1e   :  { %1730 = vmatpush.msrb.mxu3 %v451_v24  ;;  %1737 = vmatpush.msra.mxu2 %v447_v29 }
  0x1f   :  { %473 = vmatpush.msra.mxu1 %v446_v31 }
  0x20   :  { %1732 = vmatpush.msrb.mxu3 %v450_v26  ;;  %1739 = vmatpush.msra.mxu2 %v446_v31 }
  0x21   :  { %1613 = vmatmul.msk.f32.gmra.mxu0 %vm81_vm0, %v22_v10  ;;  %474 = vmatpush.msra.mxu1 %v445_v32  ;;  %v51_v10 = vld [vmem:[%s2672_s0 + $0xf8] sm:$0xff] }
  0x22   :  { %1734 = vmatpush.msrb.mxu3 %v449_v27  ;;  %1741 = vmatpush.msra.mxu2 %v445_v32 }
  0x23   :  { %475 = vmatpush.msra.mxu1 %v444_v33  ;;  %1639 = vmatmul.msk.f32.gmra.mxu3 %vm81_vm0, %v48_v59  ;;  %v61_v59 = vld [vmem:[%s2672_s0 + $0x148] sm:$0xff] }
  0x24   :  { %1736 = vmatpush.msrb.mxu3 %v448_v28  ;;  %1743 = vmatpush.msra.mxu2 %v444_v33 }
  0x25   :  { %476 = vmatpush.msra.mxu1 %v443_v35 }
  0x26   :  { %1738 = vmatpush.msrb.mxu3 %v447_v29  ;;  %1745 = vmatpush.msra.mxu2 %v443_v35  ;;  %v55_v29 = vld [vmem:[%s2672_s0 + $0x118] sm:$0xff] }
  0x27   :  { %477 = vmatpush.msra.mxu1 %v442_v36 }
  0x28   :  { %1740 = vmatpush.msrb.mxu3 %v446_v31  ;;  %1747 = vmatpush.msra.mxu2 %v442_v36 }
  0x29   :  { %1614 = vmatmul.msk.f32.gmra.mxu0 %vm81_vm0, %v23_v11 }
  0x2a   :  { %1742 = vmatpush.msrb.mxu3 %v445_v32 }
  0x2b   :  { %1640 = vmatmul.msk.f32.gmra.mxu3 %vm81_vm0, %v49_v0 }
  0x2c   :  { %1744 = vmatpush.msrb.mxu3 %v444_v33  ;;  %v56_v33 = vld [vmem:[%s2672_s0 + $0x120] sm:$0xff] }
  0x2e   :  { %1746 = vmatpush.msrb.mxu3 %v443_v35 }
  0x30   :  { %1748 = vmatpush.msrb.mxu3 %v442_v36 }
  0x31   :  { %1615 = vmatmul.msk.f32.gmra.mxu0 %vm81_vm0, %v24_v12  ;;  %v43_v12 = vld [vmem:[%s2672_s0 + $0xb8] sm:$0xff] }
  0x33   :  { %1641 = vmatmul.msk.f32.gmra.mxu3 %vm81_vm0, %v50_v5 }
  0x39   :  { %1616 = vmatmul.msk.f32.gmra.mxu0 %vm81_vm0, %v25_v13 }
  0x3b   :  { %1642 = vmatmul.msk.f32.gmra.mxu3 %vm81_vm0, %v51_v10 }
  0x41   :  { %1617 = vmatmul.msk.f32.gmra.mxu0 %vm81_vm0, %v26_v14 }
  0x49   :  { %1618 = vmatmul.msk.f32.gmra.mxu0 %vm81_vm0, %v27_v15  ;;  %v52_v15 = vld [vmem:[%s2672_s0 + $0x100] sm:$0xff] }
  0x4a   :  { %1643 = vmatmul.msk.f32.gmra.mxu3 %vm81_vm0, %v52_v15 }
  0x51   :  { %1619 = vmatmul.msk.f32.gmra.mxu0 %vm81_vm0, %v28_v16 }
  0x59   :  { %1620 = vmatmul.msk.f32.gmra.mxu0 %vm81_vm0, %v29_v20  ;;  %v53_v20 = vld [vmem:[%s2672_s0 + $0x108] sm:$0xff] }
  0x5a   :  { %1644 = vmatmul.msk.f32.gmra.mxu3 %vm81_vm0, %v53_v20 }
  0x61   :  { %1621 = vmatmul.msk.f32.gmra.mxu0 %vm81_vm0, %v30_v25  ;;  %v54_v25 = vld [vmem:[%s2672_s0 + $0x110] sm:$0xff] }
  0x62   :  { %1645 = vmatmul.msk.f32.gmra.mxu3 %vm81_vm0, %v54_v25 }
  0x69   :  { %1622 = vmatmul.msk.f32.gmra.mxu0 %vm81_vm0, %v31_v30 }
  0x6a   :  { %1646 = vmatmul.msk.f32.gmra.mxu3 %vm81_vm0, %v55_v29 }
  0x71   :  { %1623 = vmatmul.msk.f32.gmra.mxu0 %vm81_vm0, %v32_v34 }
  0x72   :  { %1647 = vmatmul.msk.f32.gmra.mxu3 %vm81_vm0, %v56_v33 }
  0x79   :  { %1624 = vmatmul.msk.f32.gmra.mxu0 %vm81_vm0, %v33_v37  ;;  %v57_v37 = vld [vmem:[%s2672_s0 + $0x128] sm:$0xff] }
  0x7a   :  { %1648 = vmatmul.msk.f32.gmra.mxu3 %vm81_vm0, %v57_v37 }
  0x81   :  { %1625 = vmatmul.msk.f32.gmra.mxu0 %vm81_vm0, %v34_v38 }
  0x89   :  { %1626 = vmatmul.msk.f32.gmra.mxu0 %vm81_vm0, %v35_v39 }
  0x8e   :  { %v246_v41 = vpop.f32.mrf.mxu0 }
  0x8f   :  { %v247_v43 = vadd.f32 %v2119_v40, %v246_v41 }
  0x91   :  { %1627 = vmatmul.msk.f32.gmra.mxu0 %vm81_vm0, %v36_v42  ;;  %v393_v44 = vmax.f32 %v247_v43, 0.0  ;;  %v58_v42 = vld [vmem:[%s2672_s0 + $0x130] sm:$0xff] }
  0x92   :  { %1649 = vmatmul.msk.f32.gmra.mxu3 %vm81_vm0, %v58_v42 }
  0x93   :  { %478 = vmatmul.f32.vlgmr.msra.gmra.mxu1 %v393_v44 }
  0x96   :  { %v249_v45 = vpop.f32.mrf.mxu0 }
  0x97   :  { %v250_v47 = vadd.f32 %v2119_v40, %v249_v45 }
  0x99   :  { %1628 = vmatmul.msk.f32.gmra.mxu0 %vm81_vm0, %v37_v46  ;;  %v394_v48 = vmax.f32 %v250_v47, 0.0  ;;  %v59_v47 = vld [vmem:[%s2672_s0 + $0x138] sm:$0xff] }
  0x9a   :  { %1650 = vmatmul.msk.f32.gmra.mxu3 %vm81_vm0, %v59_v47 }
  0x9b   :  { %481 = vmatmul.f32.gmra.mxu1 %v394_v48 }
  0x9e   :  { %v252_v50 = vpop.f32.mrf.mxu0 }
  0x9f   :  { %v253_v52 = vadd.f32 %v2119_v40, %v252_v50  ;;  %v2236_v50 = vld [vmem:[%s2674_s4] ss:$0 sm:$0xff] }
  0xa1   :  { %v395_v53 = vmax.f32 %v253_v52, 0.0  ;;  %1629 = vmatmul.msk.f32.gmra.mxu0 %vm81_vm0, %v38_v51  ;;  %v60_v52 = vld [vmem:[%s2672_s0 + $0x140] sm:$0xff] }
  0xa2   :  { %1651 = vmatmul.msk.f32.gmra.mxu3 %vm81_vm0, %v60_v52 }
  0xa3   :  { %484 = vmatmul.f32.gmra.mxu1 %v395_v53 }
  0xa6   :  { %v255_v55 = vpop.f32.mrf.mxu0 }
  0xa7   :  { %v256_v57 = vadd.f32 %v2119_v40, %v255_v55 }
  0xa9   :  { %v396_v58 = vmax.f32 %v256_v57, 0.0  ;;  %1630 = vmatmul.msk.f32.gmra.mxu0 %vm81_vm0, %v39_v56 }
  0xaa   :  { %1652 = vmatmul.msk.f32.gmra.mxu3 %vm81_vm0, %v61_v59 }
  0xab   :  { %487 = vmatmul.f32.gmra.mxu1 %v396_v58 }
  0xae   :  { %v258_v60 = vpop.f32.mrf.mxu0 }
  0xaf   :  { %v259_v62 = vadd.f32 %v2119_v40, %v258_v60 }
  0xb1   :  { %v397_v63 = vmax.f32 %v259_v62, 0.0  ;;  %1631 = vmatmul.msk.f32.gmra.mxu0 %vm81_vm0, %v40_v61 }
  0xb3   :  { %490 = vmatmul.f32.gmra.mxu1 %v397_v63 }
  0xb6   :  { %v261_v1 = vpop.f32.mrf.mxu0 }
  0xb7   :  { %v262_v3 = vadd.f32 %v2119_v40, %v261_v1 }
  0xb9   :  { %v398_v4 = vmax.f32 %v262_v3, 0.0  ;;  %1632 = vmatmul.msk.f32.gmra.mxu0 %vm81_vm0, %v41_v2 }
  0xbb   :  { %493 = vmatmul.f32.gmra.mxu1 %v398_v4  ;;  %v62_v4 = vld [vmem:[%s2672_s0 + $0x150] sm:$0xff] }
  0xbc   :  { %1653 = vmatmul.msk.f32.gmra.mxu3 %vm81_vm0, %v62_v4 }
  0xbe   :  { %v264_v6 = vpop.f32.mrf.mxu0 }
  0xbf   :  { %v265_v8 = vadd.f32 %v2119_v40, %v264_v6 }
  0xc1   :  { %v399_v9 = vmax.f32 %v265_v8, 0.0  ;;  %1633 = vmatmul.msk.f32.gmra.mxu0 %vm81_vm0, %v42_v7 }
  0xc3   :  { %496 = vmatmul.f32.gmra.mxu1 %v399_v9  ;;  %v2256_v9 = vpop.f32.mrf.mxu3 }
  0xc6   :  { %v267_v11 = vpop.f32.mrf.mxu0 }
  0xc7   :  { %v268_v13 = vadd.f32 %v2119_v40, %v267_v11 }
  0xc9   :  { %v400_v14 = vmax.f32 %v268_v13, 0.0  ;;  %1634 = vmatmul.msk.f32.gmra.mxu0 %vm81_vm0, %v43_v12 }
  0xcb   :  { %499 = vmatmul.f32.gmra.mxu1 %v400_v14  ;;  %v2264_v25 = vpop.f32.mrf.mxu3 }
  0xce   :  { %v270_v16 = vpop.f32.mrf.mxu0 }
  0xcf   :  { %v271_v18 = vadd.f32 %v2119_v40, %v270_v16  ;;  %v63_v16 = vld [vmem:[%s2672_s0 + $0x158] sm:$0xff] }
  0xd0   :  { %1654 = vmatmul.msk.f32.gmra.mxu3 %vm81_vm0, %v63_v16 }
  0xd1   :  { %v401_v19 = vmax.f32 %v271_v18, 0.0  ;;  %1635 = vmatmul.msk.f32.gmra.mxu0 %vm81_vm0, %v44_v17 }
  0xd3   :  { %502 = vmatmul.f32.gmra.mxu1 %v401_v19 }
  0xd6   :  { %v273_v21 = vpop.f32.mrf.mxu0 }
  0xd7   :  { %v274_v23 = vadd.f32 %v2119_v40, %v273_v21 }
  0xd9   :  { %v402_v24 = vmax.f32 %v274_v23, 0.0  ;;  %1636 = vmatmul.msk.f32.gmra.mxu0 %vm81_vm0, %v45_v22 }
  0xdb   :  { %505 = vmatmul.f32.gmra.mxu1 %v402_v24 }
  0xde   :  { %v276_v26 = vpop.f32.mrf.mxu0 }
  0xdf   :  { %v277_v27 = vadd.f32 %v2119_v40, %v276_v26 }
  0xe1   :  { %v403_v28 = vmax.f32 %v277_v27, 0.0 }
  0xe3   :  { %508 = vmatmul.f32.gmra.mxu1 %v403_v28 }
  0xe6   :  { %v279_v30 = vpop.f32.mrf.mxu0 }
  0xe7   :  { %v280_v31 = vadd.f32 %v2119_v40, %v279_v30 }
  0xe9   :  { %v404_v32 = vmax.f32 %v280_v31, 0.0 }
  0xeb   :  { %511 = vmatmul.f32.gmra.mxu1 %v404_v32 }
  0xee   :  { %v282_v34 = vpop.f32.mrf.mxu0 }
  0xef   :  { %v283_v35 = vadd.f32 %v2119_v40, %v282_v34 }
  0xf1   :  { %v405_v36 = vmax.f32 %v283_v35, 0.0 }
  0xf3   :  { %514 = vmatmul.f32.gmra.mxu1 %v405_v36  ;;  %v64_v36 = vld [vmem:[%s2672_s0 + $0x160] sm:$0xff] }
  0xf4   :  { %1655 = vmatmul.msk.f32.gmra.mxu3 %vm81_vm0, %v64_v36  ;;  %v67_v36 = vld [vmem:[%s2672_s0 + $0x178] sm:$0xff] }
  0xf6   :  { %v285_v38 = vpop.f32.mrf.mxu0 }
  0xf7   :  { %v286_v39 = vadd.f32 %v2119_v40, %v285_v38 }
  0xf9   :  { %v406_v41 = vmax.f32 %v286_v39, 0.0 }
  0xfb   :  { %517 = vmatmul.f32.gmra.mxu1 %v406_v41 }
  0xfe   :  { %v288_v43 = vpop.f32.mrf.mxu0 }
  0xff   :  { %v289_v44 = vadd.f32 %v2119_v40, %v288_v43 }
 0x101   :  { %v407_v45 = vmax.f32 %v289_v44, 0.0 }
 0x103   :  { %520 = vmatmul.f32.gmra.mxu1 %v407_v45 }
 0x106   :  { %v291_v46 = vpop.f32.mrf.mxu0 }
 0x107   :  { %v292_v48 = vadd.f32 %v2119_v40, %v291_v46  ;;  %v2276_v46 = vpop.f32.mrf.mxu3 }
 0x109   :  { %v408_v49 = vmax.f32 %v292_v48, 0.0 }
 0x10b   :  { %523 = vmatmul.f32.gmra.mxu1 %v408_v49 }
 0x10e   :  { %v294_v51 = vpop.f32.mrf.mxu0 }
 0x10f   :  { %v295_v53 = vadd.f32 %v2119_v40, %v294_v51 }
 0x110   :  { %v479_v54 = vpop.f32.mrf.mxu1 }
 0x111   :  { %v409_v55 = vmax.f32 %v295_v53, 0.0  ;;  %v480_v56 = vadd.f32 %v2236_v50, %v479_v54 }
 0x113   :  { %v1660_v57 = vmul.f32 -1.442695, %v480_v56  ;;  %526 = vmatmul.f32.gmra.mxu1 %v409_v55 }
 0x115   :  { %1751 = vpow2.f32 %v1660_v57 }
 0x116   :  { %v297_v58 = vpop.f32.mrf.mxu0 }
 0x117   :  { %v298_v60 = vadd.f32 %v2119_v40, %v297_v58  ;;  %v65_v58 = vld [vmem:[%s2672_s0 + $0x168] sm:$0xff] }
 0x118   :  { %v482_v61 = vpop.f32.mrf.mxu1  ;;  %1656 = vmatmul.msk.f32.gmra.mxu3 %vm81_vm0, %v65_v58 }
 0x119   :  { %v410_v62 = vmax.f32 %v298_v60, 0.0  ;;  %v483_v63 = vadd.f32 %v2236_v50, %v482_v61 }
 0x11b   :  { %v1752_v0 = vpop.eup %1751  ;;  %v1661_v1 = vmul.f32 -1.442695, %v483_v63  ;;  %529 = vmatmul.f32.gmra.mxu1 %v410_v62 }
 0x11c   :  { %v773_v2 = vadd.f32 1.0, %v1752_v0 }
 0x11d   :  { %1753 = vpow2.f32 %v1661_v1 }
 0x11e   :  { %1755 = vrcp.f32 %v773_v2  ;;  %v300_v3 = vpop.f32.mrf.mxu0  ;;  %v831_v19 = vand.u32 2147483647, %v773_v2  ;;  %v833_v20 = vand.u32 2147483648, %v773_v2  ;;  %vm827_vm2 = vweird.f32 %v773_v2 }
 0x11f   :  { %v301_v5 = vadd.f32 %v2119_v40, %v300_v3  ;;  %v2288_v3 = vpop.f32.mrf.mxu3 }
 0x120   :  { %v485_v6 = vpop.f32.mrf.mxu1  ;;  %v834_v30 = vor.u32 1.1754944e-38, %v833_v20  ;;  %vm832_vm5 = vcmp.eq.f32.partialorder %v831_v19, 8.507059e+37 }
 0x121   :  { %v411_v7 = vmax.f32 %v301_v5, 0.0  ;;  %v486_v8 = vadd.f32 %v2236_v50, %v485_v6 }
 0x123   :  { %v1754_v10 = vpop.eup %1753  ;;  %v1662_v11 = vmul.f32 -1.442695, %v486_v8  ;;  %532 = vmatmul.f32.gmra.mxu1 %v411_v7 }
 0x124   :  { %v1756_v12 = vpop.eup %1755  ;;  %v774_v13 = vadd.f32 1.0, %v1754_v10 }
 0x125   :  { %v823_v14 = vmul.f32 %v1756_v12, %v773_v2  ;;  %1757 = vpow2.f32 %v1662_v11  ;;  %vm828_vm1 = vweird.f32 %v1756_v12 }
 0x126   :  { %1759 = vrcp.f32 %v774_v13  ;;  %v303_v15 = vpop.f32.mrf.mxu0  ;;  %vm829_vm3 = vmor %vm827_vm2, %vm828_vm1  ;;  %v846_v39 = vand.u32 2147483647, %v774_v13  ;;  %v848_v41 = vand.u32 2147483648, %v774_v13  ;;  %vm842_vm7 = vweird.f32 %v774_v13 }
 0x127   :  { %v824_v17 = vsub.f32 1.0, %v823_v14  ;;  %v304_v18 = vadd.f32 %v2119_v40, %v303_v15  ;;  %v66_v15 = vld [vmem:[%s2672_s0 + $0x170] sm:$0xff] }
 0x128   :  { %v488_v21 = vpop.f32.mrf.mxu1  ;;  %v849_v52 = vor.u32 1.1754944e-38, %v848_v41  ;;  %vm847_vm9 = vcmp.eq.f32.partialorder %v846_v39, 8.507059e+37  ;;  %1657 = vmatmul.msk.f32.gmra.mxu3 %vm81_vm0, %v66_v15 }
 0x129   :  { %v825_v22 = vmul.f32 %v1756_v12, %v824_v17  ;;  %v412_v23 = vmax.f32 %v304_v18, 0.0  ;;  %v489_v24 = vadd.f32 %v2236_v50, %v488_v21 }
 0x12b   :  { %v1758_v26 = vpop.eup %1757  ;;  %v826_v27 = vadd.f32 %v1756_v12, %v825_v22  ;;  %v1663_v28 = vmul.f32 -1.442695, %v489_v24  ;;  %535 = vmatmul.f32.gmra.mxu1 %v412_v23  ;;  %v2300_v24 = vpop.f32.mrf.mxu3 }
 0x12c   :  { %v1760_v29 = vpop.eup %1759  ;;  %v775_v31 = vadd.f32 1.0, %v1758_v26 }
 0x12d   :  { %v830_v32 = vsel %vm829_vm3, %v1756_v12, %v826_v27  ;;  %v838_v33 = vmul.f32 %v1760_v29, %v774_v13  ;;  %1761 = vpow2.f32 %v1663_v28  ;;  %vm843_vm6 = vweird.f32 %v1760_v29 }
 0x12e   :  { %v835_v34 = vsel %vm832_vm5, %v834_v30, %v830_v32  ;;  %1763 = vrcp.f32 %v775_v31  ;;  %v306_v35 = vpop.f32.mrf.mxu0  ;;  %vm844_vm8 = vmor %vm842_vm7, %vm843_vm6  ;;  %v861_v61 = vand.u32 2147483647, %v775_v31  ;;  %v863_v62 = vand.u32 2147483648, %v775_v31 }
 0x12f   :  { %1558 = vst.msk [vmem:[%s2675_s5] sm:$0xff] %vm1557_vm4, %v835_v34  ;;  %v839_v37 = vsub.f32 1.0, %v838_v33  ;;  %v307_v38 = vadd.f32 %v2119_v40, %v306_v35  ;;  %vm857_vm11 = vweird.f32 %v775_v31 }
 0x130   :  { %v491_v42 = vpop.f32.mrf.mxu1  ;;  %v864_v8 = vor.u32 1.1754944e-38, %v863_v62  ;;  %vm862_vm13 = vcmp.eq.f32.partialorder %v861_v61, 8.507059e+37  ;;  %1658 = vmatmul.msk.f32.gmra.mxu3 %vm81_vm0, %v67_v36 }
 0x131   :  { %v840_v43 = vmul.f32 %v1760_v29, %v839_v37  ;;  %v413_v44 = vmax.f32 %v307_v38, 0.0  ;;  %v492_v45 = vadd.f32 %v2236_v50, %v491_v42 }
 0x133   :  { %v1762_v47 = vpop.eup %1761  ;;  %v841_v48 = vadd.f32 %v1760_v29, %v840_v43  ;;  %v1664_v49 = vmul.f32 -1.442695, %v492_v45  ;;  %538 = vmatmul.f32.gmra.mxu1 %v413_v44 }
 0x134   :  { %v1764_v51 = vpop.eup %1763  ;;  %v776_v53 = vadd.f32 1.0, %v1762_v47  ;;  %v2312_v47 = vpop.f32.mrf.mxu3 }
 0x135   :  { %v845_v54 = vsel %vm844_vm8, %v1760_v29, %v841_v48  ;;  %v853_v55 = vmul.f32 %v1764_v51, %v775_v31  ;;  %1765 = vpow2.f32 %v1664_v49  ;;  %vm858_vm10 = vweird.f32 %v1764_v51 }
 0x136   :  { %v850_v56 = vsel %vm847_vm9, %v849_v52, %v845_v54  ;;  %1767 = vrcp.f32 %v776_v53  ;;  %v309_v57 = vpop.f32.mrf.mxu0  ;;  %vm859_vm12 = vmor %vm857_vm11, %vm858_vm10  ;;  %v876_v18 = vand.u32 2147483647, %v776_v53  ;;  %v878_v19 = vand.u32 2147483648, %v776_v53 }
 0x137   :  { %1559 = vst.msk [vmem:[%s2675_s5 + $0x8] sm:$0xff] %vm1557_vm4, %v850_v56  ;;  %v854_v59 = vsub.f32 1.0, %v853_v55  ;;  %v310_v60 = vadd.f32 %v2119_v40, %v309_v57  ;;  %vm872_vm15 = vweird.f32 %v776_v53 }
 0x138   :  { %v494_v63 = vpop.f32.mrf.mxu1  ;;  %v879_v30 = vor.u32 1.1754944e-38, %v878_v19  ;;  %vm877_vm2 = vcmp.eq.f32.partialorder %v876_v18, 8.507059e+37 }
 0x139   :  { %v855_v0 = vmul.f32 %v1764_v51, %v854_v59  ;;  %v414_v1 = vmax.f32 %v310_v60, 0.0  ;;  %v495_v2 = vadd.f32 %v2236_v50, %v494_v63  ;;  %v68_v59 = vld [vmem:[%s2672_s0 + $0x180] sm:$0xff] }
 0x13a   :  { %1659 = vmatmul.msk.f32.gmra.mxu3 %vm81_vm0, %v68_v59 }
 0x13b   :  { %v1766_v4 = vpop.eup %1765  ;;  %v856_v5 = vadd.f32 %v1764_v51, %v855_v0  ;;  %v1665_v6 = vmul.f32 -1.442695, %v495_v2  ;;  %541 = vmatmul.f32.gmra.mxu1 %v414_v1 }
 0x13c   :  { %v1768_v7 = vpop.eup %1767  ;;  %v777_v10 = vadd.f32 1.0, %v1766_v4 }
 0x13d   :  { %v860_v11 = vsel %vm859_vm12, %v1764_v51, %v856_v5  ;;  %v868_v12 = vmul.f32 %v1768_v7, %v776_v53  ;;  %1769 = vpow2.f32 %v1665_v6  ;;  %vm873_vm14 = vweird.f32 %v1768_v7  ;;  %v2324_v5 = vpop.f32.mrf.mxu3 }
 0x13e   :  { %v865_v13 = vsel %vm862_vm13, %v864_v8, %v860_v11  ;;  %1771 = vrcp.f32 %v777_v10  ;;  %v312_v14 = vpop.f32.mrf.mxu0  ;;  %vm874_vm1 = vmor %vm872_vm15, %vm873_vm14  ;;  %v891_v39 = vand.u32 2147483647, %v777_v10  ;;  %v893_v41 = vand.u32 2147483648, %v777_v10 }
 0x13f   :  { %1560 = vst.msk [vmem:[%s2675_s5 + $0x10] sm:$0xff] %vm1557_vm4, %v865_v13  ;;  %v869_v16 = vsub.f32 1.0, %v868_v12  ;;  %v313_v17 = vadd.f32 %v2119_v40, %v312_v14  ;;  %vm887_vm5 = vweird.f32 %v777_v10 }
 0x140   :  { %v497_v20 = vpop.f32.mrf.mxu1  ;;  %v894_v53 = vor.u32 1.1754944e-38, %v893_v41  ;;  %vm892_vm7 = vcmp.eq.f32.partialorder %v891_v39, 8.507059e+37 }
 0x141   :  { %v870_v21 = vmul.f32 %v1768_v7, %v869_v16  ;;  %v415_v22 = vmax.f32 %v313_v17, 0.0  ;;  %v498_v23 = vadd.f32 %v2236_v50, %v497_v20 }
 0x143   :  { %v1770_v26 = vpop.eup %1769  ;;  %v871_v27 = vadd.f32 %v1768_v7, %v870_v21  ;;  %v1666_v28 = vmul.f32 -1.442695, %v498_v23  ;;  %544 = vmatmul.f32.gmra.mxu1 %v415_v22 }
 0x144   :  { %v1772_v29 = vpop.eup %1771  ;;  %v778_v31 = vadd.f32 1.0, %v1770_v26 }
 0x145   :  { %v875_v32 = vsel %vm874_vm1, %v1768_v7, %v871_v27  ;;  %v883_v33 = vmul.f32 %v1772_v29, %v777_v10  ;;  %1773 = vpow2.f32 %v1666_v28  ;;  %vm888_vm3 = vweird.f32 %v1772_v29  ;;  %v2332_v27 = vpop.f32.mrf.mxu3 }
 0x146   :  { %v880_v34 = vsel %vm877_vm2, %v879_v30, %v875_v32  ;;  %1775 = vrcp.f32 %v778_v31  ;;  %v315_v35 = vpop.f32.mrf.mxu0  ;;  %vm889_vm6 = vmor %vm887_vm5, %vm888_vm3  ;;  %v906_v62 = vand.u32 2147483647, %v778_v31  ;;  %v908_v63 = vand.u32 2147483648, %v778_v31 }
 0x147   :  { %1561 = vst.msk [vmem:[%s2675_s5 + $0x18] sm:$0xff] %vm1557_vm4, %v880_v34  ;;  %v884_v37 = vsub.f32 1.0, %v883_v33  ;;  %v316_v38 = vadd.f32 %v2119_v40, %v315_v35  ;;  %vm902_vm9 = vweird.f32 %v778_v31  ;;  %v325_v33 = vadd.f32 %v2119_v40, %v2256_v9 }
 0x148   :  { %v500_v42 = vpop.f32.mrf.mxu1  ;;  %v909_v11 = vor.u32 1.1754944e-38, %v908_v63  ;;  %vm907_vm0 = vcmp.eq.f32.partialorder %v906_v62, 8.507059e+37 }
 0x149   :  { %v885_v43 = vmul.f32 %v1772_v29, %v884_v37  ;;  %v416_v44 = vmax.f32 %v316_v38, 0.0  ;;  %v501_v45 = vadd.f32 %v2236_v50, %v500_v42  ;;  %v419_v42 = vmax.f32 %v325_v33, 0.0 }
 0x14b   :  { %v1774_v48 = vpop.eup %1773  ;;  %v886_v49 = vadd.f32 %v1772_v29, %v885_v43  ;;  %v1667_v51 = vmul.f32 -1.442695, %v501_v45  ;;  %547 = vmatmul.f32.vlgmr.msra.gmra.mxu2 %v416_v44 }
 0x14c   :  { %v1776_v52 = vpop.eup %1775  ;;  %v779_v54 = vadd.f32 1.0, %v1774_v48 }
 0x14d   :  { %v890_v55 = vsel %vm889_vm6, %v1772_v29, %v886_v49  ;;  %v898_v56 = vmul.f32 %v1776_v52, %v778_v31  ;;  %1777 = vpow2.f32 %v1667_v51  ;;  %vm903_vm8 = vweird.f32 %v1776_v52  ;;  %v2341_v45 = vpop.f32.mrf.mxu3 }
 0x14e   :  { %v895_v57 = vsel %vm892_vm7, %v894_v53, %v890_v55  ;;  %1779 = vrcp.f32 %v779_v54  ;;  %v318_v58 = vpop.f32.mrf.mxu0  ;;  %vm904_vm10 = vmor %vm902_vm9, %vm903_vm8  ;;  %v921_v19 = vand.u32 2147483647, %v779_v54  ;;  %v923_v20 = vand.u32 2147483648, %v779_v54 }
 0x14f   :  { %1562 = vst.msk [vmem:[%s2675_s5 + $0x20] sm:$0xff] %vm1557_vm4, %v895_v57  ;;  %v899_v60 = vsub.f32 1.0, %v898_v56  ;;  %v319_v61 = vadd.f32 %v2119_v40, %v318_v58  ;;  %vm917_vm12 = vweird.f32 %v779_v54 }
 0x150   :  { %v503_v0 = vpop.f32.mrf.mxu1  ;;  %v924_v32 = vor.u32 1.1754944e-38, %v923_v20  ;;  %vm922_vm14 = vcmp.eq.f32.partialorder %v921_v19, 8.507059e+37 }
 0x151   :  { %v900_v1 = vmul.f32 %v1776_v52, %v899_v60  ;;  %v417_v2 = vmax.f32 %v319_v61, 0.0  ;;  %v504_v4 = vadd.f32 %v2236_v50, %v503_v0 }
 0x153   :  { %v1778_v6 = vpop.eup %1777  ;;  %v901_v7 = vadd.f32 %v1776_v52, %v900_v1  ;;  %v1668_v8 = vmul.f32 -1.442695, %v504_v4  ;;  %550 = vmatmul.f32.gmra.mxu2 %v417_v2 }
 0x154   :  { %v1780_v10 = vpop.eup %1779  ;;  %v780_v12 = vadd.f32 1.0, %v1778_v6 }
 0x155   :  { %v905_v13 = vsel %vm904_vm10, %v1776_v52, %v901_v7  ;;  %v913_v14 = vmul.f32 %v1780_v10, %v779_v54  ;;  %1781 = vpow2.f32 %v1668_v8  ;;  %vm918_vm11 = vweird.f32 %v1780_v10  ;;  %v2350_v1 = vpop.f32.mrf.mxu3 }
 0x156   :  { %v910_v15 = vsel %vm907_vm0, %v909_v11, %v905_v13  ;;  %1783 = vrcp.f32 %v780_v12  ;;  %v321_v16 = vpop.f32.mrf.mxu0  ;;  %vm919_vm13 = vmor %vm917_vm12, %vm918_vm11  ;;  %v938_v39 = vand.u32 2147483648, %v780_v12  ;;  %v936_v44 = vand.u32 2147483647, %v780_v12 }
 0x157   :  { %1563 = vst.msk [vmem:[%s2675_s5 + $0x28] sm:$0xff] %vm1557_vm4, %v910_v15  ;;  %v914_v17 = vsub.f32 1.0, %v913_v14  ;;  %v322_v18 = vadd.f32 %v2119_v40, %v321_v16  ;;  %vm932_vm1 = vweird.f32 %v780_v12  ;;  %v328_v54 = vadd.f32 %v2119_v40, %v2264_v25 }
 0x158   :  { %v506_v21 = vpop.f32.mrf.mxu1  ;;  %v939_v53 = vor.u32 1.1754944e-38, %v938_v39  ;;  %vm937_vm3 = vcmp.eq.f32.partialorder %v936_v44, 8.507059e+37 }
 0x159   :  { %v915_v22 = vmul.f32 %v1780_v10, %v914_v17  ;;  %v418_v23 = vmax.f32 %v322_v18, 0.0  ;;  %v507_v26 = vadd.f32 %v2236_v50, %v506_v21  ;;  %v420_v60 = vmax.f32 %v328_v54, 0.0 }
 0x15b   :  { %v1782_v28 = vpop.eup %1781  ;;  %v916_v29 = vadd.f32 %v1780_v10, %v915_v22  ;;  %v1669_v30 = vmul.f32 -1.442695, %v507_v26  ;;  %553 = vmatmul.f32.gmra.mxu2 %v418_v23 }
 0x15c   :  { %v1784_v31 = vpop.eup %1783  ;;  %v781_v34 = vadd.f32 1.0, %v1782_v28 }
 0x15d   :  { %v920_v35 = vsel %vm919_vm13, %v1780_v10, %v916_v29  ;;  %v928_v36 = vmul.f32 %v1784_v31, %v780_v12  ;;  %1785 = vpow2.f32 %v1669_v30  ;;  %vm933_vm15 = vweird.f32 %v1784_v31  ;;  %v2359_v21 = vpop.f32.mrf.mxu3 }
 0x15e   :  { %v925_v37 = vsel %vm922_vm14, %v924_v32, %v920_v35  ;;  %1787 = vrcp.f32 %v781_v34  ;;  %vm934_vm2 = vmor %vm932_vm1, %vm933_vm15  ;;  %v953_v61 = vand.u32 2147483648, %v781_v34  ;;  %v951_v0 = vand.u32 2147483647, %v781_v34 }
 0x15f   :  { %1564 = vst.msk [vmem:[%s2675_s5 + $0x30] sm:$0xff] %vm1557_vm4, %v925_v37  ;;  %v929_v38 = vsub.f32 1.0, %v928_v36  ;;  %vm947_vm6 = vweird.f32 %v781_v34  ;;  %v331_v10 = vadd.f32 %v2119_v40, %v2276_v46  ;;  %v334_v30 = vadd.f32 %v2119_v40, %v2288_v3 }
 0x160   :  { %v509_v41 = vpop.f32.mrf.mxu1  ;;  %v954_v8 = vor.u32 1.1754944e-38, %v953_v61  ;;  %vm952_vm8 = vcmp.eq.f32.partialorder %v951_v0, 8.507059e+37 }
 0x161   :  { %v930_v43 = vmul.f32 %v1784_v31, %v929_v38  ;;  %v510_v9 = vadd.f32 %v2236_v50, %v509_v41  ;;  %v421_v16 = vmax.f32 %v331_v10, 0.0  ;;  %v422_v36 = vmax.f32 %v334_v30, 0.0 }
 0x163   :  { %v1786_v48 = vpop.eup %1785  ;;  %v931_v49 = vadd.f32 %v1784_v31, %v930_v43  ;;  %v1670_v51 = vmul.f32 -1.442695, %v510_v9  ;;  %556 = vmatmul.f32.gmra.mxu2 %v419_v42 }
 0x164   :  { %v1788_v52 = vpop.eup %1787  ;;  %v782_v55 = vadd.f32 1.0, %v1786_v48 }
 0x165   :  { %v935_v56 = vsel %vm934_vm2, %v1784_v31, %v931_v49  ;;  %v943_v57 = vmul.f32 %v1788_v52, %v781_v34  ;;  %1789 = vpow2.f32 %v1670_v51  ;;  %vm948_vm5 = vweird.f32 %v1788_v52  ;;  %v2368_v42 = vpop.f32.mrf.mxu3 }
 0x166   :  { %v940_v58 = vsel %vm937_vm3, %v939_v53, %v935_v56  ;;  %1791 = vrcp.f32 %v782_v55  ;;  %vm949_vm7 = vmor %vm947_vm6, %vm948_vm5  ;;  %v968_v17 = vand.u32 2147483648, %v782_v55  ;;  %v966_v20 = vand.u32 2147483647, %v782_v55 }
 0x167   :  { %1565 = vst.msk [vmem:[%s2675_s5 + $0x38] sm:$0xff] %vm1557_vm4, %v940_v58  ;;  %v944_v59 = vsub.f32 1.0, %v943_v57  ;;  %vm962_vm10 = vweird.f32 %v782_v55  ;;  %v337_v51 = vadd.f32 %v2119_v40, %v2300_v24 }
 0x168   :  { %v512_v62 = vpop.f32.mrf.mxu1  ;;  %v969_v29 = vor.u32 1.1754944e-38, %v968_v17  ;;  %vm967_vm11 = vcmp.eq.f32.partialorder %v966_v20, 8.507059e+37 }
 0x169   :  { %v945_v63 = vmul.f32 %v1788_v52, %v944_v59  ;;  %v513_v25 = vadd.f32 %v2236_v50, %v512_v62  ;;  %v423_v57 = vmax.f32 %v337_v51, 0.0 }
 0x16b   :  { %v1790_v2 = vpop.eup %1789  ;;  %v946_v4 = vadd.f32 %v1788_v52, %v945_v63  ;;  %v1671_v6 = vmul.f32 -1.442695, %v513_v25  ;;  %559 = vmatmul.f32.gmra.mxu2 %v420_v60 }
 0x16c   :  { %v1792_v7 = vpop.eup %1791  ;;  %v783_v11 = vadd.f32 1.0, %v1790_v2 }
 0x16d   :  { %v950_v12 = vsel %vm949_vm7, %v1788_v52, %v946_v4  ;;  %v958_v13 = vmul.f32 %v1792_v7, %v782_v55  ;;  %1793 = vpow2.f32 %v1671_v6  ;;  %vm963_vm9 = vweird.f32 %v1792_v7  ;;  %v2377_v62 = vpop.f32.mrf.mxu3 }
 0x16e   :  { %v955_v14 = vsel %vm952_vm8, %v954_v8, %v950_v12  ;;  %1795 = vrcp.f32 %v783_v11  ;;  %vm964_vm0 = vmor %vm962_vm10, %vm963_vm9  ;;  %v983_v37 = vand.u32 2147483648, %v783_v11  ;;  %v981_v41 = vand.u32 2147483647, %v783_v11 }
 0x16f   :  { %1566 = vst.msk [vmem:[%s2675_s5 + $0x40] sm:$0xff] %vm1557_vm4, %v955_v14  ;;  %v959_v15 = vsub.f32 1.0, %v958_v13  ;;  %vm977_vm13 = vweird.f32 %v783_v11  ;;  %v340_v6 = vadd.f32 %v2119_v40, %v2312_v47 }
 0x170   :  { %v515_v18 = vpop.f32.mrf.mxu1  ;;  %v984_v49 = vor.u32 1.1754944e-38, %v983_v37  ;;  %vm982_vm15 = vcmp.eq.f32.partialorder %v981_v41, 8.507059e+37 }
 0x171   :  { %v960_v19 = vmul.f32 %v1792_v7, %v959_v15  ;;  %v516_v46 = vadd.f32 %v2236_v50, %v515_v18  ;;  %v424_v13 = vmax.f32 %v340_v6, 0.0 }
 0x173   :  { %v1794_v22 = vpop.eup %1793  ;;  %v961_v23 = vadd.f32 %v1792_v7, %v960_v19  ;;  %v1672_v26 = vmul.f32 -1.442695, %v516_v46  ;;  %562 = vmatmul.f32.gmra.mxu2 %v421_v16 }
 0x174   :  { %v1796_v28 = vpop.eup %1795  ;;  %v784_v31 = vadd.f32 1.0, %v1794_v22 }
 0x175   :  { %v965_v32 = vsel %vm964_vm0, %v1792_v7, %v961_v23  ;;  %v973_v33 = vmul.f32 %v1796_v28, %v783_v11  ;;  %1797 = vpow2.f32 %v1672_v26  ;;  %vm978_vm12 = vweird.f32 %v1796_v28  ;;  %v2386_v18 = vpop.f32.mrf.mxu3 }
 0x176   :  { %v970_v34 = vsel %vm967_vm11, %v969_v29, %v965_v32  ;;  %1799 = vrcp.f32 %v784_v31  ;;  %vm979_vm14 = vmor %vm977_vm13, %vm978_vm12  ;;  %v998_v58 = vand.u32 2147483648, %v784_v31  ;;  %v996_v61 = vand.u32 2147483647, %v784_v31 }
 0x177   :  { %1567 = vst.msk [vmem:[%s2675_s5 + $0x48] sm:$0xff] %vm1557_vm4, %v970_v34  ;;  %v974_v35 = vsub.f32 1.0, %v973_v33  ;;  %vm992_vm2 = vweird.f32 %v784_v31  ;;  %v343_v26 = vadd.f32 %v2119_v40, %v2324_v5 }
 0x178   :  { %v518_v38 = vpop.f32.mrf.mxu1  ;;  %v999_v4 = vor.u32 1.1754944e-38, %v998_v58  ;;  %vm997_vm5 = vcmp.eq.f32.partialorder %v996_v61, 8.507059e+37 }
 0x179   :  { %v975_v39 = vmul.f32 %v1796_v28, %v974_v35  ;;  %v519_v3 = vadd.f32 %v2236_v50, %v518_v38  ;;  %v425_v33 = vmax.f32 %v343_v26, 0.0 }
 0x17b   :  { %v1798_v43 = vpop.eup %1797  ;;  %v976_v44 = vadd.f32 %v1796_v28, %v975_v39  ;;  %v1673_v9 = vmul.f32 -1.442695, %v519_v3  ;;  %565 = vmatmul.f32.gmra.mxu2 %v422_v36 }
 0x17c   :  { %v1800_v48 = vpop.eup %1799  ;;  %v785_v52 = vadd.f32 1.0, %v1798_v43 }
 0x17d   :  { %v980_v53 = vsel %vm979_vm14, %v1796_v28, %v976_v44  ;;  %v988_v54 = vmul.f32 %v1800_v48, %v784_v31  ;;  %1801 = vpow2.f32 %v1673_v9  ;;  %vm993_vm1 = vweird.f32 %v1800_v48  ;;  %v2395_v5 = vpop.f32.mrf.mxu3  ;;  %v2400_v44 = vld [vmem:[%s2671_s2] ss:$0 sm:$0xff] }
 0x17e   :  { %v985_v55 = vsel %vm982_vm15, %v984_v49, %v980_v53  ;;  %1803 = vrcp.f32 %v785_v52  ;;  %vm994_vm3 = vmor %vm992_vm2, %vm993_vm1  ;;  %v1013_v14 = vand.u32 2147483648, %v785_v52  ;;  %v1011_v17 = vand.u32 2147483647, %v785_v52 }
 0x17f   :  { %1568 = vst.msk [vmem:[%s2675_s5 + $0x50] sm:$0xff] %vm1557_vm4, %v985_v55  ;;  %v989_v56 = vsub.f32 1.0, %v988_v54  ;;  %vm1007_vm7 = vweird.f32 %v785_v52  ;;  %v346_v9 = vadd.f32 %v2400_v44, %v2332_v27 }
 0x180   :  { %v521_v59 = vpop.f32.mrf.mxu1  ;;  %v1014_v23 = vor.u32 1.1754944e-38, %v1013_v14  ;;  %vm1012_vm9 = vcmp.eq.f32.partialorder %v1011_v17, 8.507059e+37 }
 0x181   :  { %v990_v60 = vmul.f32 %v1800_v48, %v989_v56  ;;  %v522_v24 = vadd.f32 %v2236_v50, %v521_v59  ;;  %v426_v54 = vmax.f32 %v346_v9, 0.0 }
 0x183   :  { %v1802_v63 = vpop.eup %1801  ;;  %v991_v0 = vadd.f32 %v1800_v48, %v990_v60  ;;  %v1674_v25 = vmul.f32 -1.442695, %v522_v24  ;;  %568 = vmatmul.f32.gmra.mxu2 %v423_v57 }
 0x184   :  { %v1804_v2 = vpop.eup %1803  ;;  %v786_v7 = vadd.f32 1.0, %v1802_v63 }
 0x185   :  { %v995_v8 = vsel %vm994_vm3, %v1800_v48, %v991_v0  ;;  %v1003_v10 = vmul.f32 %v1804_v2, %v785_v52  ;;  %1805 = vpow2.f32 %v1674_v25  ;;  %vm1008_vm6 = vweird.f32 %v1804_v2  ;;  %v2409_v59 = vpop.f32.mrf.mxu3 }
 0x186   :  { %v1000_v11 = vsel %vm997_vm5, %v999_v4, %v995_v8  ;;  %1807 = vrcp.f32 %v786_v7  ;;  %vm1009_vm8 = vmor %vm1007_vm7, %vm1008_vm6  ;;  %v1028_v34 = vand.u32 2147483648, %v786_v7  ;;  %v1026_v37 = vand.u32 2147483647, %v786_v7 }
 0x187   :  { %1569 = vst.msk [vmem:[%s2675_s5 + $0x58] sm:$0xff] %vm1557_vm4, %v1000_v11  ;;  %v1004_v12 = vsub.f32 1.0, %v1003_v10  ;;  %vm1022_vm0 = vweird.f32 %v786_v7  ;;  %v349_v25 = vadd.f32 %v2400_v44, %v2341_v45 }
 0x188   :  { %v524_v15 = vpop.f32.mrf.mxu1  ;;  %v1029_v43 = vor.u32 1.1754944e-38, %v1028_v34  ;;  %vm1027_vm12 = vcmp.eq.f32.partialorder %v1026_v37, 8.507059e+37 }
 0x189   :  { %v1005_v16 = vmul.f32 %v1804_v2, %v1004_v12  ;;  %v525_v47 = vadd.f32 %v2236_v50, %v524_v15  ;;  %v427_v10 = vmax.f32 %v349_v25, 0.0 }
 0x18b   :  { %v1806_v19 = vpop.eup %1805  ;;  %v1006_v20 = vadd.f32 %v1804_v2, %v1005_v16  ;;  %v1675_v46 = vmul.f32 -1.442695, %v525_v47  ;;  %571 = vmatmul.f32.gmra.mxu2 %v424_v13 }
 0x18c   :  { %v1808_v22 = vpop.eup %1807  ;;  %v787_v28 = vadd.f32 1.0, %v1806_v19 }
 0x18d   :  { %v1010_v29 = vsel %vm1009_vm8, %v1804_v2, %v1006_v20  ;;  %v1018_v30 = vmul.f32 %v1808_v22, %v786_v7  ;;  %1809 = vpow2.f32 %v1675_v46  ;;  %vm1023_vm10 = vweird.f32 %v1808_v22  ;;  %v2418_v15 = vpop.f32.mrf.mxu3 }
 0x18e   :  { %v1015_v31 = vsel %vm1012_vm9, %v1014_v23, %v1010_v29  ;;  %1811 = vrcp.f32 %v787_v28  ;;  %vm1024_vm11 = vmor %vm1022_vm0, %vm1023_vm10  ;;  %v1043_v55 = vand.u32 2147483648, %v787_v28  ;;  %v1041_v58 = vand.u32 2147483647, %v787_v28 }
 0x18f   :  { %1570 = vst.msk [vmem:[%s2675_s5 + $0x60] sm:$0xff] %vm1557_vm4, %v1015_v31  ;;  %v1019_v32 = vsub.f32 1.0, %v1018_v30  ;;  %vm1037_vm14 = vweird.f32 %v787_v28  ;;  %v352_v46 = vadd.f32 %v2400_v44, %v2350_v1 }
 0x190   :  { %v527_v35 = vpop.f32.mrf.mxu1  ;;  %v1044_v0 = vor.u32 1.1754944e-38, %v1043_v55  ;;  %vm1042_vm1 = vcmp.eq.f32.partialorder %v1041_v58, 8.507059e+37 }
 0x191   :  { %v1020_v36 = vmul.f32 %v1808_v22, %v1019_v32  ;;  %v528_v40 = vadd.f32 %v2236_v50, %v527_v35  ;;  %v428_v30 = vmax.f32 %v352_v46, 0.0 }
 0x193   :  { %v1810_v38 = vpop.eup %1809  ;;  %v1021_v39 = vadd.f32 %v1808_v22, %v1020_v36  ;;  %v1676_v41 = vmul.f32 -1.442695, %v528_v40  ;;  %574 = vmatmul.f32.gmra.mxu2 %v425_v33 }
 0x194   :  { %v1812_v3 = vpop.eup %1811  ;;  %v788_v48 = vadd.f32 1.0, %v1810_v38 }
 0x195   :  { %v1025_v49 = vsel %vm1024_vm11, %v1808_v22, %v1021_v39  ;;  %v1033_v51 = vmul.f32 %v1812_v3, %v787_v28  ;;  %1813 = vpow2.f32 %v1676_v41  ;;  %vm1038_vm13 = vweird.f32 %v1812_v3  ;;  %v2427_v35 = vpop.f32.mrf.mxu3 }
 0x196   :  { %v1030_v52 = vsel %vm1027_vm12, %v1029_v43, %v1025_v49  ;;  %1815 = vrcp.f32 %v788_v48  ;;  %vm1039_vm15 = vmor %vm1037_vm14, %vm1038_vm13  ;;  %v1058_v11 = vand.u32 2147483648, %v788_v48  ;;  %v1056_v14 = vand.u32 2147483647, %v788_v48 }
 0x197   :  { %1571 = vst.msk [vmem:[%s2675_s5 + $0x68] sm:$0xff] %vm1557_vm4, %v1030_v52  ;;  %v1034_v53 = vsub.f32 1.0, %v1033_v51  ;;  %vm1052_vm3 = vweird.f32 %v788_v48  ;;  %v355_v41 = vadd.f32 %v2400_v44, %v2359_v21 }
 0x198   :  { %v530_v56 = vpop.f32.mrf.mxu1  ;;  %v1059_v20 = vor.u32 1.1754944e-38, %v1058_v11  ;;  %vm1057_vm6 = vcmp.eq.f32.partialorder %v1056_v14, 8.507059e+37 }
 0x199   :  { %v1035_v57 = vmul.f32 %v1812_v3, %v1034_v53  ;;  %v531_v27 = vadd.f32 %v2236_v50, %v530_v56  ;;  %v429_v51 = vmax.f32 %v355_v41, 0.0 }
 0x19b   :  { %v1814_v60 = vpop.eup %1813  ;;  %v1036_v61 = vadd.f32 %v1812_v3, %v1035_v57  ;;  %v1677_v24 = vmul.f32 -1.442695, %v531_v27  ;;  %577 = vmatmul.f32.gmra.mxu2 %v426_v54 }
 0x19c   :  { %v1816_v63 = vpop.eup %1815  ;;  %v789_v2 = vadd.f32 1.0, %v1814_v60 }
 0x19d   :  { %v1040_v4 = vsel %vm1039_vm15, %v1812_v3, %v1036_v61  ;;  %v1048_v6 = vmul.f32 %v1816_v63, %v788_v48  ;;  %1817 = vpow2.f32 %v1677_v24  ;;  %vm1053_vm2 = vweird.f32 %v1816_v63  ;;  %v2436_v56 = vpop.f32.mrf.mxu3 }
 0x19e   :  { %v1045_v7 = vsel %vm1042_vm1, %v1044_v0, %v1040_v4  ;;  %1819 = vrcp.f32 %v789_v2  ;;  %vm1054_vm5 = vmor %vm1052_vm3, %vm1053_vm2  ;;  %v1073_v31 = vand.u32 2147483648, %v789_v2  ;;  %v1071_v34 = vand.u32 2147483647, %v789_v2 }
 0x19f   :  { %1572 = vst.msk [vmem:[%s2675_s5 + $0x70] sm:$0xff] %vm1557_vm4, %v1045_v7  ;;  %v1049_v8 = vsub.f32 1.0, %v1048_v6  ;;  %vm1067_vm8 = vweird.f32 %v789_v2  ;;  %v358_v24 = vadd.f32 %v2400_v44, %v2368_v42  ;;  %v2447_v42 = vld [vmem:[%s2674_s4] ss:$0 sm:$0xff] }
 0x1a0   :  { %v533_v12 = vpop.f32.mrf.mxu1  ;;  %v1074_v39 = vor.u32 1.1754944e-38, %v1073_v31  ;;  %vm1072_vm10 = vcmp.eq.f32.partialorder %v1071_v34, 8.507059e+37 }
 0x1a1   :  { %v1050_v13 = vmul.f32 %v1816_v63, %v1049_v8  ;;  %v534_v45 = vadd.f32 %v2236_v50, %v533_v12  ;;  %v430_v4 = vmax.f32 %v358_v24, 0.0 }
 0x1a3   :  { %v1818_v16 = vpop.eup %1817  ;;  %v1051_v17 = vadd.f32 %v1816_v63, %v1050_v13  ;;  %v1678_v47 = vmul.f32 -1.442695, %v534_v45  ;;  %580 = vmatmul.f32.gmra.mxu2 %v427_v10 }
 0x1a4   :  { %v1820_v19 = vpop.eup %1819  ;;  %v790_v22 = vadd.f32 1.0, %v1818_v16 }
 0x1a5   :  { %v1055_v23 = vsel %vm1054_vm5, %v1816_v63, %v1051_v17  ;;  %v1063_v26 = vmul.f32 %v1820_v19, %v789_v2  ;;  %1821 = vpow2.f32 %v1678_v47  ;;  %vm1068_vm7 = vweird.f32 %v1820_v19  ;;  %v2450_v12 = vpop.f32.mrf.mxu3 }
 0x1a6   :  { %v1060_v28 = vsel %vm1057_vm6, %v1059_v20, %v1055_v23  ;;  %1823 = vrcp.f32 %v790_v22  ;;  %vm1069_vm9 = vmor %vm1067_vm8, %vm1068_vm7  ;;  %v1088_v52 = vand.u32 2147483648, %v790_v22  ;;  %v1086_v55 = vand.u32 2147483647, %v790_v22 }
 0x1a7   :  { %1573 = vst.msk [vmem:[%s2675_s5 + $0x78] sm:$0xff] %vm1557_vm4, %v1060_v28  ;;  %v1064_v29 = vsub.f32 1.0, %v1063_v26  ;;  %vm1082_vm11 = vweird.f32 %v790_v22  ;;  %v361_v47 = vadd.f32 %v2400_v44, %v2377_v62 }
 0x1a8   :  { %v536_v32 = vpop.f32.mrf.mxu1  ;;  %v1089_v61 = vor.u32 1.1754944e-38, %v1088_v52  ;;  %vm1087_vm13 = vcmp.eq.f32.partialorder %v1086_v55, 8.507059e+37 }
 0x1a9   :  { %v1065_v33 = vmul.f32 %v1820_v19, %v1064_v29  ;;  %v537_v1 = vadd.f32 %v2236_v50, %v536_v32  ;;  %v431_v26 = vmax.f32 %v361_v47, 0.0 }
 0x1ab   :  { %v1822_v36 = vpop.eup %1821  ;;  %v1066_v37 = vadd.f32 %v1820_v19, %v1065_v33  ;;  %v1679_v40 = vmul.f32 -1.442695, %v537_v1  ;;  %583 = vmatmul.f32.gmra.mxu2 %v428_v30 }
 0x1ac   :  { %v1824_v38 = vpop.eup %1823  ;;  %v791_v3 = vadd.f32 1.0, %v1822_v36 }
 0x1ad   :  { %v1070_v43 = vsel %vm1069_vm9, %v1820_v19, %v1066_v37  ;;  %v1078_v9 = vmul.f32 %v1824_v38, %v790_v22  ;;  %1825 = vpow2.f32 %v1679_v40  ;;  %vm1083_vm0 = vweird.f32 %v1824_v38  ;;  %v2459_v32 = vpop.f32.mrf.mxu3 }
 0x1ae   :  { %v1075_v48 = vsel %vm1072_vm10, %v1074_v39, %v1070_v43  ;;  %1827 = vrcp.f32 %v791_v3  ;;  %vm1084_vm12 = vmor %vm1082_vm11, %vm1083_vm0  ;;  %v1103_v6 = vand.u32 2147483648, %v791_v3  ;;  %v1101_v10 = vand.u32 2147483647, %v791_v3 }
 0x1af   :  { %1574 = vst.msk [vmem:[%s2675_s5 + $0x80] sm:$0xff] %vm1557_vm4, %v1075_v48  ;;  %v1079_v49 = vsub.f32 1.0, %v1078_v9  ;;  %vm1097_vm15 = vweird.f32 %v791_v3  ;;  %v364_v40 = vadd.f32 %v2400_v44, %v2386_v18 }
 0x1b0   :  { %v539_v53 = vpop.f32.mrf.mxu1  ;;  %v1104_v17 = vor.u32 1.1754944e-38, %v1103_v6  ;;  %vm1102_vm2 = vcmp.eq.f32.partialorder %v1101_v10, 8.507059e+37 }
 0x1b1   :  { %v1080_v54 = vmul.f32 %v1824_v38, %v1079_v49  ;;  %v540_v21 = vadd.f32 %v2236_v50, %v539_v53  ;;  %v432_v48 = vmax.f32 %v364_v40, 0.0 }
 0x1b3   :  { %v1826_v57 = vpop.eup %1825  ;;  %v1081_v58 = vadd.f32 %v1824_v38, %v1080_v54  ;;  %v1680_v27 = vmul.f32 -1.442695, %v540_v21  ;;  %586 = vmatmul.f32.gmra.mxu2 %v429_v51 }
 0x1b4   :  { %v1828_v60 = vpop.eup %1827  ;;  %v792_v63 = vadd.f32 1.0, %v1826_v57  ;;  %v367_v57 = vadd.f32 %v2400_v44, %v2395_v5 }
 0x1b5   :  { %v1085_v0 = vsel %vm1084_vm12, %v1824_v38, %v1081_v58  ;;  %v1093_v25 = vmul.f32 %v1828_v60, %v791_v3  ;;  %1829 = vpow2.f32 %v1680_v27  ;;  %vm1098_vm14 = vweird.f32 %v1828_v60  ;;  %v387_v52 = vpop.f32.mrf.mxu3 }
 0x1b6   :  { %v1090_v2 = vsel %vm1087_vm13, %v1089_v61, %v1085_v0  ;;  %1831 = vrcp.f32 %v792_v63  ;;  %vm1099_vm1 = vmor %vm1097_vm15, %vm1098_vm14  ;;  %v1118_v28 = vand.u32 2147483648, %v792_v63  ;;  %v1116_v31 = vand.u32 2147483647, %v792_v63 }
 0x1b7   :  { %1575 = vst.msk [vmem:[%s2675_s5 + $0x88] sm:$0xff] %vm1557_vm4, %v1090_v2  ;;  %v1094_v50 = vsub.f32 1.0, %v1093_v25  ;;  %vm1112_vm5 = vweird.f32 %v792_v63  ;;  %v388_v54 = vadd.f32 %v2400_v44, %v387_v52  ;;  %v433_v2 = vmax.f32 %v367_v57, 0.0 }
 0x1b8   :  { %v542_v7 = vpop.f32.mrf.mxu1  ;;  %v1119_v37 = vor.u32 1.1754944e-38, %v1118_v28  ;;  %vm1117_vm7 = vcmp.eq.f32.partialorder %v1116_v31, 8.507059e+37 }
 0x1b9   :  { %v1095_v8 = vmul.f32 %v1828_v60, %v1094_v50  ;;  %v543_v11 = vadd.f32 %v2447_v42, %v542_v7  ;;  %v440_v61 = vmax.f32 %v388_v54, 0.0 }
 0x1bb   :  { %v1830_v13 = vpop.eup %1829  ;;  %v1096_v14 = vadd.f32 %v1828_v60, %v1095_v8  ;;  %v1681_v45 = vmul.f32 -1.442695, %v543_v11  ;;  %589 = vmatmul.f32.gmra.mxu2 %v430_v4  ;;  %619 = vmatmul.f32.vlgmr.msrb.gmra.mxu3 %v440_v61 }
 0x1bc   :  { %v1832_v16 = vpop.eup %1831  ;;  %v793_v19 = vadd.f32 1.0, %v1830_v13 }
 0x1bd   :  { %v1100_v20 = vsel %vm1099_vm1, %v1828_v60, %v1096_v14  ;;  %v1108_v46 = vmul.f32 %v1832_v16, %v792_v63  ;;  %1833 = vpow2.f32 %v1681_v45  ;;  %vm1113_vm3 = vweird.f32 %v1832_v16  ;;  %v390_v7 = vpop.f32.mrf.mxu3 }
 0x1be   :  { %v1105_v22 = vsel %vm1102_vm2, %v1104_v17, %v1100_v20  ;;  %1835 = vrcp.f32 %v793_v19  ;;  %vm1114_vm6 = vmor %vm1112_vm5, %vm1113_vm3  ;;  %v1133_v9 = vand.u32 2147483648, %v793_v19  ;;  %v1131_v51 = vand.u32 2147483647, %v793_v19 }
 0x1bf   :  { %1576 = vst.msk [vmem:[%s2675_s5 + $0x90] sm:$0xff] %vm1557_vm4, %v1105_v22  ;;  %v1109_v23 = vsub.f32 1.0, %v1108_v46  ;;  %vm1127_vm9 = vweird.f32 %v793_v19  ;;  %v391_v10 = vadd.f32 %v2400_v44, %v390_v7  ;;  %v370_v14 = vadd.f32 %v2400_v44, %v2409_v59 }
 0x1c0   :  { %v545_v29 = vpop.f32.mrf.mxu1  ;;  %v1134_v21 = vor.u32 1.1754944e-38, %v1133_v9  ;;  %vm1132_vm0 = vcmp.eq.f32.partialorder %v1131_v51, 8.507059e+37 }
 0x1c1   :  { %v1110_v30 = vmul.f32 %v1832_v16, %v1109_v23  ;;  %v546_v62 = vadd.f32 %v2447_v42, %v545_v29  ;;  %v441_v17 = vmax.f32 %v391_v10, 0.0  ;;  %v434_v22 = vmax.f32 %v370_v14, 0.0 }
 0x1c3   :  { %v1834_v33 = vpop.eup %1833  ;;  %v1111_v34 = vadd.f32 %v1832_v16, %v1110_v30  ;;  %v1682_v1 = vmul.f32 -1.442695, %v546_v62  ;;  %592 = vmatmul.f32.gmra.mxu2 %v431_v26  ;;  %622 = vmatmul.f32.gmra.mxu3 %v441_v17 }
 0x1c4   :  { %v1836_v36 = vpop.eup %1835  ;;  %v794_v38 = vadd.f32 1.0, %v1834_v33 }
 0x1c5   :  { %v1115_v39 = vsel %vm1114_vm6, %v1832_v16, %v1111_v34  ;;  %v1123_v41 = vmul.f32 %v1836_v36, %v793_v19  ;;  %1837 = vpow2.f32 %v1682_v1  ;;  %vm1128_vm8 = vweird.f32 %v1836_v36 }
 0x1c6   :  { %v1120_v3 = vsel %vm1117_vm7, %v1119_v37, %v1115_v39  ;;  %1839 = vrcp.f32 %v794_v38  ;;  %vm1129_vm10 = vmor %vm1127_vm9, %vm1128_vm8  ;;  %v1148_v50 = vand.u32 2147483648, %v794_v38  ;;  %v1146_v4 = vand.u32 2147483647, %v794_v38 }
 0x1c7   :  { %1577 = vst.msk [vmem:[%s2675_s5 + $0x98] sm:$0xff] %vm1557_vm4, %v1120_v3  ;;  %v1124_v43 = vsub.f32 1.0, %v1123_v41  ;;  %vm1142_vm12 = vweird.f32 %v794_v38  ;;  %v373_v34 = vadd.f32 %v2400_v44, %v2418_v15  ;;  %v376_v15 = vadd.f32 %v2400_v44, %v2427_v35 }
 0x1c8   :  { %v1149_v13 = vor.u32 1.1754944e-38, %v1148_v50  ;;  %vm1147_vm14 = vcmp.eq.f32.partialorder %v1146_v4, 8.507059e+37 }
 0x1c9   :  { %v1125_v49 = vmul.f32 %v1836_v36, %v1124_v43  ;;  %v436_v54 = vmax.f32 %v376_v15, 0.0 }
 0x1cb   :  { %v1838_v18 = vpop.eup %1837  ;;  %v1126_v53 = vadd.f32 %v1836_v36, %v1125_v49  ;;  %595 = vmatmul.f32.gmra.mxu2 %v432_v48 }
 0x1cc   :  { %v1840_v55 = vpop.eup %1839  ;;  %v795_v58 = vadd.f32 1.0, %v1838_v18 }
 0x1cd   :  { %v1130_v27 = vsel %vm1129_vm10, %v1836_v36, %v1126_v53  ;;  %v1138_v60 = vmul.f32 %v1840_v55, %v794_v38  ;;  %vm1143_vm11 = vweird.f32 %v1840_v55  ;;  %v435_v38 = vmax.f32 %v373_v34, 0.0 }
 0x1ce   :  { %v1135_v24 = vsel %vm1132_vm0, %v1134_v21, %v1130_v27  ;;  %1841 = vrcp.f32 %v795_v58  ;;  %v548_v63 = vpop.f32.mrf.mxu2  ;;  %vm1144_vm13 = vmor %vm1142_vm12, %vm1143_vm11  ;;  %v1163_v23 = vand.u32 2147483648, %v795_v58  ;;  %v1161_v59 = vand.u32 2147483647, %v795_v58 }
 0x1cf   :  { %1578 = vst.msk [vmem:[%s2675_s5 + $0xa0] sm:$0xff] %vm1557_vm4, %v1135_v24  ;;  %v1139_v0 = vsub.f32 1.0, %v1138_v60  ;;  %v549_v25 = vadd.f32 %v2447_v42, %v548_v63  ;;  %vm1157_vm1 = vweird.f32 %v795_v58  ;;  %v379_v24 = vadd.f32 %v2400_v44, %v2436_v56 }
 0x1d0   :  { %v1164_v62 = vor.u32 1.1754944e-38, %v1163_v23  ;;  %vm1162_vm3 = vcmp.eq.f32.partialorder %v1161_v59, 8.507059e+37  ;;  %v385_v34 = vadd.f32 %v2400_v44, %v2459_v32 }
 0x1d1   :  { %v1140_v5 = vmul.f32 %v1840_v55, %v1139_v0  ;;  %v1683_v6 = vmul.f32 -1.442695, %v549_v25 }
 0x1d3   :  { %v1141_v8 = vadd.f32 %v1840_v55, %v1140_v5  ;;  %1843 = vpow2.f32 %v1683_v6  ;;  %598 = vmatmul.f32.gmra.mxu2 %v433_v2  ;;  %v437_v6 = vmax.f32 %v379_v24, 0.0 }
 0x1d4   :  { %v1842_v11 = vpop.eup %1841 }
 0x1d5   :  { %v1145_v45 = vsel %vm1144_vm13, %v1840_v55, %v1141_v8  ;;  %v1153_v16 = vmul.f32 %v1842_v11, %v795_v58  ;;  %vm1158_vm15 = vweird.f32 %v1842_v11 }
 0x1d6   :  { %v1150_v47 = vsel %vm1147_vm14, %v1149_v13, %v1145_v45  ;;  %v551_v19 = vpop.f32.mrf.mxu2  ;;  %vm1159_vm2 = vmor %vm1157_vm1, %vm1158_vm15 }
 0x1d7   :  { %1579 = vst.msk [vmem:[%s2675_s5 + $0xa8] sm:$0xff] %vm1557_vm4, %v1150_v47  ;;  %v1154_v20 = vsub.f32 1.0, %v1153_v16  ;;  %v552_v46 = vadd.f32 %v2447_v42, %v551_v19  ;;  %v382_v16 = vadd.f32 %v2400_v44, %v2450_v12 }
 0x1d9   :  { %v1844_v26 = vpop.eup %1843  ;;  %v1155_v28 = vmul.f32 %v1842_v11, %v1154_v20  ;;  %v1684_v29 = vmul.f32 -1.442695, %v552_v46 }
 0x1da   :  { %v796_v30 = vadd.f32 1.0, %v1844_v26  ;;  %v438_v26 = vmax.f32 %v382_v16, 0.0 }
 0x1db   :  { %v1156_v31 = vadd.f32 %v1842_v11, %v1155_v28  ;;  %1845 = vpow2.f32 %v1684_v29  ;;  %601 = vmatmul.f32.gmra.mxu2 %v434_v22 }
 0x1dc   :  { %1847 = vrcp.f32 %v796_v30  ;;  %v1178_v48 = vand.u32 2147483648, %v796_v30  ;;  %v1176_v52 = vand.u32 2147483647, %v796_v30  ;;  %vm1172_vm6 = vweird.f32 %v796_v30 }
 0x1dd   :  { %v1160_v33 = vsel %vm1159_vm2, %v1842_v11, %v1156_v31 }
 0x1de   :  { %v1165_v1 = vsel %vm1162_vm3, %v1164_v62, %v1160_v33  ;;  %v554_v36 = vpop.f32.mrf.mxu2  ;;  %v1179_v58 = vor.u32 1.1754944e-38, %v1178_v48  ;;  %vm1177_vm8 = vcmp.eq.f32.partialorder %v1176_v52, 8.507059e+37 }
 0x1df   :  { %1580 = vst.msk [vmem:[%s2675_s5 + $0xb0] sm:$0xff] %vm1557_vm4, %v1165_v1  ;;  %v555_v37 = vadd.f32 %v2447_v42, %v554_v36 }
 0x1e1   :  { %v1846_v40 = vpop.eup %1845  ;;  %v1685_v39 = vmul.f32 -1.442695, %v555_v37 }
 0x1e2   :  { %v1848_v41 = vpop.eup %1847  ;;  %v797_v3 = vadd.f32 1.0, %v1846_v40 }
 0x1e3   :  { %v1168_v43 = vmul.f32 %v1848_v41, %v796_v30  ;;  %1849 = vpow2.f32 %v1685_v39  ;;  %604 = vmatmul.f32.gmra.mxu2 %v435_v38  ;;  %vm1173_vm5 = vweird.f32 %v1848_v41 }
 0x1e4   :  { %1851 = vrcp.f32 %v797_v3  ;;  %vm1174_vm7 = vmor %vm1172_vm6, %vm1173_vm5  ;;  %v1193_v0 = vand.u32 2147483648, %v797_v3  ;;  %v1191_v50 = vand.u32 2147483647, %v797_v3  ;;  %vm1187_vm10 = vweird.f32 %v797_v3 }
 0x1e5   :  { %v1169_v9 = vsub.f32 1.0, %v1168_v43 }
 0x1e6   :  { %v557_v49 = vpop.f32.mrf.mxu2  ;;  %v1194_v11 = vor.u32 1.1754944e-38, %v1193_v0  ;;  %vm1192_vm11 = vcmp.eq.f32.partialorder %v1191_v50, 8.507059e+37 }
 0x1e7   :  { %v1170_v51 = vmul.f32 %v1848_v41, %v1169_v9  ;;  %v558_v18 = vadd.f32 %v2447_v42, %v557_v49 }
 0x1e9   :  { %v1850_v53 = vpop.eup %1849  ;;  %v1171_v55 = vadd.f32 %v1848_v41, %v1170_v51  ;;  %v1686_v21 = vmul.f32 -1.442695, %v558_v18 }
 0x1ea   :  { %v1852_v57 = vpop.eup %1851  ;;  %v798_v27 = vadd.f32 1.0, %v1850_v53 }
 0x1eb   :  { %v1175_v60 = vsel %vm1174_vm7, %v1848_v41, %v1171_v55  ;;  %v1183_v35 = vmul.f32 %v1852_v57, %v797_v3  ;;  %1853 = vpow2.f32 %v1686_v21  ;;  %607 = vmatmul.f32.gmra.mxu2 %v436_v54  ;;  %vm1188_vm9 = vweird.f32 %v1852_v57 }
 0x1ec   :  { %v1180_v61 = vsel %vm1177_vm8, %v1179_v58, %v1175_v60  ;;  %1855 = vrcp.f32 %v798_v27  ;;  %vm1189_vm0 = vmor %vm1187_vm10, %vm1188_vm9  ;;  %v1208_v47 = vand.u32 2147483648, %v798_v27  ;;  %v1206_v46 = vand.u32 2147483647, %v798_v27 }
 0x1ed   :  { %1581 = vst.msk [vmem:[%s2675_s5 + $0xb8] sm:$0xff] %vm1557_vm4, %v1180_v61  ;;  %v1184_v63 = vsub.f32 1.0, %v1183_v35  ;;  %vm1202_vm13 = vweird.f32 %v798_v27  ;;  %v439_v3 = vmax.f32 %v385_v34, 0.0 }
 0x1ee   :  { %v560_v25 = vpop.f32.mrf.mxu2  ;;  %v1209_v30 = vor.u32 1.1754944e-38, %v1208_v47  ;;  %vm1207_vm15 = vcmp.eq.f32.partialorder %v1206_v46, 8.507059e+37 }
 0x1ef   :  { %v1185_v2 = vmul.f32 %v1852_v57, %v1184_v63  ;;  %v561_v5 = vadd.f32 %v2447_v42, %v560_v25 }
 0x1f1   :  { %v1854_v4 = vpop.eup %1853  ;;  %v1186_v7 = vadd.f32 %v1852_v57, %v1185_v2  ;;  %v1687_v8 = vmul.f32 -1.442695, %v561_v5 }
 0x1f2   :  { %v1856_v10 = vpop.eup %1855  ;;  %v799_v13 = vadd.f32 1.0, %v1854_v4 }
 0x1f3   :  { %v1190_v14 = vsel %vm1189_vm0, %v1852_v57, %v1186_v7  ;;  %v1198_v56 = vmul.f32 %v1856_v10, %v798_v27  ;;  %1857 = vpow2.f32 %v1687_v8  ;;  %610 = vmatmul.f32.gmra.mxu2 %v437_v6  ;;  %vm1203_vm12 = vweird.f32 %v1856_v10 }
 0x1f4   :  { %v1195_v45 = vsel %vm1192_vm11, %v1194_v11, %v1190_v14  ;;  %1859 = vrcp.f32 %v799_v13  ;;  %vm1204_vm14 = vmor %vm1202_vm13, %vm1203_vm12  ;;  %v1223_v36 = vand.u32 2147483648, %v799_v13  ;;  %v1221_v38 = vand.u32 2147483647, %v799_v13 }
 0x1f5   :  { %1582 = vst.msk [vmem:[%s2675_s5 + $0xc0] sm:$0xff] %vm1557_vm4, %v1195_v45  ;;  %v1199_v17 = vsub.f32 1.0, %v1198_v56  ;;  %vm1217_vm2 = vweird.f32 %v799_v13 }
 0x1f6   :  { %v563_v19 = vpop.f32.mrf.mxu2  ;;  %v1224_v48 = vor.u32 1.1754944e-38, %v1223_v36  ;;  %vm1222_vm5 = vcmp.eq.f32.partialorder %v1221_v38, 8.507059e+37 }
 0x1f7   :  { %v1200_v20 = vmul.f32 %v1856_v10, %v1199_v17  ;;  %v564_v22 = vadd.f32 %v2447_v42, %v563_v19 }
 0x1f9   :  { %v1858_v23 = vpop.eup %1857  ;;  %v1201_v28 = vadd.f32 %v1856_v10, %v1200_v20  ;;  %v1688_v59 = vmul.f32 -1.442695, %v564_v22 }
 0x1fa   :  { %v1860_v29 = vpop.eup %1859  ;;  %v800_v31 = vadd.f32 1.0, %v1858_v23 }
 0x1fb   :  { %v1205_v62 = vsel %vm1204_vm14, %v1856_v10, %v1201_v28  ;;  %v1213_v12 = vmul.f32 %v1860_v29, %v799_v13  ;;  %1861 = vpow2.f32 %v1688_v59  ;;  %613 = vmatmul.f32.gmra.mxu2 %v438_v26  ;;  %vm1218_vm1 = vweird.f32 %v1860_v29 }
 0x1fc   :  { %v1210_v33 = vsel %vm1207_vm15, %v1209_v30, %v1205_v62  ;;  %1863 = vrcp.f32 %v800_v31  ;;  %vm1219_vm3 = vmor %vm1217_vm2, %vm1218_vm1  ;;  %v1238_v18 = vand.u32 2147483648, %v800_v31  ;;  %v1236_v55 = vand.u32 2147483647, %v800_v31 }
 0x1fd   :  { %1583 = vst.msk [vmem:[%s2675_s5 + $0xc8] sm:$0xff] %vm1557_vm4, %v1210_v33  ;;  %v1214_v1 = vsub.f32 1.0, %v1213_v12  ;;  %vm1232_vm7 = vweird.f32 %v800_v31 }
 0x1fe   :  { %v566_v37 = vpop.f32.mrf.mxu2  ;;  %v1239_v35 = vor.u32 1.1754944e-38, %v1238_v18  ;;  %vm1237_vm9 = vcmp.eq.f32.partialorder %v1236_v55, 8.507059e+37 }
 0x1ff   :  { %v1215_v40 = vmul.f32 %v1860_v29, %v1214_v1  ;;  %v567_v39 = vadd.f32 %v2447_v42, %v566_v37 }
 0x201   :  { %v1862_v41 = vpop.eup %1861  ;;  %v1216_v43 = vadd.f32 %v1860_v29, %v1215_v40  ;;  %v1689_v15 = vmul.f32 -1.442695, %v567_v39 }
 0x202   :  { %v1864_v9 = vpop.eup %1863  ;;  %v801_v49 = vadd.f32 1.0, %v1862_v41 }
 0x203   :  { %v1220_v51 = vsel %vm1219_vm3, %v1860_v29, %v1216_v43  ;;  %v1228_v44 = vmul.f32 %v1864_v9, %v800_v31  ;;  %1865 = vpow2.f32 %v1689_v15  ;;  %616 = vmatmul.f32.gmra.mxu2 %v439_v3  ;;  %vm1233_vm6 = vweird.f32 %v1864_v9 }
 0x204   :  { %v1225_v32 = vsel %vm1222_vm5, %v1224_v48, %v1220_v51  ;;  %1867 = vrcp.f32 %v801_v49  ;;  %vm1234_vm8 = vmor %vm1232_vm7, %vm1233_vm6  ;;  %v1253_v2 = vand.u32 2147483648, %v801_v49  ;;  %v1251_v4 = vand.u32 2147483647, %v801_v49 }
 0x205   :  { %1584 = vst.msk [vmem:[%s2675_s5 + $0xd0] sm:$0xff] %vm1557_vm4, %v1225_v32  ;;  %v1229_v52 = vsub.f32 1.0, %v1228_v44  ;;  %vm1247_vm0 = vweird.f32 %v801_v49 }
 0x206   :  { %v569_v53 = vpop.f32.mrf.mxu2  ;;  %v1254_v13 = vor.u32 1.1754944e-38, %v1253_v2  ;;  %vm1252_vm12 = vcmp.eq.f32.partialorder %v1251_v4, 8.507059e+37 }
 0x207   :  { %v1230_v54 = vmul.f32 %v1864_v9, %v1229_v52  ;;  %v570_v21 = vadd.f32 %v2447_v42, %v569_v53 }
 0x209   :  { %v1866_v57 = vpop.eup %1865  ;;  %v1231_v58 = vadd.f32 %v1864_v9, %v1230_v54  ;;  %v1690_v27 = vmul.f32 -1.442695, %v570_v21 }
 0x20a   :  { %v1868_v60 = vpop.eup %1867  ;;  %v802_v61 = vadd.f32 1.0, %v1866_v57 }
 0x20b   :  { %v1235_v24 = vsel %vm1234_vm8, %v1864_v9, %v1231_v58  ;;  %v1243_v63 = vmul.f32 %v1868_v60, %v801_v49  ;;  %1869 = vpow2.f32 %v1690_v27  ;;  %vm1248_vm10 = vweird.f32 %v1868_v60 }
 0x20c   :  { %v1240_v0 = vsel %vm1237_vm9, %v1239_v35, %v1235_v24  ;;  %1871 = vrcp.f32 %v802_v61  ;;  %vm1249_vm11 = vmor %vm1247_vm0, %vm1248_vm10  ;;  %v1268_v47 = vand.u32 2147483648, %v802_v61  ;;  %v1266_v46 = vand.u32 2147483647, %v802_v61 }
 0x20d   :  { %1585 = vst.msk [vmem:[%s2675_s5 + $0xd8] sm:$0xff] %vm1557_vm4, %v1240_v0  ;;  %v1244_v25 = vsub.f32 1.0, %v1243_v63  ;;  %vm1262_vm14 = vweird.f32 %v802_v61 }
 0x20e   :  { %v572_v50 = vpop.f32.mrf.mxu2  ;;  %v1269_v29 = vor.u32 1.1754944e-38, %v1268_v47  ;;  %vm1267_vm1 = vcmp.eq.f32.partialorder %v1266_v46, 8.507059e+37 }
 0x20f   :  { %v1245_v5 = vmul.f32 %v1868_v60, %v1244_v25  ;;  %v573_v6 = vadd.f32 %v2447_v42, %v572_v50 }
 0x211   :  { %v1870_v7 = vpop.eup %1869  ;;  %v1246_v8 = vadd.f32 %v1868_v60, %v1245_v5  ;;  %v1691_v10 = vmul.f32 -1.442695, %v573_v6 }
 0x212   :  { %v1872_v11 = vpop.eup %1871  ;;  %v803_v14 = vadd.f32 1.0, %v1870_v7 }
 0x213   :  { %v1250_v56 = vsel %vm1249_vm11, %v1868_v60, %v1246_v8  ;;  %v1258_v45 = vmul.f32 %v1872_v11, %v802_v61  ;;  %1873 = vpow2.f32 %v1691_v10  ;;  %vm1263_vm13 = vweird.f32 %v1872_v11 }
 0x214   :  { %v1255_v16 = vsel %vm1252_vm12, %v1254_v13, %v1250_v56  ;;  %1875 = vrcp.f32 %v803_v14  ;;  %vm1264_vm15 = vmor %vm1262_vm14, %vm1263_vm13  ;;  %v1283_v34 = vand.u32 2147483648, %v803_v14  ;;  %v1281_v37 = vand.u32 2147483647, %v803_v14 }
 0x215   :  { %1586 = vst.msk [vmem:[%s2675_s5 + $0xe0] sm:$0xff] %vm1557_vm4, %v1255_v16  ;;  %v1259_v17 = vsub.f32 1.0, %v1258_v45  ;;  %vm1277_vm3 = vweird.f32 %v803_v14 }
 0x216   :  { %v575_v19 = vpop.f32.mrf.mxu2  ;;  %v1284_v43 = vor.u32 1.1754944e-38, %v1283_v34  ;;  %vm1282_vm6 = vcmp.eq.f32.partialorder %v1281_v37, 8.507059e+37 }
 0x217   :  { %v1260_v20 = vmul.f32 %v1872_v11, %v1259_v17  ;;  %v576_v22 = vadd.f32 %v2447_v42, %v575_v19 }
 0x219   :  { %v1874_v23 = vpop.eup %1873  ;;  %v1261_v26 = vadd.f32 %v1872_v11, %v1260_v20  ;;  %v1692_v28 = vmul.f32 -1.442695, %v576_v22 }
 0x21a   :  { %v1876_v59 = vpop.eup %1875  ;;  %v804_v30 = vadd.f32 1.0, %v1874_v23 }
 0x21b   :  { %v1265_v31 = vsel %vm1264_vm15, %v1872_v11, %v1261_v26  ;;  %v1273_v62 = vmul.f32 %v1876_v59, %v803_v14  ;;  %1877 = vpow2.f32 %v1692_v28  ;;  %vm1278_vm2 = vweird.f32 %v1876_v59 }
 0x21c   :  { %v1270_v12 = vsel %vm1267_vm1, %v1269_v29, %v1265_v31  ;;  %1879 = vrcp.f32 %v804_v30  ;;  %vm1279_vm5 = vmor %vm1277_vm3, %vm1278_vm2  ;;  %v1298_v44 = vand.u32 2147483648, %v804_v30  ;;  %v1296_v18 = vand.u32 2147483647, %v804_v30 }
 0x21d   :  { %1587 = vst.msk [vmem:[%s2675_s5 + $0xe8] sm:$0xff] %vm1557_vm4, %v1270_v12  ;;  %v1274_v33 = vsub.f32 1.0, %v1273_v62  ;;  %vm1292_vm8 = vweird.f32 %v804_v30 }
 0x21e   :  { %v578_v1 = vpop.f32.mrf.mxu2  ;;  %v1299_v58 = vor.u32 1.1754944e-38, %v1298_v44  ;;  %vm1297_vm10 = vcmp.eq.f32.partialorder %v1296_v18, 8.507059e+37 }
 0x21f   :  { %v1275_v36 = vmul.f32 %v1876_v59, %v1274_v33  ;;  %v579_v40 = vadd.f32 %v2447_v42, %v578_v1 }
 0x221   :  { %v1878_v38 = vpop.eup %1877  ;;  %v1276_v39 = vadd.f32 %v1876_v59, %v1275_v36  ;;  %v1693_v41 = vmul.f32 -1.442695, %v579_v40 }
 0x222   :  { %v1880_v3 = vpop.eup %1879  ;;  %v805_v15 = vadd.f32 1.0, %v1878_v38 }
 0x223   :  { %v1280_v9 = vsel %vm1279_vm5, %v1876_v59, %v1276_v39  ;;  %v1288_v48 = vmul.f32 %v1880_v3, %v804_v30  ;;  %1881 = vpow2.f32 %v1693_v41  ;;  %vm1293_vm7 = vweird.f32 %v1880_v3 }
 0x224   :  { %v1285_v49 = vsel %vm1282_vm6, %v1284_v43, %v1280_v9  ;;  %1883 = vrcp.f32 %v805_v15  ;;  %vm1294_vm9 = vmor %vm1292_vm8, %vm1293_vm7  ;;  %v1313_v63 = vand.u32 2147483648, %v805_v15  ;;  %v1311_v2 = vand.u32 2147483647, %v805_v15 }
 0x225   :  { %1588 = vst.msk [vmem:[%s2675_s5 + $0xf0] sm:$0xff] %vm1557_vm4, %v1285_v49  ;;  %v1289_v51 = vsub.f32 1.0, %v1288_v48  ;;  %vm1307_vm11 = vweird.f32 %v805_v15 }
 0x226   :  { %v581_v32 = vpop.f32.mrf.mxu2  ;;  %v1314_v8 = vor.u32 1.1754944e-38, %v1313_v63  ;;  %vm1312_vm13 = vcmp.eq.f32.partialorder %v1311_v2, 8.507059e+37 }
 0x227   :  { %v1290_v52 = vmul.f32 %v1880_v3, %v1289_v51  ;;  %v582_v53 = vadd.f32 %v2447_v42, %v581_v32 }
 0x229   :  { %v1882_v54 = vpop.eup %1881  ;;  %v1291_v55 = vadd.f32 %v1880_v3, %v1290_v52  ;;  %v1694_v21 = vmul.f32 -1.442695, %v582_v53 }
 0x22a   :  { %v1884_v57 = vpop.eup %1883  ;;  %v806_v27 = vadd.f32 1.0, %v1882_v54 }
 0x22b   :  { %v1295_v60 = vsel %vm1294_vm9, %v1880_v3, %v1291_v55  ;;  %v1303_v35 = vmul.f32 %v1884_v57, %v805_v15  ;;  %1885 = vpow2.f32 %v1694_v21  ;;  %vm1308_vm0 = vweird.f32 %v1884_v57 }
 0x22c   :  { %v1300_v61 = vsel %vm1297_vm10, %v1299_v58, %v1295_v60  ;;  %1887 = vrcp.f32 %v806_v27  ;;  %vm1309_vm12 = vmor %vm1307_vm11, %vm1308_vm0  ;;  %v1328_v45 = vand.u32 2147483648, %v806_v27  ;;  %v1326_v47 = vand.u32 2147483647, %v806_v27 }
 0x22d   :  { %1589 = vst.msk [vmem:[%s2675_s5 + $0xf8] sm:$0xff] %vm1557_vm4, %v1300_v61  ;;  %v1304_v24 = vsub.f32 1.0, %v1303_v35  ;;  %vm1322_vm15 = vweird.f32 %v806_v27 }
 0x22e   :  { %v584_v0 = vpop.f32.mrf.mxu2  ;;  %v1329_v26 = vor.u32 1.1754944e-38, %v1328_v45  ;;  %vm1327_vm2 = vcmp.eq.f32.partialorder %v1326_v47, 8.507059e+37 }
 0x22f   :  { %v1305_v25 = vmul.f32 %v1884_v57, %v1304_v24  ;;  %v585_v50 = vadd.f32 %v2447_v42, %v584_v0 }
 0x231   :  { %v1886_v5 = vpop.eup %1885  ;;  %v1306_v4 = vadd.f32 %v1884_v57, %v1305_v25  ;;  %v1695_v6 = vmul.f32 -1.442695, %v585_v50 }
 0x232   :  { %v1888_v7 = vpop.eup %1887  ;;  %v807_v10 = vadd.f32 1.0, %v1886_v5 }
 0x233   :  { %v1310_v11 = vsel %vm1309_vm12, %v1884_v57, %v1306_v4  ;;  %v1318_v13 = vmul.f32 %v1888_v7, %v806_v27  ;;  %1889 = vpow2.f32 %v1695_v6  ;;  %vm1323_vm14 = vweird.f32 %v1888_v7 }
 0x234   :  { %v1315_v14 = vsel %vm1312_vm13, %v1314_v8, %v1310_v11  ;;  %1891 = vrcp.f32 %v807_v10  ;;  %vm1324_vm1 = vmor %vm1322_vm15, %vm1323_vm14  ;;  %v1343_v62 = vand.u32 2147483648, %v807_v10  ;;  %v1341_v34 = vand.u32 2147483647, %v807_v10 }
 0x235   :  { %1590 = vst.msk [vmem:[%s2675_s5 + $0x100] sm:$0xff] %vm1557_vm4, %v1315_v14  ;;  %v1319_v56 = vsub.f32 1.0, %v1318_v13  ;;  %vm1337_vm5 = vweird.f32 %v807_v10 }
 0x236   :  { %v587_v16 = vpop.f32.mrf.mxu2  ;;  %v1344_v39 = vor.u32 1.1754944e-38, %v1343_v62  ;;  %vm1342_vm7 = vcmp.eq.f32.partialorder %v1341_v34, 8.507059e+37 }
 0x237   :  { %v1320_v17 = vmul.f32 %v1888_v7, %v1319_v56  ;;  %v588_v19 = vadd.f32 %v2447_v42, %v587_v16 }
 0x239   :  { %v1890_v20 = vpop.eup %1889  ;;  %v1321_v46 = vadd.f32 %v1888_v7, %v1320_v17  ;;  %v1696_v22 = vmul.f32 -1.442695, %v588_v19 }
 0x23a   :  { %v1892_v23 = vpop.eup %1891  ;;  %v808_v28 = vadd.f32 1.0, %v1890_v20 }
 0x23b   :  { %v1325_v59 = vsel %vm1324_vm1, %v1888_v7, %v1321_v46  ;;  %v1333_v29 = vmul.f32 %v1892_v23, %v807_v10  ;;  %1893 = vpow2.f32 %v1696_v22  ;;  %vm1338_vm3 = vweird.f32 %v1892_v23 }
 0x23c   :  { %v1330_v30 = vsel %vm1327_vm2, %v1329_v26, %v1325_v59  ;;  %1895 = vrcp.f32 %v808_v28  ;;  %vm1339_vm6 = vmor %vm1337_vm5, %vm1338_vm3  ;;  %v1358_v48 = vand.u32 2147483648, %v808_v28  ;;  %v1356_v44 = vand.u32 2147483647, %v808_v28 }
 0x23d   :  { %1591 = vst.msk [vmem:[%s2675_s5 + $0x108] sm:$0xff] %vm1557_vm4, %v1330_v30  ;;  %v1334_v31 = vsub.f32 1.0, %v1333_v29  ;;  %vm1352_vm9 = vweird.f32 %v808_v28 }
 0x23e   :  { %v590_v12 = vpop.f32.mrf.mxu2  ;;  %v1359_v55 = vor.u32 1.1754944e-38, %v1358_v48  ;;  %vm1357_vm0 = vcmp.eq.f32.partialorder %v1356_v44, 8.507059e+37  ;;  %v620_v7 = vpop.f32.mrf.mxu3 }
 0x23f   :  { %v1335_v33 = vmul.f32 %v1892_v23, %v1334_v31  ;;  %v591_v1 = vadd.f32 %v2447_v42, %v590_v12  ;;  %v621_v14 = vadd.f32 %v2447_v42, %v620_v7 }
 0x241   :  { %v1894_v36 = vpop.eup %1893  ;;  %v1336_v37 = vadd.f32 %v1892_v23, %v1335_v33  ;;  %v1697_v40 = vmul.f32 -1.442695, %v591_v1  ;;  %v1707_v19 = vmul.f32 -1.442695, %v621_v14 }
 0x242   :  { %v1896_v38 = vpop.eup %1895  ;;  %v809_v41 = vadd.f32 1.0, %v1894_v36 }
 0x243   :  { %v1340_v3 = vsel %vm1339_vm6, %v1892_v23, %v1336_v37  ;;  %v1348_v43 = vmul.f32 %v1896_v38, %v808_v28  ;;  %1897 = vpow2.f32 %v1697_v40  ;;  %vm1353_vm8 = vweird.f32 %v1896_v38 }
 0x244   :  { %v1345_v15 = vsel %vm1342_vm7, %v1344_v39, %v1340_v3  ;;  %1899 = vrcp.f32 %v809_v41  ;;  %vm1354_vm10 = vmor %vm1352_vm9, %vm1353_vm8  ;;  %v1373_v35 = vand.u32 2147483648, %v809_v41  ;;  %v1371_v63 = vand.u32 2147483647, %v809_v41 }
 0x245   :  { %1592 = vst.msk [vmem:[%s2675_s5 + $0x110] sm:$0xff] %vm1557_vm4, %v1345_v15  ;;  %v1349_v9 = vsub.f32 1.0, %v1348_v43  ;;  %vm1367_vm12 = vweird.f32 %v809_v41 }
 0x246   :  { %v593_v49 = vpop.f32.mrf.mxu2  ;;  %v1374_v4 = vor.u32 1.1754944e-38, %v1373_v35  ;;  %vm1372_vm14 = vcmp.eq.f32.partialorder %v1371_v63, 8.507059e+37  ;;  %v623_v59 = vpop.f32.mrf.mxu3 }
 0x247   :  { %v1350_v51 = vmul.f32 %v1896_v38, %v1349_v9  ;;  %v594_v32 = vadd.f32 %v2447_v42, %v593_v49  ;;  %v624_v12 = vadd.f32 %v2447_v42, %v623_v59 }
 0x249   :  { %v1898_v52 = vpop.eup %1897  ;;  %v1351_v18 = vadd.f32 %v1896_v38, %v1350_v51  ;;  %v1698_v53 = vmul.f32 -1.442695, %v594_v32 }
 0x24a   :  { %v1900_v54 = vpop.eup %1899  ;;  %v810_v21 = vadd.f32 1.0, %v1898_v52 }
 0x24b   :  { %v1355_v57 = vsel %vm1354_vm10, %v1896_v38, %v1351_v18  ;;  %v1363_v58 = vmul.f32 %v1900_v54, %v809_v41  ;;  %1901 = vpow2.f32 %v1698_v53  ;;  %vm1368_vm11 = vweird.f32 %v1900_v54 }
 0x24c   :  { %v1360_v27 = vsel %vm1357_vm0, %v1359_v55, %v1355_v57  ;;  %1903 = vrcp.f32 %v810_v21  ;;  %vm1369_vm13 = vmor %vm1367_vm12, %vm1368_vm11  ;;  %v1386_v56 = vand.u32 2147483647, %v810_v21  ;;  %v1388_v45 = vand.u32 2147483648, %v810_v21  ;;  %v2586_v55 = vld [vmem:[%s2674_s4] ss:$0 sm:$0xff] }
 0x24d   :  { %1593 = vst.msk [vmem:[%s2675_s5 + $0x118] sm:$0xff] %vm1557_vm4, %v1360_v27  ;;  %v1364_v60 = vsub.f32 1.0, %v1363_v58  ;;  %vm1382_vm1 = vweird.f32 %v810_v21  ;;  %v1708_v38 = vmul.f32 -1.442695, %v624_v12 }
 0x24e   :  { %v596_v61 = vpop.f32.mrf.mxu2  ;;  %v1389_v26 = vor.u32 1.1754944e-38, %v1388_v45  ;;  %vm1387_vm3 = vcmp.eq.f32.partialorder %v1386_v56, 8.507059e+37 }
 0x24f   :  { %v1365_v24 = vmul.f32 %v1900_v54, %v1364_v60  ;;  %v597_v0 = vadd.f32 %v2447_v42, %v596_v61 }
 0x251   :  { %v1902_v25 = vpop.eup %1901  ;;  %v1366_v2 = vadd.f32 %v1900_v54, %v1365_v24  ;;  %v1699_v50 = vmul.f32 -1.442695, %v597_v0 }
 0x252   :  { %v1904_v5 = vpop.eup %1903  ;;  %v811_v6 = vadd.f32 1.0, %v1902_v25 }
 0x253   :  { %v1370_v8 = vsel %vm1369_vm13, %v1900_v54, %v1366_v2  ;;  %v1378_v10 = vmul.f32 %v1904_v5, %v810_v21  ;;  %1905 = vpow2.f32 %v1699_v50  ;;  %vm1383_vm15 = vweird.f32 %v1904_v5 }
 0x254   :  { %v1375_v11 = vsel %vm1372_vm14, %v1374_v4, %v1370_v8  ;;  %1907 = vrcp.f32 %v811_v6  ;;  %vm1384_vm2 = vmor %vm1382_vm1, %vm1383_vm15  ;;  %v1401_v33 = vand.u32 2147483647, %v811_v6  ;;  %v1403_v34 = vand.u32 2147483648, %v811_v6 }
 0x255   :  { %1594 = vst.msk [vmem:[%s2675_s5 + $0x120] sm:$0xff] %vm1557_vm4, %v1375_v11  ;;  %v1379_v13 = vsub.f32 1.0, %v1378_v10  ;;  %1909 = vpow2.f32 %v1707_v19  ;;  %vm1397_vm6 = vweird.f32 %v811_v6 }
 0x256   :  { %v599_v16 = vpop.f32.mrf.mxu2  ;;  %v1404_v9 = vor.u32 1.1754944e-38, %v1403_v34  ;;  %vm1402_vm8 = vcmp.eq.f32.partialorder %v1401_v33, 8.507059e+37 }
 0x257   :  { %v1380_v17 = vmul.f32 %v1904_v5, %v1379_v13  ;;  %v600_v47 = vadd.f32 %v2447_v42, %v599_v16 }
 0x259   :  { %v1906_v20 = vpop.eup %1905  ;;  %v1381_v46 = vadd.f32 %v1904_v5, %v1380_v17  ;;  %v1700_v22 = vmul.f32 -1.442695, %v600_v47 }
 0x25a   :  { %v1908_v23 = vpop.eup %1907  ;;  %v812_v28 = vadd.f32 1.0, %v1906_v20 }
 0x25b   :  { %v1385_v29 = vsel %vm1384_vm2, %v1904_v5, %v1381_v46  ;;  %v1393_v30 = vmul.f32 %v1908_v23, %v811_v6  ;;  %1911 = vpow2.f32 %v1700_v22  ;;  %v1910_v36 = vpop.eup %1909  ;;  %vm1398_vm5 = vweird.f32 %v1908_v23 }
 0x25c   :  { %v1390_v31 = vsel %vm1387_vm3, %v1389_v26, %v1385_v29  ;;  %1913 = vrcp.f32 %v812_v28  ;;  %v2576_v39 = vadd.f32 1.0, %v1910_v36  ;;  %vm1399_vm7 = vmor %vm1397_vm6, %vm1398_vm5  ;;  %v1418_v32 = vand.u32 2147483648, %v812_v28 }
 0x25d   :  { %1595 = vst.msk [vmem:[%s2675_s5 + $0x128] sm:$0xff] %vm1557_vm4, %v1390_v31  ;;  %v1394_v62 = vsub.f32 1.0, %v1393_v30  ;;  %1915 = vpow2.f32 %v1708_v38  ;;  %v1416_v54 = vand.u32 2147483647, %v812_v28  ;;  %vm1412_vm10 = vweird.f32 %v812_v28 }
 0x25e   :  { %v602_v1 = vpop.f32.mrf.mxu2  ;;  %1917 = vrcp.f32 %v2576_v39  ;;  %v1419_v63 = vor.u32 1.1754944e-38, %v1418_v32  ;;  %vm1532_vm13 = vweird.f32 %v2576_v39  ;;  %v1538_v10 = vand.u32 2147483648, %v2576_v39 }
 0x25f   :  { %v1395_v37 = vmul.f32 %v1908_v23, %v1394_v62  ;;  %v603_v40 = vadd.f32 %v2447_v42, %v602_v1  ;;  %vm1417_vm11 = vcmp.eq.f32.partialorder %v1416_v54, 8.507059e+37  ;;  %v1536_v56 = vand.u32 2147483647, %v2576_v39 }
 0x261   :  { %v1912_v41 = vpop.eup %1911  ;;  %v1396_v3 = vadd.f32 %v1908_v23, %v1395_v37  ;;  %v1701_v43 = vmul.f32 -1.442695, %v603_v40  ;;  %vm1537_vm5 = vcmp.eq.f32.partialorder %v1536_v56, 8.507059e+37 }
 0x262   :  { %v1914_v15 = vpop.eup %1913  ;;  %v813_v48 = vadd.f32 1.0, %v1912_v41 }
 0x263   :  { %v1400_v49 = vsel %vm1399_vm7, %v1908_v23, %v1396_v3  ;;  %v1408_v51 = vmul.f32 %v1914_v15, %v812_v28  ;;  %1919 = vpow2.f32 %v1701_v43  ;;  %v1916_v18 = vpop.eup %1915  ;;  %vm1413_vm9 = vweird.f32 %v1914_v15 }
 0x264   :  { %v1405_v44 = vsel %vm1402_vm8, %v1404_v9, %v1400_v49  ;;  %1921 = vrcp.f32 %v813_v48  ;;  %v1918_v57 = vpop.eup %1917  ;;  %v2589_v58 = vadd.f32 1.0, %v1916_v18  ;;  %vm1414_vm0 = vmor %vm1412_vm10, %vm1413_vm9  ;;  %v1431_v4 = vand.u32 2147483647, %v813_v48 }
 0x265   :  { %1596 = vst.msk [vmem:[%s2675_s5 + $0x130] sm:$0xff] %vm1557_vm4, %v1405_v44  ;;  %v1409_v42 = vsub.f32 1.0, %v1408_v51  ;;  %v1528_v61 = vmul.f32 %v1918_v57, %v2576_v39  ;;  %v1433_v6 = vand.u32 2147483648, %v813_v48  ;;  %vm1533_vm14 = vweird.f32 %v1918_v57 }
 0x266   :  { %v605_v52 = vpop.f32.mrf.mxu2  ;;  %1923 = vrcp.f32 %v2589_v58  ;;  %vm1427_vm15 = vweird.f32 %v813_v48  ;;  %vm1432_vm2 = vcmp.eq.f32.partialorder %v1431_v4, 8.507059e+37  ;;  %vm2610_vm3 = vmor %vm1532_vm13, %vm1533_vm14  ;;  %v1539_v28 = vor.u32 1.1754944e-38, %v1538_v10 }
 0x267   :  { %v1410_v53 = vmul.f32 %v1914_v15, %v1409_v42  ;;  %v606_v21 = vadd.f32 %v2586_v55, %v605_v52  ;;  %v1529_v7 = vsub.f32 1.0, %v1528_v61  ;;  %v1434_v22 = vor.u32 1.1754944e-38, %v1433_v6 }
 0x268   :  { %vm1547_vm7 = vweird.f32 %v2589_v58  ;;  %v1551_v39 = vand.u32 2147483647, %v2589_v58  ;;  %v1553_v41 = vand.u32 2147483648, %v2589_v58 }
 0x269   :  { %v1920_v27 = vpop.eup %1919  ;;  %v1411_v60 = vadd.f32 %v1914_v15, %v1410_v53  ;;  %v1702_v35 = vmul.f32 -1.442695, %v606_v21  ;;  %v1530_v14 = vmul.f32 %v1918_v57, %v1529_v7 }
 0x26a   :  { %v1922_v24 = vpop.eup %1921  ;;  %v2592_v0 = vadd.f32 1.0, %v1920_v27  ;;  %v1554_v44 = vor.u32 1.1754944e-38, %v1553_v41 }
 0x26b   :  { %v1415_v25 = vsel %vm1414_vm0, %v1914_v15, %v1411_v60  ;;  %v1423_v2 = vmul.f32 %v1922_v24, %v813_v48  ;;  %1925 = vpow2.f32 %v1702_v35  ;;  %vm1428_vm12 = vweird.f32 %v1922_v24 }
 0x26c   :  { %v1420_v50 = vsel %vm1417_vm11, %v1419_v63, %v1415_v25  ;;  %1927 = vrcp.f32 %v2592_v0  ;;  %v1924_v45 = vpop.eup %1923  ;;  %vm1429_vm1 = vmor %vm1427_vm15, %vm1428_vm12  ;;  %v1531_v19 = vadd.f32 %v1918_v57, %v1530_v14  ;;  %v1446_v62 = vand.u32 2147483647, %v2592_v0 }
 0x26d   :  { %1597 = vst.msk [vmem:[%s2675_s5 + $0x138] sm:$0xff] %vm1557_vm4, %v1420_v50  ;;  %v1424_v5 = vsub.f32 1.0, %v1423_v2  ;;  %v1543_v20 = vmul.f32 %v1924_v45, %v2589_v58  ;;  %v1448_v34 = vand.u32 2147483648, %v2592_v0  ;;  %vm1548_vm8 = vweird.f32 %v1924_v45 }
 0x26e   :  { %v608_v8 = vpop.f32.mrf.mxu2  ;;  %v1535_v12 = vsel %vm2610_vm3, %v1918_v57, %v1531_v19  ;;  %vm1442_vm9 = vweird.f32 %v2592_v0  ;;  %vm1447_vm0 = vcmp.eq.f32.partialorder %v1446_v62, 8.507059e+37  ;;  %vm1549_vm11 = vmor %vm1547_vm7, %vm1548_vm8  ;;  %vm1552_vm12 = vcmp.eq.f32.partialorder %v1551_v39, 8.507059e+37 }
 0x26f   :  { %v1425_v11 = vmul.f32 %v1922_v24, %v1424_v5  ;;  %v609_v13 = vadd.f32 %v2586_v55, %v608_v8  ;;  %v1544_v33 = vsub.f32 1.0, %v1543_v20  ;;  %v1540_v1 = vsel %vm1537_vm5, %v1539_v28, %v1535_v12 }
 0x270   :  { %1605 = vst.msk [vmem:[%s2675_s5 + $0x178] sm:$0xff] %vm1557_vm4, %v1540_v1  ;;  %v1449_v49 = vor.u32 1.1754944e-38, %v1448_v34 }
 0x271   :  { %v1926_v16 = vpop.eup %1925  ;;  %v1426_v17 = vadd.f32 %v1922_v24, %v1425_v11  ;;  %v1703_v47 = vmul.f32 -1.442695, %v609_v13  ;;  %v1545_v38 = vmul.f32 %v1924_v45, %v1544_v33 }
 0x272   :  { %v1928_v46 = vpop.eup %1927  ;;  %v2605_v23 = vadd.f32 1.0, %v1926_v16 }
 0x273   :  { %v1430_v59 = vsel %vm1429_vm1, %v1922_v24, %v1426_v17  ;;  %v1438_v29 = vmul.f32 %v1928_v46, %v2592_v0  ;;  %1929 = vpow2.f32 %v1703_v47  ;;  %vm1443_vm6 = vweird.f32 %v1928_v46 }
 0x274   :  { %v1435_v30 = vsel %vm1432_vm2, %v1434_v22, %v1430_v59  ;;  %1931 = vrcp.f32 %v2605_v23  ;;  %vm1444_vm10 = vmor %vm1442_vm9, %vm1443_vm6  ;;  %v1546_v9 = vadd.f32 %v1924_v45, %v1545_v38  ;;  %v1463_v54 = vand.u32 2147483648, %v2605_v23 }
 0x275   :  { %1598 = vst.msk [vmem:[%s2675_s5 + $0x140] sm:$0xff] %vm1557_vm4, %v1435_v30  ;;  %v1439_v31 = vsub.f32 1.0, %v1438_v29  ;;  %v1461_v27 = vand.u32 2147483647, %v2605_v23  ;;  %vm1457_vm14 = vweird.f32 %v2605_v23 }
 0x276   :  { %v611_v36 = vpop.f32.mrf.mxu2  ;;  %v1550_v53 = vsel %vm1549_vm11, %v1924_v45, %v1546_v9  ;;  %v1464_v0 = vor.u32 1.1754944e-38, %v1463_v54 }
 0x277   :  { %v1440_v37 = vmul.f32 %v1928_v46, %v1439_v31  ;;  %v612_v40 = vadd.f32 %v2586_v55, %v611_v36  ;;  %v1555_v21 = vsel %vm1552_vm12, %v1554_v44, %v1550_v53  ;;  %vm1462_vm1 = vcmp.eq.f32.partialorder %v1461_v27, 8.507059e+37 }
 0x278   :  { %1606 = vst.msk [vmem:[%s2675_s5 + $0x180] sm:$0xff] %vm1557_vm4, %v1555_v21 }
 0x279   :  { %v1930_v3 = vpop.eup %1929  ;;  %v1441_v43 = vadd.f32 %v1928_v46, %v1440_v37  ;;  %v1704_v15 = vmul.f32 -1.442695, %v612_v40 }
 0x27a   :  { %v1932_v48 = vpop.eup %1931  ;;  %v816_v51 = vadd.f32 1.0, %v1930_v3 }
 0x27b   :  { %v1445_v42 = vsel %vm1444_vm10, %v1928_v46, %v1441_v43  ;;  %v1453_v32 = vmul.f32 %v1932_v48, %v2605_v23  ;;  %1933 = vpow2.f32 %v1704_v15  ;;  %vm1458_vm13 = vweird.f32 %v1932_v48 }
 0x27c   :  { %v1450_v52 = vsel %vm1447_vm0, %v1449_v49, %v1445_v42  ;;  %1935 = vrcp.f32 %v816_v51  ;;  %vm1459_vm15 = vmor %vm1457_vm14, %vm1458_vm13  ;;  %v1478_v6 = vand.u32 2147483648, %v816_v51  ;;  %v1476_v10 = vand.u32 2147483647, %v816_v51 }
 0x27d   :  { %1599 = vst.msk [vmem:[%s2675_s5 + $0x148] sm:$0xff] %vm1557_vm4, %v1450_v52  ;;  %v1454_v18 = vsub.f32 1.0, %v1453_v32  ;;  %vm1472_vm3 = vweird.f32 %v816_v51 }
 0x27e   :  { %v614_v57 = vpop.f32.mrf.mxu2  ;;  %v1479_v16 = vor.u32 1.1754944e-38, %v1478_v6  ;;  %vm1477_vm6 = vcmp.eq.f32.partialorder %v1476_v10, 8.507059e+37 }
 0x27f   :  { %v1455_v58 = vmul.f32 %v1932_v48, %v1454_v18  ;;  %v615_v60 = vadd.f32 %v2586_v55, %v614_v57 }
 0x281   :  { %v1934_v35 = vpop.eup %1933  ;;  %v1456_v61 = vadd.f32 %v1932_v48, %v1455_v58  ;;  %v1705_v24 = vmul.f32 -1.442695, %v615_v60 }
 0x282   :  { %v1936_v63 = vpop.eup %1935  ;;  %v817_v25 = vadd.f32 1.0, %v1934_v35 }
 0x283   :  { %v1460_v2 = vsel %vm1459_vm15, %v1932_v48, %v1456_v61  ;;  %v1468_v50 = vmul.f32 %v1936_v63, %v816_v51  ;;  %1937 = vpow2.f32 %v1705_v24  ;;  %vm1473_vm2 = vweird.f32 %v1936_v63 }
 0x284   :  { %v1465_v5 = vsel %vm1462_vm1, %v1464_v0, %v1460_v2  ;;  %1939 = vrcp.f32 %v817_v25  ;;  %vm1474_vm5 = vmor %vm1472_vm3, %vm1473_vm2  ;;  %v1493_v46 = vand.u32 2147483648, %v817_v25  ;;  %v1491_v23 = vand.u32 2147483647, %v817_v25 }
 0x285   :  { %1600 = vst.msk [vmem:[%s2675_s5 + $0x150] sm:$0xff] %vm1557_vm4, %v1465_v5  ;;  %v1469_v4 = vsub.f32 1.0, %v1468_v50  ;;  %vm1487_vm8 = vweird.f32 %v817_v25 }
 0x286   :  { %v617_v7 = vpop.f32.mrf.mxu2  ;;  %v1494_v29 = vor.u32 1.1754944e-38, %v1493_v46  ;;  %vm1492_vm10 = vcmp.eq.f32.partialorder %v1491_v23, 8.507059e+37 }
 0x287   :  { %v1470_v8 = vmul.f32 %v1936_v63, %v1469_v4  ;;  %v618_v11 = vadd.f32 %v2586_v55, %v617_v7 }
 0x289   :  { %v1938_v13 = vpop.eup %1937  ;;  %v1471_v14 = vadd.f32 %v1936_v63, %v1470_v8  ;;  %v1706_v56 = vmul.f32 -1.442695, %v618_v11 }
 0x28a   :  { %v1940_v45 = vpop.eup %1939  ;;  %v818_v17 = vadd.f32 1.0, %v1938_v13 }
 0x28b   :  { %v1475_v47 = vsel %vm1474_vm5, %v1936_v63, %v1471_v14  ;;  %v1483_v19 = vmul.f32 %v1940_v45, %v817_v25  ;;  %1941 = vpow2.f32 %v1706_v56  ;;  %vm1488_vm7 = vweird.f32 %v1940_v45 }
 0x28c   :  { %v1480_v20 = vsel %vm1477_vm6, %v1479_v16, %v1475_v47  ;;  %1943 = vrcp.f32 %v818_v17  ;;  %vm1489_vm9 = vmor %vm1487_vm8, %vm1488_vm7  ;;  %v1508_v34 = vand.u32 2147483648, %v818_v17  ;;  %v1506_v36 = vand.u32 2147483647, %v818_v17 }
 0x28d   :  { %1601 = vst.msk [vmem:[%s2675_s5 + $0x158] sm:$0xff] %vm1557_vm4, %v1480_v20  ;;  %v1484_v55 = vsub.f32 1.0, %v1483_v19  ;;  %vm1502_vm11 = vweird.f32 %v818_v17 }
 0x28e   :  { %v1509_v38 = vor.u32 1.1754944e-38, %v1508_v34  ;;  %vm1507_vm13 = vcmp.eq.f32.partialorder %v1506_v36, 8.507059e+37 }
 0x28f   :  { %v1485_v22 = vmul.f32 %v1940_v45, %v1484_v55 }
 0x291   :  { %v1942_v26 = vpop.eup %1941  ;;  %v1486_v28 = vadd.f32 %v1940_v45, %v1485_v22 }
 0x292   :  { %v1944_v59 = vpop.eup %1943  ;;  %v819_v30 = vadd.f32 1.0, %v1942_v26 }
 0x293   :  { %v1490_v31 = vsel %vm1489_vm9, %v1940_v45, %v1486_v28  ;;  %v1498_v62 = vmul.f32 %v1944_v59, %v818_v17  ;;  %vm1503_vm0 = vweird.f32 %v1944_v59 }
 0x294   :  { %v1495_v12 = vsel %vm1492_vm10, %v1494_v29, %v1490_v31  ;;  %1945 = vrcp.f32 %v819_v30  ;;  %vm1504_vm12 = vmor %vm1502_vm11, %vm1503_vm0  ;;  %v1523_v15 = vand.u32 2147483648, %v819_v30  ;;  %v1521_v48 = vand.u32 2147483647, %v819_v30 }
 0x295   :  { %1602 = vst.msk [vmem:[%s2675_s5 + $0x160] sm:$0xff] %vm1557_vm4, %v1495_v12  ;;  %v1499_v33 = vsub.f32 1.0, %v1498_v62  ;;  %vm1517_vm15 = vweird.f32 %v819_v30 }
 0x296   :  { %v1524_v51 = vor.u32 1.1754944e-38, %v1523_v15  ;;  %vm1522_vm2 = vcmp.eq.f32.partialorder %v1521_v48, 8.507059e+37 }
 0x297   :  { %v1500_v1 = vmul.f32 %v1944_v59, %v1499_v33 }
 0x299   :  { %v1501_v37 = vadd.f32 %v1944_v59, %v1500_v1 }
 0x29a   :  { %v1946_v40 = vpop.eup %1945 }
 0x29b   :  { %v1505_v39 = vsel %vm1504_vm12, %v1944_v59, %v1501_v37  ;;  %v1513_v41 = vmul.f32 %v1946_v40, %v819_v30  ;;  %vm1518_vm14 = vweird.f32 %v1946_v40 }
 0x29c   :  { %v1510_v3 = vsel %vm1507_vm13, %v1509_v38, %v1505_v39  ;;  %vm1519_vm1 = vmor %vm1517_vm15, %vm1518_vm14 }
 0x29d   :  { %1603 = vst.msk [vmem:[%s2675_s5 + $0x168] sm:$0xff] %vm1557_vm4, %v1510_v3  ;;  %v1514_v43 = vsub.f32 1.0, %v1513_v41 }
 0x29f   :  { %v1515_v9 = vmul.f32 %v1946_v40, %v1514_v43 }
 0x2a1   :  { %v1516_v49 = vadd.f32 %v1946_v40, %v1515_v9 }
 0x2a3   :  { %v1520_v44 = vsel %vm1519_vm1, %v1946_v40, %v1516_v49 }
 0x2a4   :  { %v1525_v42 = vsel %vm1522_vm2, %v1524_v51, %v1520_v44 }
 0x2a5   :  { %1604 = vst.msk [vmem:[%s2675_s5 + $0x170] sm:$0xff] %vm1557_vm4, %v1525_v42 }

</bundles_post_ra>
